<compile_context>
chip_gen: v7x
topology: tpu7x:2x2x1
jax: 0.10.0
libtpu: 0.0.40
codegen_flags: <defaults>
</compile_context>

<pallas_src>
import functools
import math

import jax
import jax.numpy as jnp
from jax import lax
from jax.experimental import pallas as pl
from jax.experimental.pallas import tpu as pltpu

VMEM_SPEC = pl.BlockSpec(memory_space=pltpu.MemorySpace.VMEM)
NEG = jnp.float32(-1e20)


# ----------------------------- in-kernel helpers -----------------------------

def _layer_norm(x, gamma, beta, eps):
    mu = jnp.mean(x, axis=-1, keepdims=True)
    var = jnp.mean(jnp.square(x - mu), axis=-1, keepdims=True)
    return (x - mu) * lax.rsqrt(var + eps) * gamma + beta


def _attention(xq, xkv, add_mask, wq, wkv, wo, bo, gamma, beta, *,
               N, Lq, Lkv, heads, scale, eps):
    """Multi-head attention + Wo + residual + LayerNorm.

    xq: (N*Lq, E) queries (also the residual); xkv: (N*Lkv, E) keys/values source;
    add_mask: (N*Lq, Lkv) additive mask (0 / -1e20), shared across heads.
    """
    E = xq.shape[-1]
    hd = E // heads

    # Wide projections (block-diagonal expanded weights -> single MXU contractions).
    q = jnp.dot(xq, wq, preferred_element_type=jnp.float32)       # (N*Lq, E)
    kv = jnp.dot(xkv, wkv, preferred_element_type=jnp.float32)    # (N*Lkv, 2E)
    k = kv[:, :E]
    v = kv[:, E:]

    # TODO(synk): static N/head loops are fine at toy sizes; at real sizes use
    # lane-aligned head slices + lax.fori_loop to bound vreg live ranges.
    att_rows = []
    for n in range(N):
        qn = q[n * Lq:(n + 1) * Lq]          # (Lq, E)
        kn = k[n * Lkv:(n + 1) * Lkv]        # (Lkv, E)
        vn = v[n * Lkv:(n + 1) * Lkv]        # (Lkv, E)
        mn = add_mask[n * Lq:(n + 1) * Lq]   # (Lq, Lkv), loop-invariant over heads
        heads_out = []
        for h in range(heads):
            sl = slice(h * hd, (h + 1) * hd)
            # Contract the last axes of Q and K (no explicit transpose copy).
            s = lax.dot_general(qn[:, sl], kn[:, sl],
                                (((1,), (1,)), ((), ())),
                                preferred_element_type=jnp.float32)   # (Lq, Lkv)
            s = (s + mn) * scale             # masked_fill(-1e20) BEFORE /sqrt(E) (as in ref)
            s = s - jnp.max(s, axis=-1, keepdims=True)
            p = jnp.exp(s)
            p = p * pl.reciprocal(jnp.sum(p, axis=-1, keepdims=True), approx=False)
            heads_out.append(jnp.dot(p, vn[:, sl],
                                     preferred_element_type=jnp.float32))  # (Lq, hd)
        att_rows.append(jnp.concatenate(heads_out, axis=-1))              # (Lq, E)
    att = jnp.concatenate(att_rows, axis=0)                               # (N*Lq, E)

    # Single wide Wo matmul on the concatenated heads (no per-head K=hd accumulation).
    proj = jnp.dot(att, wo, preferred_element_type=jnp.float32) + bo
    return _layer_norm(proj + xq, gamma, beta, eps)


# ------------------------------- fused kernel --------------------------------

def _decoder_stack_kernel(x_ref, enc_ref, tmask_ref, smask_ref,
                          sa_wq_ref, sa_wkv_ref, sa_wo_ref, sa_bo_ref,
                          ln_g_ref, ln_b_ref,
                          ca_wq_ref, ca_wkv_ref, ca_wo_ref, ca_bo_ref,
                          ln1_g_ref, ln1_b_ref,
                          w1_ref, b1_ref, w2_ref, b2_ref,
                          ln2_g_ref, ln2_b_ref,
                          wout_ref, bout_ref,
                          o_ref, *,
                          num_layers, heads, N, Lq, Lk, scale, eps):
    """Whole decoder stack + vocab head in one kernel (all weights VMEM-resident)."""
    x = x_ref[...]          # (N*Lq, E)   embeddings (residual base)
    enc = enc_ref[...]      # (N*Lk, E)   encoder output
    tmask = tmask_ref[...]  # (N*Lq, Lq)  additive target mask
    smask = smask_ref[...]  # (N*Lq, Lk)  additive source mask

    for l in range(num_layers):          # static unroll; weights stay resident in VMEM
        # decoder self-attention + Wo + residual + LayerNorm -> query
        query = _attention(x, x, tmask,
                           sa_wq_ref[l], sa_wkv_ref[l], sa_wo_ref[l], sa_bo_ref[l],
                           ln_g_ref[l], ln_b_ref[l],
                           N=N, Lq=Lq, Lkv=Lq, heads=heads, scale=scale, eps=eps)
        # encoder-decoder (cross) attention + Wo + residual + LayerNorm
        h = _attention(query, enc, smask,
                       ca_wq_ref[l], ca_wkv_ref[l], ca_wo_ref[l], ca_bo_ref[l],
                       ln1_g_ref[l], ln1_b_ref[l],
                       N=N, Lq=Lq, Lkv=Lk, heads=heads, scale=scale, eps=eps)
        # feed-forward + residual + LayerNorm (row-wise over the flattened batch)
        f = jnp.dot(h, w1_ref[l], preferred_element_type=jnp.float32) + b1_ref[l]
        f = jnp.maximum(f, 0.0)
        f = jnp.dot(f, w2_ref[l], preferred_element_type=jnp.float32) + b2_ref[l]
        x = _layer_norm(f + h, ln2_g_ref[l], ln2_b_ref[l], eps)

    # fused vocab head; output is lane-dense (Vpad = multiple of 128).
    logits = jnp.dot(x, wout_ref[...], preferred_element_type=jnp.float32) + bout_ref[...]
    o_ref[...] = logits.astype(o_ref.dtype)


# --------------------------- Model forward (glue) ----------------------------

def decoder_forward(params, tokens, enc_out, src_mask, target_mask, *,
                    num_layers, heads, embed, vocab):
    N, Lq = tokens.shape
    Lk = enc_out.shape[1]
    E = embed

    positions = jnp.arange(Lq)[None, :]
    x = jnp.take(params["word_emb"], tokens, axis=0) \
        + jnp.take(params["pos_emb"], positions, axis=0)
    x = x.reshape(N * Lq, E)
    enc = enc_out.reshape(N * Lk, E)

    # Additive f32 masks (0 / -1e20), no head axis, flattened over (N, Lq);
    # DMA'd once and reused for every head and every layer inside the kernel.
    tgt_add = jnp.where(target_mask[:, 0] == 0, NEG, jnp.float32(0.0))
    src_add = jnp.where(src_mask[:, 0] == 0, NEG, jnp.float32(0.0))
    tgt_add = jnp.broadcast_to(tgt_add, (N, Lq, Lq)).reshape(N * Lq, Lq).astype(jnp.float32)
    src_add = jnp.broadcast_to(src_add, (N, Lq, Lk)).reshape(N * Lq, Lk).astype(jnp.float32)

    L = params["layers_stacked"]
    Vp = params["W_out_pad"].shape[1]

    kernel = functools.partial(
        _decoder_stack_kernel, num_layers=num_layers, heads=heads,
        N=N, Lq=Lq, Lk=Lk, scale=1.0 / math.sqrt(embed), eps=1e-5)

    n_in = 24
    logits_pad = pl.pallas_call(
        kernel,
        out_shape=jax.ShapeDtypeStruct((N * Lq, Vp), jnp.float32),
        in_specs=[VMEM_SPEC] * n_in,
        out_specs=VMEM_SPEC,
    )(x, enc, tgt_add, src_add,
      L["sa_wq"], L["sa_wkv"], L["sa_wo"], L["sa_bo"], L["ln_g"], L["ln_b"],
      L["ca_wq"], L["ca_wkv"], L["ca_wo"], L["ca_bo"], L["ln1_g"], L["ln1_b"],
      L["w1"], L["b1"], L["w2"], L["b2"], L["ln2_g"], L["ln2_b"],
      params["W_out_pad"], params["b_out_pad"])

    return logits_pad[:, :vocab].reshape(N, Lq, vocab)


# ------------------------------ Param init -----------------------------------

def init_params(key, vocab, emb, num_layers, heads, fe, max_len):
    keys = iter(jax.random.split(key, 512))
    nrm = lambda shape, s=0.02: s * jax.random.normal(next(keys), shape, jnp.float32)
    hd = emb // heads
    F = fe * emb
    eye_h = jnp.eye(heads, dtype=jnp.float32)

    def blockdiag(w_head):               # (hd, hd) -> (emb, emb): kron(I_H, W)
        return jnp.kron(eye_h, w_head)

    def attn_params():
        wq = blockdiag(nrm((hd, hd)))    # shared bias-free per-head weight (as in reference)
        wk = blockdiag(nrm((hd, hd)))
        wv = blockdiag(nrm((hd, hd)))
        wkv = jnp.concatenate([wk, wv], axis=1)       # (emb, 2*emb), [K | V]
        return wq, wkv, nrm((emb, emb)), nrm((emb,))[None, :]

    names = ["sa_wq", "sa_wkv", "sa_wo", "sa_bo", "ln_g", "ln_b",
             "ca_wq", "ca_wkv", "ca_wo", "ca_bo", "ln1_g", "ln1_b",
             "w1", "b1", "w2", "b2", "ln2_g", "ln2_b"]
    st = {k: [] for k in names}
    for _ in range(num_layers):
        wq, wkv, wo, bo = attn_params()
        st["sa_wq"].append(wq); st["sa_wkv"].append(wkv)
        st["sa_wo"].append(wo); st["sa_bo"].append(bo)
        st["ln_g"].append(jnp.ones((1, emb), jnp.float32))
        st["ln_b"].append(jnp.zeros((1, emb), jnp.float32))
        wq, wkv, wo, bo = attn_params()
        st["ca_wq"].append(wq); st["ca_wkv"].append(wkv)
        st["ca_wo"].append(wo); st["ca_bo"].append(bo)
        st["ln1_g"].append(jnp.ones((1, emb), jnp.float32))
        st["ln1_b"].append(jnp.zeros((1, emb), jnp.float32))
        st["w1"].append(nrm((emb, F))); st["b1"].append(nrm((F,))[None, :])
        st["w2"].append(nrm((F, emb))); st["b2"].append(nrm((emb,))[None, :])
        st["ln2_g"].append(jnp.ones((1, emb), jnp.float32))
        st["ln2_b"].append(jnp.zeros((1, emb), jnp.float32))
    layers_stacked = {k: jnp.stack(v, axis=0) for k, v in st.items()}

    # Lane-dense vocab head: pad columns to a multiple of 128 (slice logits back in JAX).
    vocab_pad = ((vocab + 127) // 128) * 128
    w_out = nrm((emb, vocab))
    b_out = nrm((vocab,))
    w_out_pad = jnp.zeros((emb, vocab_pad), jnp.float32).at[:, :vocab].set(w_out)
    b_out_pad = jnp.zeros((1, vocab_pad), jnp.float32).at[:, :vocab].set(b_out)

    return dict(
        word_emb=nrm((vocab, emb), 0.1),
        pos_emb=nrm((max_len, emb), 0.1),
        layers_stacked=layers_stacked,
        W_out_pad=w_out_pad, b_out_pad=b_out_pad,
    )


# --------------------------------- main ---------------------------------------

if __name__ == "__main__":
    vocab, emb, num_layers, heads, fe, max_len = 50, 32, 2, 2, 2, 16
    N, tgt_len, src_len = 2, 8, 8

    root = jax.random.PRNGKey(0)
    kp, kt, ke = jax.random.split(root, 3)
    params = init_params(kp, vocab, emb, num_layers, heads, fe, max_len)

    tokens = jax.random.randint(kt, (N, tgt_len), 0, vocab)                  # (2, 8) int32
    enc_out = 0.1 * jax.random.normal(ke, (N, src_len, emb), jnp.float32)    # (2, 8, 32)
    src_mask = jnp.ones((N, 1, 1, src_len), jnp.float32)                     # (2, 1, 1, 8)
    target_mask = jnp.tril(jnp.ones((tgt_len, tgt_len), jnp.float32))[None, None]
    target_mask = jnp.broadcast_to(target_mask, (N, 1, tgt_len, tgt_len))    # (2, 1, 8, 8)

    fwd = jax.jit(functools.partial(decoder_forward, num_layers=num_layers,
                                    heads=heads, embed=emb, vocab=vocab))
    out = fwd(params, tokens, enc_out, src_mask, target_mask)
    out = jax.block_until_ready(out)

    assert out.shape == (N, tgt_len, vocab), out.shape
    assert bool(jnp.all(jnp.isfinite(out)))
    print("KERNEL_OK")
</pallas_src>

<mosaic_0001>
module attributes {stable_mosaic.version = 11 : i64} {
  func.func @_decoder_stack_kernel(%arg0: memref<16x32xf32, #tpu.memory_space<vmem>>, %arg1: memref<16x32xf32, #tpu.memory_space<vmem>>, %arg2: memref<16x8xf32, #tpu.memory_space<vmem>>, %arg3: memref<16x8xf32, #tpu.memory_space<vmem>>, %arg4: memref<2x32x32xf32, #tpu.memory_space<vmem>>, %arg5: memref<2x32x64xf32, #tpu.memory_space<vmem>>, %arg6: memref<2x32x32xf32, #tpu.memory_space<vmem>>, %arg7: memref<2x1x32xf32, #tpu.memory_space<vmem>>, %arg8: memref<2x1x32xf32, #tpu.memory_space<vmem>>, %arg9: memref<2x1x32xf32, #tpu.memory_space<vmem>>, %arg10: memref<2x32x32xf32, #tpu.memory_space<vmem>>, %arg11: memref<2x32x64xf32, #tpu.memory_space<vmem>>, %arg12: memref<2x32x32xf32, #tpu.memory_space<vmem>>, %arg13: memref<2x1x32xf32, #tpu.memory_space<vmem>>, %arg14: memref<2x1x32xf32, #tpu.memory_space<vmem>>, %arg15: memref<2x1x32xf32, #tpu.memory_space<vmem>>, %arg16: memref<2x32x64xf32, #tpu.memory_space<vmem>>, %arg17: memref<2x1x64xf32, #tpu.memory_space<vmem>>, %arg18: memref<2x64x32xf32, #tpu.memory_space<vmem>>, %arg19: memref<2x1x32xf32, #tpu.memory_space<vmem>>, %arg20: memref<2x1x32xf32, #tpu.memory_space<vmem>>, %arg21: memref<2x1x32xf32, #tpu.memory_space<vmem>>, %arg22: memref<32x128xf32, #tpu.memory_space<vmem>>, %arg23: memref<1x128xf32, #tpu.memory_space<vmem>>, %arg24: memref<16x128xf32, #tpu.memory_space<vmem>>) attributes {dimension_semantics = [], scalar_prefetch = 0 : i64, scratch_operands = 0 : i64, tpu.core_type = #tpu.core_type<tc>} {
    %c0 = arith.constant 0 : index
    %c0_0 = arith.constant 0 : index
    %0 = vector.load %arg0[%c0, %c0_0] : memref<16x32xf32, #tpu.memory_space<vmem>>, vector<16x32xf32>
    %c0_1 = arith.constant 0 : index
    %c0_2 = arith.constant 0 : index
    %1 = vector.load %arg1[%c0_1, %c0_2] : memref<16x32xf32, #tpu.memory_space<vmem>>, vector<16x32xf32>
    %c0_3 = arith.constant 0 : index
    %c0_4 = arith.constant 0 : index
    %2 = vector.load %arg2[%c0_3, %c0_4] : memref<16x8xf32, #tpu.memory_space<vmem>>, vector<16x8xf32>
    %c0_5 = arith.constant 0 : index
    %c0_6 = arith.constant 0 : index
    %3 = vector.load %arg3[%c0_5, %c0_6] : memref<16x8xf32, #tpu.memory_space<vmem>>, vector<16x8xf32>
    %c0_7 = arith.constant 0 : index
    %c0_8 = arith.constant 0 : index
    %c0_9 = arith.constant 0 : index
    %4 = vector.load %arg4[%c0_7, %c0_8, %c0_9] : memref<2x32x32xf32, #tpu.memory_space<vmem>>, vector<1x32x32xf32>
    %5 = vector.shape_cast %4 : vector<1x32x32xf32> to vector<32x32xf32>
    %c0_10 = arith.constant 0 : index
    %c0_11 = arith.constant 0 : index
    %c0_12 = arith.constant 0 : index
    %6 = vector.load %arg5[%c0_10, %c0_11, %c0_12] : memref<2x32x64xf32, #tpu.memory_space<vmem>>, vector<1x32x64xf32>
    %7 = vector.shape_cast %6 : vector<1x32x64xf32> to vector<32x64xf32>
    %c0_13 = arith.constant 0 : index
    %c0_14 = arith.constant 0 : index
    %c0_15 = arith.constant 0 : index
    %8 = vector.load %arg6[%c0_13, %c0_14, %c0_15] : memref<2x32x32xf32, #tpu.memory_space<vmem>>, vector<1x32x32xf32>
    %9 = vector.shape_cast %8 : vector<1x32x32xf32> to vector<32x32xf32>
    %c0_16 = arith.constant 0 : index
    %c0_17 = arith.constant 0 : index
    %c0_18 = arith.constant 0 : index
    %10 = vector.load %arg7[%c0_16, %c0_17, %c0_18] : memref<2x1x32xf32, #tpu.memory_space<vmem>>, vector<1x1x32xf32>
    %11 = vector.shape_cast %10 : vector<1x1x32xf32> to vector<1x32xf32>
    %c0_19 = arith.constant 0 : index
    %c0_20 = arith.constant 0 : index
    %c0_21 = arith.constant 0 : index
    %12 = vector.load %arg8[%c0_19, %c0_20, %c0_21] : memref<2x1x32xf32, #tpu.memory_space<vmem>>, vector<1x1x32xf32>
    %13 = vector.shape_cast %12 : vector<1x1x32xf32> to vector<1x32xf32>
    %c0_22 = arith.constant 0 : index
    %c0_23 = arith.constant 0 : index
    %c0_24 = arith.constant 0 : index
    %14 = vector.load %arg9[%c0_22, %c0_23, %c0_24] : memref<2x1x32xf32, #tpu.memory_space<vmem>>, vector<1x1x32xf32>
    %15 = vector.shape_cast %14 : vector<1x1x32xf32> to vector<1x32xf32>
    %cst = arith.constant dense<0.000000e+00> : vector<16x32xf32>
    %16 = tpu.matmul %0, %5, %cst {dimension_numbers = #tpu.dot_dimension_numbers<[1], [0], [0], [1], [0, 0, 1, 1], [], []>} : vector<16x32xf32>, vector<32x32xf32>, vector<16x32xf32> -> vector<16x32xf32>
    %cst_25 = arith.constant dense<0.000000e+00> : vector<16x64xf32>
    %17 = tpu.matmul %0, %7, %cst_25 {dimension_numbers = #tpu.dot_dimension_numbers<[1], [0], [0], [1], [0, 0, 1, 1], [], []>} : vector<16x32xf32>, vector<32x64xf32>, vector<16x64xf32> -> vector<16x64xf32>
    %18 = vector.extract_strided_slice %17 {offsets = [0, 0], sizes = [16, 32], strides = [1, 1]} : vector<16x64xf32> to vector<16x32xf32>
    %19 = vector.extract_strided_slice %17 {offsets = [0, 32], sizes = [16, 32], strides = [1, 1]} : vector<16x64xf32> to vector<16x32xf32>
    %20 = vector.extract_strided_slice %16 {offsets = [0, 0], sizes = [8, 32], strides = [1, 1]} : vector<16x32xf32> to vector<8x32xf32>
    %21 = vector.extract_strided_slice %18 {offsets = [0, 0], sizes = [8, 32], strides = [1, 1]} : vector<16x32xf32> to vector<8x32xf32>
    %22 = vector.extract_strided_slice %19 {offsets = [0, 0], sizes = [8, 32], strides = [1, 1]} : vector<16x32xf32> to vector<8x32xf32>
    %23 = vector.extract_strided_slice %2 {offsets = [0, 0], sizes = [8, 8], strides = [1, 1]} : vector<16x8xf32> to vector<8x8xf32>
    %24 = vector.extract_strided_slice %20 {offsets = [0, 0], sizes = [8, 16], strides = [1, 1]} : vector<8x32xf32> to vector<8x16xf32>
    %25 = vector.extract_strided_slice %21 {offsets = [0, 0], sizes = [8, 16], strides = [1, 1]} : vector<8x32xf32> to vector<8x16xf32>
    %cst_26 = arith.constant dense<0.000000e+00> : vector<8x8xf32>
    %26 = tpu.matmul %24, %25, %cst_26 {dimension_numbers = #tpu.dot_dimension_numbers<[1], [1], [0], [0], [0, 0, 1, 0], [], []>} : vector<8x16xf32>, vector<8x16xf32>, vector<8x8xf32> -> vector<8x8xf32>
    %27 = arith.addf %26, %23 : vector<8x8xf32>
    %cst_27 = arith.constant 0.176776692 : f32
    %28 = vector.broadcast %cst_27 : f32 to vector<8x8xf32>
    %29 = arith.mulf %27, %28 : vector<8x8xf32>
    %cst_28 = arith.constant dense<0xFF800000> : vector<8xf32>
    %30 = vector.multi_reduction <maximumf>, %29, %cst_28 [1] : vector<8x8xf32> to vector<8xf32>
    %31 = vector.shape_cast %30 : vector<8xf32> to vector<8x1xf32>
    %32 = vector.broadcast %31 : vector<8x1xf32> to vector<8x8xf32>
    %33 = arith.subf %29, %32 : vector<8x8xf32>
    %34 = math.exp %33 : vector<8x8xf32>
    %cst_29 = arith.constant dense<0.000000e+00> : vector<8xf32>
    %35 = vector.multi_reduction <add>, %34, %cst_29 [1] : vector<8x8xf32> to vector<8xf32>
    %36 = vector.shape_cast %35 : vector<8xf32> to vector<8x1xf32>
    %37 = tpu.reciprocal %36 : vector<8x1xf32> -> vector<8x1xf32>
    %38 = vector.broadcast %37 : vector<8x1xf32> to vector<8x8xf32>
    %39 = arith.mulf %34, %38 : vector<8x8xf32>
    %40 = vector.extract_strided_slice %22 {offsets = [0, 0], sizes = [8, 16], strides = [1, 1]} : vector<8x32xf32> to vector<8x16xf32>
    %cst_30 = arith.constant dense<0.000000e+00> : vector<8x16xf32>
    %41 = tpu.matmul %39, %40, %cst_30 {dimension_numbers = #tpu.dot_dimension_numbers<[1], [0], [0], [1], [0, 0, 1, 1], [], []>} : vector<8x8xf32>, vector<8x16xf32>, vector<8x16xf32> -> vector<8x16xf32>
    %42 = vector.extract_strided_slice %20 {offsets = [0, 16], sizes = [8, 16], strides = [1, 1]} : vector<8x32xf32> to vector<8x16xf32>
    %43 = vector.extract_strided_slice %21 {offsets = [0, 16], sizes = [8, 16], strides = [1, 1]} : vector<8x32xf32> to vector<8x16xf32>
    %cst_31 = arith.constant dense<0.000000e+00> : vector<8x8xf32>
    %44 = tpu.matmul %42, %43, %cst_31 {dimension_numbers = #tpu.dot_dimension_numbers<[1], [1], [0], [0], [0, 0, 1, 0], [], []>} : vector<8x16xf32>, vector<8x16xf32>, vector<8x8xf32> -> vector<8x8xf32>
    %45 = arith.addf %44, %23 : vector<8x8xf32>
    %cst_32 = arith.constant 0.176776692 : f32
    %46 = vector.broadcast %cst_32 : f32 to vector<8x8xf32>
    %47 = arith.mulf %45, %46 : vector<8x8xf32>
    %cst_33 = arith.constant dense<0xFF800000> : vector<8xf32>
    %48 = vector.multi_reduction <maximumf>, %47, %cst_33 [1] : vector<8x8xf32> to vector<8xf32>
    %49 = vector.shape_cast %48 : vector<8xf32> to vector<8x1xf32>
    %50 = vector.broadcast %49 : vector<8x1xf32> to vector<8x8xf32>
    %51 = arith.subf %47, %50 : vector<8x8xf32>
    %52 = math.exp %51 : vector<8x8xf32>
    %cst_34 = arith.constant dense<0.000000e+00> : vector<8xf32>
    %53 = vector.multi_reduction <add>, %52, %cst_34 [1] : vector<8x8xf32> to vector<8xf32>
    %54 = vector.shape_cast %53 : vector<8xf32> to vector<8x1xf32>
    %55 = tpu.reciprocal %54 : vector<8x1xf32> -> vector<8x1xf32>
    %56 = vector.broadcast %55 : vector<8x1xf32> to vector<8x8xf32>
    %57 = arith.mulf %52, %56 : vector<8x8xf32>
    %58 = vector.extract_strided_slice %22 {offsets = [0, 16], sizes = [8, 16], strides = [1, 1]} : vector<8x32xf32> to vector<8x16xf32>
    %cst_35 = arith.constant dense<0.000000e+00> : vector<8x16xf32>
    %59 = tpu.matmul %57, %58, %cst_35 {dimension_numbers = #tpu.dot_dimension_numbers<[1], [0], [0], [1], [0, 0, 1, 1], [], []>} : vector<8x8xf32>, vector<8x16xf32>, vector<8x16xf32> -> vector<8x16xf32>
    %60 = tpu.concatenate %41, %59 in 1 : vector<8x16xf32>, vector<8x16xf32> -> vector<8x32xf32>
    %61 = vector.extract_strided_slice %16 {offsets = [8, 0], sizes = [8, 32], strides = [1, 1]} : vector<16x32xf32> to vector<8x32xf32>
    %62 = vector.extract_strided_slice %18 {offsets = [8, 0], sizes = [8, 32], strides = [1, 1]} : vector<16x32xf32> to vector<8x32xf32>
    %63 = vector.extract_strided_slice %19 {offsets = [8, 0], sizes = [8, 32], strides = [1, 1]} : vector<16x32xf32> to vector<8x32xf32>
    %64 = vector.extract_strided_slice %2 {offsets = [8, 0], sizes = [8, 8], strides = [1, 1]} : vector<16x8xf32> to vector<8x8xf32>
    %65 = vector.extract_strided_slice %61 {offsets = [0, 0], sizes = [8, 16], strides = [1, 1]} : vector<8x32xf32> to vector<8x16xf32>
    %66 = vector.extract_strided_slice %62 {offsets = [0, 0], sizes = [8, 16], strides = [1, 1]} : vector<8x32xf32> to vector<8x16xf32>
    %cst_36 = arith.constant dense<0.000000e+00> : vector<8x8xf32>
    %67 = tpu.matmul %65, %66, %cst_36 {dimension_numbers = #tpu.dot_dimension_numbers<[1], [1], [0], [0], [0, 0, 1, 0], [], []>} : vector<8x16xf32>, vector<8x16xf32>, vector<8x8xf32> -> vector<8x8xf32>
    %68 = arith.addf %67, %64 : vector<8x8xf32>
    %cst_37 = arith.constant 0.176776692 : f32
    %69 = vector.broadcast %cst_37 : f32 to vector<8x8xf32>
    %70 = arith.mulf %68, %69 : vector<8x8xf32>
    %cst_38 = arith.constant dense<0xFF800000> : vector<8xf32>
    %71 = vector.multi_reduction <maximumf>, %70, %cst_38 [1] : vector<8x8xf32> to vector<8xf32>
    %72 = vector.shape_cast %71 : vector<8xf32> to vector<8x1xf32>
    %73 = vector.broadcast %72 : vector<8x1xf32> to vector<8x8xf32>
    %74 = arith.subf %70, %73 : vector<8x8xf32>
    %75 = math.exp %74 : vector<8x8xf32>
    %cst_39 = arith.constant dense<0.000000e+00> : vector<8xf32>
    %76 = vector.multi_reduction <add>, %75, %cst_39 [1] : vector<8x8xf32> to vector<8xf32>
    %77 = vector.shape_cast %76 : vector<8xf32> to vector<8x1xf32>
    %78 = tpu.reciprocal %77 : vector<8x1xf32> -> vector<8x1xf32>
    %79 = vector.broadcast %78 : vector<8x1xf32> to vector<8x8xf32>
    %80 = arith.mulf %75, %79 : vector<8x8xf32>
    %81 = vector.extract_strided_slice %63 {offsets = [0, 0], sizes = [8, 16], strides = [1, 1]} : vector<8x32xf32> to vector<8x16xf32>
    %cst_40 = arith.constant dense<0.000000e+00> : vector<8x16xf32>
    %82 = tpu.matmul %80, %81, %cst_40 {dimension_numbers = #tpu.dot_dimension_numbers<[1], [0], [0], [1], [0, 0, 1, 1], [], []>} : vector<8x8xf32>, vector<8x16xf32>, vector<8x16xf32> -> vector<8x16xf32>
    %83 = vector.extract_strided_slice %61 {offsets = [0, 16], sizes = [8, 16], strides = [1, 1]} : vector<8x32xf32> to vector<8x16xf32>
    %84 = vector.extract_strided_slice %62 {offsets = [0, 16], sizes = [8, 16], strides = [1, 1]} : vector<8x32xf32> to vector<8x16xf32>
    %cst_41 = arith.constant dense<0.000000e+00> : vector<8x8xf32>
    %85 = tpu.matmul %83, %84, %cst_41 {dimension_numbers = #tpu.dot_dimension_numbers<[1], [1], [0], [0], [0, 0, 1, 0], [], []>} : vector<8x16xf32>, vector<8x16xf32>, vector<8x8xf32> -> vector<8x8xf32>
    %86 = arith.addf %85, %64 : vector<8x8xf32>
    %cst_42 = arith.constant 0.176776692 : f32
    %87 = vector.broadcast %cst_42 : f32 to vector<8x8xf32>
    %88 = arith.mulf %86, %87 : vector<8x8xf32>
    %cst_43 = arith.constant dense<0xFF800000> : vector<8xf32>
    %89 = vector.multi_reduction <maximumf>, %88, %cst_43 [1] : vector<8x8xf32> to vector<8xf32>
    %90 = vector.shape_cast %89 : vector<8xf32> to vector<8x1xf32>
    %91 = vector.broadcast %90 : vector<8x1xf32> to vector<8x8xf32>
    %92 = arith.subf %88, %91 : vector<8x8xf32>
    %93 = math.exp %92 : vector<8x8xf32>
    %cst_44 = arith.constant dense<0.000000e+00> : vector<8xf32>
    %94 = vector.multi_reduction <add>, %93, %cst_44 [1] : vector<8x8xf32> to vector<8xf32>
    %95 = vector.shape_cast %94 : vector<8xf32> to vector<8x1xf32>
    %96 = tpu.reciprocal %95 : vector<8x1xf32> -> vector<8x1xf32>
    %97 = vector.broadcast %96 : vector<8x1xf32> to vector<8x8xf32>
    %98 = arith.mulf %93, %97 : vector<8x8xf32>
    %99 = vector.extract_strided_slice %63 {offsets = [0, 16], sizes = [8, 16], strides = [1, 1]} : vector<8x32xf32> to vector<8x16xf32>
    %cst_45 = arith.constant dense<0.000000e+00> : vector<8x16xf32>
    %100 = tpu.matmul %98, %99, %cst_45 {dimension_numbers = #tpu.dot_dimension_numbers<[1], [0], [0], [1], [0, 0, 1, 1], [], []>} : vector<8x8xf32>, vector<8x16xf32>, vector<8x16xf32> -> vector<8x16xf32>
    %101 = tpu.concatenate %82, %100 in 1 : vector<8x16xf32>, vector<8x16xf32> -> vector<8x32xf32>
    %102 = tpu.concatenate %60, %101 in 0 : vector<8x32xf32>, vector<8x32xf32> -> vector<16x32xf32>
    %cst_46 = arith.constant dense<0.000000e+00> : vector<16x32xf32>
    %103 = tpu.matmul %102, %9, %cst_46 {dimension_numbers = #tpu.dot_dimension_numbers<[1], [0], [0], [1], [0, 0, 1, 1], [], []>} : vector<16x32xf32>, vector<32x32xf32>, vector<16x32xf32> -> vector<16x32xf32>
    %104 = vector.broadcast %11 : vector<1x32xf32> to vector<16x32xf32>
    %105 = arith.addf %103, %104 : vector<16x32xf32>
    %106 = arith.addf %105, %0 : vector<16x32xf32>
    %cst_47 = arith.constant dense<0.000000e+00> : vector<16xf32>
    %107 = vector.multi_reduction <add>, %106, %cst_47 [1] : vector<16x32xf32> to vector<16xf32>
    %108 = vector.shape_cast %107 : vector<16xf32> to vector<16x1xf32>
    %cst_48 = arith.constant 3.200000e+01 : f32
    %109 = vector.broadcast %cst_48 : f32 to vector<16x1xf32>
    %110 = arith.divf %108, %109 : vector<16x1xf32>
    %111 = vector.broadcast %110 : vector<16x1xf32> to vector<16x32xf32>
    %112 = arith.subf %106, %111 : vector<16x32xf32>
    %113 = arith.mulf %112, %112 : vector<16x32xf32>
    %cst_49 = arith.constant dense<0.000000e+00> : vector<16xf32>
    %114 = vector.multi_reduction <add>, %113, %cst_49 [1] : vector<16x32xf32> to vector<16xf32>
    %115 = vector.shape_cast %114 : vector<16xf32> to vector<16x1xf32>
    %cst_50 = arith.constant 3.200000e+01 : f32
    %116 = vector.broadcast %cst_50 : f32 to vector<16x1xf32>
    %117 = arith.divf %115, %116 : vector<16x1xf32>
    %118 = vector.broadcast %110 : vector<16x1xf32> to vector<16x32xf32>
    %119 = arith.subf %106, %118 : vector<16x32xf32>
    %cst_51 = arith.constant 9.99999974E-6 : f32
    %120 = vector.broadcast %cst_51 : f32 to vector<16x1xf32>
    %121 = arith.addf %117, %120 : vector<16x1xf32>
    %122 = math.rsqrt %121 : vector<16x1xf32>
    %123 = vector.broadcast %122 : vector<16x1xf32> to vector<16x32xf32>
    %124 = arith.mulf %119, %123 : vector<16x32xf32>
    %125 = vector.broadcast %13 : vector<1x32xf32> to vector<16x32xf32>
    %126 = arith.mulf %124, %125 : vector<16x32xf32>
    %127 = vector.broadcast %15 : vector<1x32xf32> to vector<16x32xf32>
    %128 = arith.addf %126, %127 : vector<16x32xf32>
    %c0_52 = arith.constant 0 : index
    %c0_53 = arith.constant 0 : index
    %c0_54 = arith.constant 0 : index
    %129 = vector.load %arg10[%c0_52, %c0_53, %c0_54] : memref<2x32x32xf32, #tpu.memory_space<vmem>>, vector<1x32x32xf32>
    %130 = vector.shape_cast %129 : vector<1x32x32xf32> to vector<32x32xf32>
    %c0_55 = arith.constant 0 : index
    %c0_56 = arith.constant 0 : index
    %c0_57 = arith.constant 0 : index
    %131 = vector.load %arg11[%c0_55, %c0_56, %c0_57] : memref<2x32x64xf32, #tpu.memory_space<vmem>>, vector<1x32x64xf32>
    %132 = vector.shape_cast %131 : vector<1x32x64xf32> to vector<32x64xf32>
    %c0_58 = arith.constant 0 : index
    %c0_59 = arith.constant 0 : index
    %c0_60 = arith.constant 0 : index
    %133 = vector.load %arg12[%c0_58, %c0_59, %c0_60] : memref<2x32x32xf32, #tpu.memory_space<vmem>>, vector<1x32x32xf32>
    %134 = vector.shape_cast %133 : vector<1x32x32xf32> to vector<32x32xf32>
    %c0_61 = arith.constant 0 : index
    %c0_62 = arith.constant 0 : index
    %c0_63 = arith.constant 0 : index
    %135 = vector.load %arg13[%c0_61, %c0_62, %c0_63] : memref<2x1x32xf32, #tpu.memory_space<vmem>>, vector<1x1x32xf32>
    %136 = vector.shape_cast %135 : vector<1x1x32xf32> to vector<1x32xf32>
    %c0_64 = arith.constant 0 : index
    %c0_65 = arith.constant 0 : index
    %c0_66 = arith.constant 0 : index
    %137 = vector.load %arg14[%c0_64, %c0_65, %c0_66] : memref<2x1x32xf32, #tpu.memory_space<vmem>>, vector<1x1x32xf32>
    %138 = vector.shape_cast %137 : vector<1x1x32xf32> to vector<1x32xf32>
    %c0_67 = arith.constant 0 : index
    %c0_68 = arith.constant 0 : index
    %c0_69 = arith.constant 0 : index
    %139 = vector.load %arg15[%c0_67, %c0_68, %c0_69] : memref<2x1x32xf32, #tpu.memory_space<vmem>>, vector<1x1x32xf32>
    %140 = vector.shape_cast %139 : vector<1x1x32xf32> to vector<1x32xf32>
    %cst_70 = arith.constant dense<0.000000e+00> : vector<16x32xf32>
    %141 = tpu.matmul %128, %130, %cst_70 {dimension_numbers = #tpu.dot_dimension_numbers<[1], [0], [0], [1], [0, 0, 1, 1], [], []>} : vector<16x32xf32>, vector<32x32xf32>, vector<16x32xf32> -> vector<16x32xf32>
    %cst_71 = arith.constant dense<0.000000e+00> : vector<16x64xf32>
    %142 = tpu.matmul %1, %132, %cst_71 {dimension_numbers = #tpu.dot_dimension_numbers<[1], [0], [0], [1], [0, 0, 1, 1], [], []>} : vector<16x32xf32>, vector<32x64xf32>, vector<16x64xf32> -> vector<16x64xf32>
    %143 = vector.extract_strided_slice %142 {offsets = [0, 0], sizes = [16, 32], strides = [1, 1]} : vector<16x64xf32> to vector<16x32xf32>
    %144 = vector.extract_strided_slice %142 {offsets = [0, 32], sizes = [16, 32], strides = [1, 1]} : vector<16x64xf32> to vector<16x32xf32>
    %145 = vector.extract_strided_slice %141 {offsets = [0, 0], sizes = [8, 32], strides = [1, 1]} : vector<16x32xf32> to vector<8x32xf32>
    %146 = vector.extract_strided_slice %143 {offsets = [0, 0], sizes = [8, 32], strides = [1, 1]} : vector<16x32xf32> to vector<8x32xf32>
    %147 = vector.extract_strided_slice %144 {offsets = [0, 0], sizes = [8, 32], strides = [1, 1]} : vector<16x32xf32> to vector<8x32xf32>
    %148 = vector.extract_strided_slice %3 {offsets = [0, 0], sizes = [8, 8], strides = [1, 1]} : vector<16x8xf32> to vector<8x8xf32>
    %149 = vector.extract_strided_slice %145 {offsets = [0, 0], sizes = [8, 16], strides = [1, 1]} : vector<8x32xf32> to vector<8x16xf32>
    %150 = vector.extract_strided_slice %146 {offsets = [0, 0], sizes = [8, 16], strides = [1, 1]} : vector<8x32xf32> to vector<8x16xf32>
    %cst_72 = arith.constant dense<0.000000e+00> : vector<8x8xf32>
    %151 = tpu.matmul %149, %150, %cst_72 {dimension_numbers = #tpu.dot_dimension_numbers<[1], [1], [0], [0], [0, 0, 1, 0], [], []>} : vector<8x16xf32>, vector<8x16xf32>, vector<8x8xf32> -> vector<8x8xf32>
    %152 = arith.addf %151, %148 : vector<8x8xf32>
    %cst_73 = arith.constant 0.176776692 : f32
    %153 = vector.broadcast %cst_73 : f32 to vector<8x8xf32>
    %154 = arith.mulf %152, %153 : vector<8x8xf32>
    %cst_74 = arith.constant dense<0xFF800000> : vector<8xf32>
    %155 = vector.multi_reduction <maximumf>, %154, %cst_74 [1] : vector<8x8xf32> to vector<8xf32>
    %156 = vector.shape_cast %155 : vector<8xf32> to vector<8x1xf32>
    %157 = vector.broadcast %156 : vector<8x1xf32> to vector<8x8xf32>
    %158 = arith.subf %154, %157 : vector<8x8xf32>
    %159 = math.exp %158 : vector<8x8xf32>
    %cst_75 = arith.constant dense<0.000000e+00> : vector<8xf32>
    %160 = vector.multi_reduction <add>, %159, %cst_75 [1] : vector<8x8xf32> to vector<8xf32>
    %161 = vector.shape_cast %160 : vector<8xf32> to vector<8x1xf32>
    %162 = tpu.reciprocal %161 : vector<8x1xf32> -> vector<8x1xf32>
    %163 = vector.broadcast %162 : vector<8x1xf32> to vector<8x8xf32>
    %164 = arith.mulf %159, %163 : vector<8x8xf32>
    %165 = vector.extract_strided_slice %147 {offsets = [0, 0], sizes = [8, 16], strides = [1, 1]} : vector<8x32xf32> to vector<8x16xf32>
    %cst_76 = arith.constant dense<0.000000e+00> : vector<8x16xf32>
    %166 = tpu.matmul %164, %165, %cst_76 {dimension_numbers = #tpu.dot_dimension_numbers<[1], [0], [0], [1], [0, 0, 1, 1], [], []>} : vector<8x8xf32>, vector<8x16xf32>, vector<8x16xf32> -> vector<8x16xf32>
    %167 = vector.extract_strided_slice %145 {offsets = [0, 16], sizes = [8, 16], strides = [1, 1]} : vector<8x32xf32> to vector<8x16xf32>
    %168 = vector.extract_strided_slice %146 {offsets = [0, 16], sizes = [8, 16], strides = [1, 1]} : vector<8x32xf32> to vector<8x16xf32>
    %cst_77 = arith.constant dense<0.000000e+00> : vector<8x8xf32>
    %169 = tpu.matmul %167, %168, %cst_77 {dimension_numbers = #tpu.dot_dimension_numbers<[1], [1], [0], [0], [0, 0, 1, 0], [], []>} : vector<8x16xf32>, vector<8x16xf32>, vector<8x8xf32> -> vector<8x8xf32>
    %170 = arith.addf %169, %148 : vector<8x8xf32>
    %cst_78 = arith.constant 0.176776692 : f32
    %171 = vector.broadcast %cst_78 : f32 to vector<8x8xf32>
    %172 = arith.mulf %170, %171 : vector<8x8xf32>
    %cst_79 = arith.constant dense<0xFF800000> : vector<8xf32>
    %173 = vector.multi_reduction <maximumf>, %172, %cst_79 [1] : vector<8x8xf32> to vector<8xf32>
    %174 = vector.shape_cast %173 : vector<8xf32> to vector<8x1xf32>
    %175 = vector.broadcast %174 : vector<8x1xf32> to vector<8x8xf32>
    %176 = arith.subf %172, %175 : vector<8x8xf32>
    %177 = math.exp %176 : vector<8x8xf32>
    %cst_80 = arith.constant dense<0.000000e+00> : vector<8xf32>
    %178 = vector.multi_reduction <add>, %177, %cst_80 [1] : vector<8x8xf32> to vector<8xf32>
    %179 = vector.shape_cast %178 : vector<8xf32> to vector<8x1xf32>
    %180 = tpu.reciprocal %179 : vector<8x1xf32> -> vector<8x1xf32>
    %181 = vector.broadcast %180 : vector<8x1xf32> to vector<8x8xf32>
    %182 = arith.mulf %177, %181 : vector<8x8xf32>
    %183 = vector.extract_strided_slice %147 {offsets = [0, 16], sizes = [8, 16], strides = [1, 1]} : vector<8x32xf32> to vector<8x16xf32>
    %cst_81 = arith.constant dense<0.000000e+00> : vector<8x16xf32>
    %184 = tpu.matmul %182, %183, %cst_81 {dimension_numbers = #tpu.dot_dimension_numbers<[1], [0], [0], [1], [0, 0, 1, 1], [], []>} : vector<8x8xf32>, vector<8x16xf32>, vector<8x16xf32> -> vector<8x16xf32>
    %185 = tpu.concatenate %166, %184 in 1 : vector<8x16xf32>, vector<8x16xf32> -> vector<8x32xf32>
    %186 = vector.extract_strided_slice %141 {offsets = [8, 0], sizes = [8, 32], strides = [1, 1]} : vector<16x32xf32> to vector<8x32xf32>
    %187 = vector.extract_strided_slice %143 {offsets = [8, 0], sizes = [8, 32], strides = [1, 1]} : vector<16x32xf32> to vector<8x32xf32>
    %188 = vector.extract_strided_slice %144 {offsets = [8, 0], sizes = [8, 32], strides = [1, 1]} : vector<16x32xf32> to vector<8x32xf32>
    %189 = vector.extract_strided_slice %3 {offsets = [8, 0], sizes = [8, 8], strides = [1, 1]} : vector<16x8xf32> to vector<8x8xf32>
    %190 = vector.extract_strided_slice %186 {offsets = [0, 0], sizes = [8, 16], strides = [1, 1]} : vector<8x32xf32> to vector<8x16xf32>
    %191 = vector.extract_strided_slice %187 {offsets = [0, 0], sizes = [8, 16], strides = [1, 1]} : vector<8x32xf32> to vector<8x16xf32>
    %cst_82 = arith.constant dense<0.000000e+00> : vector<8x8xf32>
    %192 = tpu.matmul %190, %191, %cst_82 {dimension_numbers = #tpu.dot_dimension_numbers<[1], [1], [0], [0], [0, 0, 1, 0], [], []>} : vector<8x16xf32>, vector<8x16xf32>, vector<8x8xf32> -> vector<8x8xf32>
    %193 = arith.addf %192, %189 : vector<8x8xf32>
    %cst_83 = arith.constant 0.176776692 : f32
    %194 = vector.broadcast %cst_83 : f32 to vector<8x8xf32>
    %195 = arith.mulf %193, %194 : vector<8x8xf32>
    %cst_84 = arith.constant dense<0xFF800000> : vector<8xf32>
    %196 = vector.multi_reduction <maximumf>, %195, %cst_84 [1] : vector<8x8xf32> to vector<8xf32>
    %197 = vector.shape_cast %196 : vector<8xf32> to vector<8x1xf32>
    %198 = vector.broadcast %197 : vector<8x1xf32> to vector<8x8xf32>
    %199 = arith.subf %195, %198 : vector<8x8xf32>
    %200 = math.exp %199 : vector<8x8xf32>
    %cst_85 = arith.constant dense<0.000000e+00> : vector<8xf32>
    %201 = vector.multi_reduction <add>, %200, %cst_85 [1] : vector<8x8xf32> to vector<8xf32>
    %202 = vector.shape_cast %201 : vector<8xf32> to vector<8x1xf32>
    %203 = tpu.reciprocal %202 : vector<8x1xf32> -> vector<8x1xf32>
    %204 = vector.broadcast %203 : vector<8x1xf32> to vector<8x8xf32>
    %205 = arith.mulf %200, %204 : vector<8x8xf32>
    %206 = vector.extract_strided_slice %188 {offsets = [0, 0], sizes = [8, 16], strides = [1, 1]} : vector<8x32xf32> to vector<8x16xf32>
    %cst_86 = arith.constant dense<0.000000e+00> : vector<8x16xf32>
    %207 = tpu.matmul %205, %206, %cst_86 {dimension_numbers = #tpu.dot_dimension_numbers<[1], [0], [0], [1], [0, 0, 1, 1], [], []>} : vector<8x8xf32>, vector<8x16xf32>, vector<8x16xf32> -> vector<8x16xf32>
    %208 = vector.extract_strided_slice %186 {offsets = [0, 16], sizes = [8, 16], strides = [1, 1]} : vector<8x32xf32> to vector<8x16xf32>
    %209 = vector.extract_strided_slice %187 {offsets = [0, 16], sizes = [8, 16], strides = [1, 1]} : vector<8x32xf32> to vector<8x16xf32>
    %cst_87 = arith.constant dense<0.000000e+00> : vector<8x8xf32>
    %210 = tpu.matmul %208, %209, %cst_87 {dimension_numbers = #tpu.dot_dimension_numbers<[1], [1], [0], [0], [0, 0, 1, 0], [], []>} : vector<8x16xf32>, vector<8x16xf32>, vector<8x8xf32> -> vector<8x8xf32>
    %211 = arith.addf %210, %189 : vector<8x8xf32>
    %cst_88 = arith.constant 0.176776692 : f32
    %212 = vector.broadcast %cst_88 : f32 to vector<8x8xf32>
    %213 = arith.mulf %211, %212 : vector<8x8xf32>
    %cst_89 = arith.constant dense<0xFF800000> : vector<8xf32>
    %214 = vector.multi_reduction <maximumf>, %213, %cst_89 [1] : vector<8x8xf32> to vector<8xf32>
    %215 = vector.shape_cast %214 : vector<8xf32> to vector<8x1xf32>
    %216 = vector.broadcast %215 : vector<8x1xf32> to vector<8x8xf32>
    %217 = arith.subf %213, %216 : vector<8x8xf32>
    %218 = math.exp %217 : vector<8x8xf32>
    %cst_90 = arith.constant dense<0.000000e+00> : vector<8xf32>
    %219 = vector.multi_reduction <add>, %218, %cst_90 [1] : vector<8x8xf32> to vector<8xf32>
    %220 = vector.shape_cast %219 : vector<8xf32> to vector<8x1xf32>
    %221 = tpu.reciprocal %220 : vector<8x1xf32> -> vector<8x1xf32>
    %222 = vector.broadcast %221 : vector<8x1xf32> to vector<8x8xf32>
    %223 = arith.mulf %218, %222 : vector<8x8xf32>
    %224 = vector.extract_strided_slice %188 {offsets = [0, 16], sizes = [8, 16], strides = [1, 1]} : vector<8x32xf32> to vector<8x16xf32>
    %cst_91 = arith.constant dense<0.000000e+00> : vector<8x16xf32>
    %225 = tpu.matmul %223, %224, %cst_91 {dimension_numbers = #tpu.dot_dimension_numbers<[1], [0], [0], [1], [0, 0, 1, 1], [], []>} : vector<8x8xf32>, vector<8x16xf32>, vector<8x16xf32> -> vector<8x16xf32>
    %226 = tpu.concatenate %207, %225 in 1 : vector<8x16xf32>, vector<8x16xf32> -> vector<8x32xf32>
    %227 = tpu.concatenate %185, %226 in 0 : vector<8x32xf32>, vector<8x32xf32> -> vector<16x32xf32>
    %cst_92 = arith.constant dense<0.000000e+00> : vector<16x32xf32>
    %228 = tpu.matmul %227, %134, %cst_92 {dimension_numbers = #tpu.dot_dimension_numbers<[1], [0], [0], [1], [0, 0, 1, 1], [], []>} : vector<16x32xf32>, vector<32x32xf32>, vector<16x32xf32> -> vector<16x32xf32>
    %229 = vector.broadcast %136 : vector<1x32xf32> to vector<16x32xf32>
    %230 = arith.addf %228, %229 : vector<16x32xf32>
    %231 = arith.addf %230, %128 : vector<16x32xf32>
    %cst_93 = arith.constant dense<0.000000e+00> : vector<16xf32>
    %232 = vector.multi_reduction <add>, %231, %cst_93 [1] : vector<16x32xf32> to vector<16xf32>
    %233 = vector.shape_cast %232 : vector<16xf32> to vector<16x1xf32>
    %cst_94 = arith.constant 3.200000e+01 : f32
    %234 = vector.broadcast %cst_94 : f32 to vector<16x1xf32>
    %235 = arith.divf %233, %234 : vector<16x1xf32>
    %236 = vector.broadcast %235 : vector<16x1xf32> to vector<16x32xf32>
    %237 = arith.subf %231, %236 : vector<16x32xf32>
    %238 = arith.mulf %237, %237 : vector<16x32xf32>
    %cst_95 = arith.constant dense<0.000000e+00> : vector<16xf32>
    %239 = vector.multi_reduction <add>, %238, %cst_95 [1] : vector<16x32xf32> to vector<16xf32>
    %240 = vector.shape_cast %239 : vector<16xf32> to vector<16x1xf32>
    %cst_96 = arith.constant 3.200000e+01 : f32
    %241 = vector.broadcast %cst_96 : f32 to vector<16x1xf32>
    %242 = arith.divf %240, %241 : vector<16x1xf32>
    %243 = vector.broadcast %235 : vector<16x1xf32> to vector<16x32xf32>
    %244 = arith.subf %231, %243 : vector<16x32xf32>
    %cst_97 = arith.constant 9.99999974E-6 : f32
    %245 = vector.broadcast %cst_97 : f32 to vector<16x1xf32>
    %246 = arith.addf %242, %245 : vector<16x1xf32>
    %247 = math.rsqrt %246 : vector<16x1xf32>
    %248 = vector.broadcast %247 : vector<16x1xf32> to vector<16x32xf32>
    %249 = arith.mulf %244, %248 : vector<16x32xf32>
    %250 = vector.broadcast %138 : vector<1x32xf32> to vector<16x32xf32>
    %251 = arith.mulf %249, %250 : vector<16x32xf32>
    %252 = vector.broadcast %140 : vector<1x32xf32> to vector<16x32xf32>
    %253 = arith.addf %251, %252 : vector<16x32xf32>
    %c0_98 = arith.constant 0 : index
    %c0_99 = arith.constant 0 : index
    %c0_100 = arith.constant 0 : index
    %254 = vector.load %arg16[%c0_98, %c0_99, %c0_100] : memref<2x32x64xf32, #tpu.memory_space<vmem>>, vector<1x32x64xf32>
    %255 = vector.shape_cast %254 : vector<1x32x64xf32> to vector<32x64xf32>
    %cst_101 = arith.constant dense<0.000000e+00> : vector<16x64xf32>
    %256 = tpu.matmul %253, %255, %cst_101 {dimension_numbers = #tpu.dot_dimension_numbers<[1], [0], [0], [1], [0, 0, 1, 1], [], []>} : vector<16x32xf32>, vector<32x64xf32>, vector<16x64xf32> -> vector<16x64xf32>
    %c0_102 = arith.constant 0 : index
    %c0_103 = arith.constant 0 : index
    %c0_104 = arith.constant 0 : index
    %257 = vector.load %arg17[%c0_102, %c0_103, %c0_104] : memref<2x1x64xf32, #tpu.memory_space<vmem>>, vector<1x1x64xf32>
    %258 = vector.shape_cast %257 : vector<1x1x64xf32> to vector<1x64xf32>
    %259 = vector.broadcast %258 : vector<1x64xf32> to vector<16x64xf32>
    %260 = arith.addf %256, %259 : vector<16x64xf32>
    %cst_105 = arith.constant 0.000000e+00 : f32
    %261 = vector.broadcast %cst_105 : f32 to vector<16x64xf32>
    %262 = arith.maximumf %260, %261 : vector<16x64xf32>
    %c0_106 = arith.constant 0 : index
    %c0_107 = arith.constant 0 : index
    %c0_108 = arith.constant 0 : index
    %263 = vector.load %arg18[%c0_106, %c0_107, %c0_108] : memref<2x64x32xf32, #tpu.memory_space<vmem>>, vector<1x64x32xf32>
    %264 = vector.shape_cast %263 : vector<1x64x32xf32> to vector<64x32xf32>
    %cst_109 = arith.constant dense<0.000000e+00> : vector<16x32xf32>
    %265 = tpu.matmul %262, %264, %cst_109 {dimension_numbers = #tpu.dot_dimension_numbers<[1], [0], [0], [1], [0, 0, 1, 1], [], []>} : vector<16x64xf32>, vector<64x32xf32>, vector<16x32xf32> -> vector<16x32xf32>
    %c0_110 = arith.constant 0 : index
    %c0_111 = arith.constant 0 : index
    %c0_112 = arith.constant 0 : index
    %266 = vector.load %arg19[%c0_110, %c0_111, %c0_112] : memref<2x1x32xf32, #tpu.memory_space<vmem>>, vector<1x1x32xf32>
    %267 = vector.shape_cast %266 : vector<1x1x32xf32> to vector<1x32xf32>
    %268 = vector.broadcast %267 : vector<1x32xf32> to vector<16x32xf32>
    %269 = arith.addf %265, %268 : vector<16x32xf32>
    %270 = arith.addf %269, %253 : vector<16x32xf32>
    %c0_113 = arith.constant 0 : index
    %c0_114 = arith.constant 0 : index
    %c0_115 = arith.constant 0 : index
    %271 = vector.load %arg20[%c0_113, %c0_114, %c0_115] : memref<2x1x32xf32, #tpu.memory_space<vmem>>, vector<1x1x32xf32>
    %272 = vector.shape_cast %271 : vector<1x1x32xf32> to vector<1x32xf32>
    %c0_116 = arith.constant 0 : index
    %c0_117 = arith.constant 0 : index
    %c0_118 = arith.constant 0 : index
    %273 = vector.load %arg21[%c0_116, %c0_117, %c0_118] : memref<2x1x32xf32, #tpu.memory_space<vmem>>, vector<1x1x32xf32>
    %274 = vector.shape_cast %273 : vector<1x1x32xf32> to vector<1x32xf32>
    %cst_119 = arith.constant dense<0.000000e+00> : vector<16xf32>
    %275 = vector.multi_reduction <add>, %270, %cst_119 [1] : vector<16x32xf32> to vector<16xf32>
    %276 = vector.shape_cast %275 : vector<16xf32> to vector<16x1xf32>
    %cst_120 = arith.constant 3.200000e+01 : f32
    %277 = vector.broadcast %cst_120 : f32 to vector<16x1xf32>
    %278 = arith.divf %276, %277 : vector<16x1xf32>
    %279 = vector.broadcast %278 : vector<16x1xf32> to vector<16x32xf32>
    %280 = arith.subf %270, %279 : vector<16x32xf32>
    %281 = arith.mulf %280, %280 : vector<16x32xf32>
    %cst_121 = arith.constant dense<0.000000e+00> : vector<16xf32>
    %282 = vector.multi_reduction <add>, %281, %cst_121 [1] : vector<16x32xf32> to vector<16xf32>
    %283 = vector.shape_cast %282 : vector<16xf32> to vector<16x1xf32>
    %cst_122 = arith.constant 3.200000e+01 : f32
    %284 = vector.broadcast %cst_122 : f32 to vector<16x1xf32>
    %285 = arith.divf %283, %284 : vector<16x1xf32>
    %286 = vector.broadcast %278 : vector<16x1xf32> to vector<16x32xf32>
    %287 = arith.subf %270, %286 : vector<16x32xf32>
    %cst_123 = arith.constant 9.99999974E-6 : f32
    %288 = vector.broadcast %cst_123 : f32 to vector<16x1xf32>
    %289 = arith.addf %285, %288 : vector<16x1xf32>
    %290 = math.rsqrt %289 : vector<16x1xf32>
    %291 = vector.broadcast %290 : vector<16x1xf32> to vector<16x32xf32>
    %292 = arith.mulf %287, %291 : vector<16x32xf32>
    %293 = vector.broadcast %272 : vector<1x32xf32> to vector<16x32xf32>
    %294 = arith.mulf %292, %293 : vector<16x32xf32>
    %295 = vector.broadcast %274 : vector<1x32xf32> to vector<16x32xf32>
    %296 = arith.addf %294, %295 : vector<16x32xf32>
    %c1 = arith.constant 1 : index
    %c0_124 = arith.constant 0 : index
    %c0_125 = arith.constant 0 : index
    %297 = vector.load %arg4[%c1, %c0_124, %c0_125] : memref<2x32x32xf32, #tpu.memory_space<vmem>>, vector<1x32x32xf32>
    %298 = vector.shape_cast %297 : vector<1x32x32xf32> to vector<32x32xf32>
    %c1_126 = arith.constant 1 : index
    %c0_127 = arith.constant 0 : index
    %c0_128 = arith.constant 0 : index
    %299 = vector.load %arg5[%c1_126, %c0_127, %c0_128] : memref<2x32x64xf32, #tpu.memory_space<vmem>>, vector<1x32x64xf32>
    %300 = vector.shape_cast %299 : vector<1x32x64xf32> to vector<32x64xf32>
    %c1_129 = arith.constant 1 : index
    %c0_130 = arith.constant 0 : index
    %c0_131 = arith.constant 0 : index
    %301 = vector.load %arg6[%c1_129, %c0_130, %c0_131] : memref<2x32x32xf32, #tpu.memory_space<vmem>>, vector<1x32x32xf32>
    %302 = vector.shape_cast %301 : vector<1x32x32xf32> to vector<32x32xf32>
    %c1_132 = arith.constant 1 : index
    %c0_133 = arith.constant 0 : index
    %c0_134 = arith.constant 0 : index
    %303 = vector.load %arg7[%c1_132, %c0_133, %c0_134] : memref<2x1x32xf32, #tpu.memory_space<vmem>>, vector<1x1x32xf32>
    %304 = vector.shape_cast %303 : vector<1x1x32xf32> to vector<1x32xf32>
    %c1_135 = arith.constant 1 : index
    %c0_136 = arith.constant 0 : index
    %c0_137 = arith.constant 0 : index
    %305 = vector.load %arg8[%c1_135, %c0_136, %c0_137] : memref<2x1x32xf32, #tpu.memory_space<vmem>>, vector<1x1x32xf32>
    %306 = vector.shape_cast %305 : vector<1x1x32xf32> to vector<1x32xf32>
    %c1_138 = arith.constant 1 : index
    %c0_139 = arith.constant 0 : index
    %c0_140 = arith.constant 0 : index
    %307 = vector.load %arg9[%c1_138, %c0_139, %c0_140] : memref<2x1x32xf32, #tpu.memory_space<vmem>>, vector<1x1x32xf32>
    %308 = vector.shape_cast %307 : vector<1x1x32xf32> to vector<1x32xf32>
    %cst_141 = arith.constant dense<0.000000e+00> : vector<16x32xf32>
    %309 = tpu.matmul %296, %298, %cst_141 {dimension_numbers = #tpu.dot_dimension_numbers<[1], [0], [0], [1], [0, 0, 1, 1], [], []>} : vector<16x32xf32>, vector<32x32xf32>, vector<16x32xf32> -> vector<16x32xf32>
    %cst_142 = arith.constant dense<0.000000e+00> : vector<16x64xf32>
    %310 = tpu.matmul %296, %300, %cst_142 {dimension_numbers = #tpu.dot_dimension_numbers<[1], [0], [0], [1], [0, 0, 1, 1], [], []>} : vector<16x32xf32>, vector<32x64xf32>, vector<16x64xf32> -> vector<16x64xf32>
    %311 = vector.extract_strided_slice %310 {offsets = [0, 0], sizes = [16, 32], strides = [1, 1]} : vector<16x64xf32> to vector<16x32xf32>
    %312 = vector.extract_strided_slice %310 {offsets = [0, 32], sizes = [16, 32], strides = [1, 1]} : vector<16x64xf32> to vector<16x32xf32>
    %313 = vector.extract_strided_slice %309 {offsets = [0, 0], sizes = [8, 32], strides = [1, 1]} : vector<16x32xf32> to vector<8x32xf32>
    %314 = vector.extract_strided_slice %311 {offsets = [0, 0], sizes = [8, 32], strides = [1, 1]} : vector<16x32xf32> to vector<8x32xf32>
    %315 = vector.extract_strided_slice %312 {offsets = [0, 0], sizes = [8, 32], strides = [1, 1]} : vector<16x32xf32> to vector<8x32xf32>
    %316 = vector.extract_strided_slice %2 {offsets = [0, 0], sizes = [8, 8], strides = [1, 1]} : vector<16x8xf32> to vector<8x8xf32>
    %317 = vector.extract_strided_slice %313 {offsets = [0, 0], sizes = [8, 16], strides = [1, 1]} : vector<8x32xf32> to vector<8x16xf32>
    %318 = vector.extract_strided_slice %314 {offsets = [0, 0], sizes = [8, 16], strides = [1, 1]} : vector<8x32xf32> to vector<8x16xf32>
    %cst_143 = arith.constant dense<0.000000e+00> : vector<8x8xf32>
    %319 = tpu.matmul %317, %318, %cst_143 {dimension_numbers = #tpu.dot_dimension_numbers<[1], [1], [0], [0], [0, 0, 1, 0], [], []>} : vector<8x16xf32>, vector<8x16xf32>, vector<8x8xf32> -> vector<8x8xf32>
    %320 = arith.addf %319, %316 : vector<8x8xf32>
    %cst_144 = arith.constant 0.176776692 : f32
    %321 = vector.broadcast %cst_144 : f32 to vector<8x8xf32>
    %322 = arith.mulf %320, %321 : vector<8x8xf32>
    %cst_145 = arith.constant dense<0xFF800000> : vector<8xf32>
    %323 = vector.multi_reduction <maximumf>, %322, %cst_145 [1] : vector<8x8xf32> to vector<8xf32>
    %324 = vector.shape_cast %323 : vector<8xf32> to vector<8x1xf32>
    %325 = vector.broadcast %324 : vector<8x1xf32> to vector<8x8xf32>
    %326 = arith.subf %322, %325 : vector<8x8xf32>
    %327 = math.exp %326 : vector<8x8xf32>
    %cst_146 = arith.constant dense<0.000000e+00> : vector<8xf32>
    %328 = vector.multi_reduction <add>, %327, %cst_146 [1] : vector<8x8xf32> to vector<8xf32>
    %329 = vector.shape_cast %328 : vector<8xf32> to vector<8x1xf32>
    %330 = tpu.reciprocal %329 : vector<8x1xf32> -> vector<8x1xf32>
    %331 = vector.broadcast %330 : vector<8x1xf32> to vector<8x8xf32>
    %332 = arith.mulf %327, %331 : vector<8x8xf32>
    %333 = vector.extract_strided_slice %315 {offsets = [0, 0], sizes = [8, 16], strides = [1, 1]} : vector<8x32xf32> to vector<8x16xf32>
    %cst_147 = arith.constant dense<0.000000e+00> : vector<8x16xf32>
    %334 = tpu.matmul %332, %333, %cst_147 {dimension_numbers = #tpu.dot_dimension_numbers<[1], [0], [0], [1], [0, 0, 1, 1], [], []>} : vector<8x8xf32>, vector<8x16xf32>, vector<8x16xf32> -> vector<8x16xf32>
    %335 = vector.extract_strided_slice %313 {offsets = [0, 16], sizes = [8, 16], strides = [1, 1]} : vector<8x32xf32> to vector<8x16xf32>
    %336 = vector.extract_strided_slice %314 {offsets = [0, 16], sizes = [8, 16], strides = [1, 1]} : vector<8x32xf32> to vector<8x16xf32>
    %cst_148 = arith.constant dense<0.000000e+00> : vector<8x8xf32>
    %337 = tpu.matmul %335, %336, %cst_148 {dimension_numbers = #tpu.dot_dimension_numbers<[1], [1], [0], [0], [0, 0, 1, 0], [], []>} : vector<8x16xf32>, vector<8x16xf32>, vector<8x8xf32> -> vector<8x8xf32>
    %338 = arith.addf %337, %316 : vector<8x8xf32>
    %cst_149 = arith.constant 0.176776692 : f32
    %339 = vector.broadcast %cst_149 : f32 to vector<8x8xf32>
    %340 = arith.mulf %338, %339 : vector<8x8xf32>
    %cst_150 = arith.constant dense<0xFF800000> : vector<8xf32>
    %341 = vector.multi_reduction <maximumf>, %340, %cst_150 [1] : vector<8x8xf32> to vector<8xf32>
    %342 = vector.shape_cast %341 : vector<8xf32> to vector<8x1xf32>
    %343 = vector.broadcast %342 : vector<8x1xf32> to vector<8x8xf32>
    %344 = arith.subf %340, %343 : vector<8x8xf32>
    %345 = math.exp %344 : vector<8x8xf32>
    %cst_151 = arith.constant dense<0.000000e+00> : vector<8xf32>
    %346 = vector.multi_reduction <add>, %345, %cst_151 [1] : vector<8x8xf32> to vector<8xf32>
    %347 = vector.shape_cast %346 : vector<8xf32> to vector<8x1xf32>
    %348 = tpu.reciprocal %347 : vector<8x1xf32> -> vector<8x1xf32>
    %349 = vector.broadcast %348 : vector<8x1xf32> to vector<8x8xf32>
    %350 = arith.mulf %345, %349 : vector<8x8xf32>
    %351 = vector.extract_strided_slice %315 {offsets = [0, 16], sizes = [8, 16], strides = [1, 1]} : vector<8x32xf32> to vector<8x16xf32>
    %cst_152 = arith.constant dense<0.000000e+00> : vector<8x16xf32>
    %352 = tpu.matmul %350, %351, %cst_152 {dimension_numbers = #tpu.dot_dimension_numbers<[1], [0], [0], [1], [0, 0, 1, 1], [], []>} : vector<8x8xf32>, vector<8x16xf32>, vector<8x16xf32> -> vector<8x16xf32>
    %353 = tpu.concatenate %334, %352 in 1 : vector<8x16xf32>, vector<8x16xf32> -> vector<8x32xf32>
    %354 = vector.extract_strided_slice %309 {offsets = [8, 0], sizes = [8, 32], strides = [1, 1]} : vector<16x32xf32> to vector<8x32xf32>
    %355 = vector.extract_strided_slice %311 {offsets = [8, 0], sizes = [8, 32], strides = [1, 1]} : vector<16x32xf32> to vector<8x32xf32>
    %356 = vector.extract_strided_slice %312 {offsets = [8, 0], sizes = [8, 32], strides = [1, 1]} : vector<16x32xf32> to vector<8x32xf32>
    %357 = vector.extract_strided_slice %2 {offsets = [8, 0], sizes = [8, 8], strides = [1, 1]} : vector<16x8xf32> to vector<8x8xf32>
    %358 = vector.extract_strided_slice %354 {offsets = [0, 0], sizes = [8, 16], strides = [1, 1]} : vector<8x32xf32> to vector<8x16xf32>
    %359 = vector.extract_strided_slice %355 {offsets = [0, 0], sizes = [8, 16], strides = [1, 1]} : vector<8x32xf32> to vector<8x16xf32>
    %cst_153 = arith.constant dense<0.000000e+00> : vector<8x8xf32>
    %360 = tpu.matmul %358, %359, %cst_153 {dimension_numbers = #tpu.dot_dimension_numbers<[1], [1], [0], [0], [0, 0, 1, 0], [], []>} : vector<8x16xf32>, vector<8x16xf32>, vector<8x8xf32> -> vector<8x8xf32>
    %361 = arith.addf %360, %357 : vector<8x8xf32>
    %cst_154 = arith.constant 0.176776692 : f32
    %362 = vector.broadcast %cst_154 : f32 to vector<8x8xf32>
    %363 = arith.mulf %361, %362 : vector<8x8xf32>
    %cst_155 = arith.constant dense<0xFF800000> : vector<8xf32>
    %364 = vector.multi_reduction <maximumf>, %363, %cst_155 [1] : vector<8x8xf32> to vector<8xf32>
    %365 = vector.shape_cast %364 : vector<8xf32> to vector<8x1xf32>
    %366 = vector.broadcast %365 : vector<8x1xf32> to vector<8x8xf32>
    %367 = arith.subf %363, %366 : vector<8x8xf32>
    %368 = math.exp %367 : vector<8x8xf32>
    %cst_156 = arith.constant dense<0.000000e+00> : vector<8xf32>
    %369 = vector.multi_reduction <add>, %368, %cst_156 [1] : vector<8x8xf32> to vector<8xf32>
    %370 = vector.shape_cast %369 : vector<8xf32> to vector<8x1xf32>
    %371 = tpu.reciprocal %370 : vector<8x1xf32> -> vector<8x1xf32>
    %372 = vector.broadcast %371 : vector<8x1xf32> to vector<8x8xf32>
    %373 = arith.mulf %368, %372 : vector<8x8xf32>
    %374 = vector.extract_strided_slice %356 {offsets = [0, 0], sizes = [8, 16], strides = [1, 1]} : vector<8x32xf32> to vector<8x16xf32>
    %cst_157 = arith.constant dense<0.000000e+00> : vector<8x16xf32>
    %375 = tpu.matmul %373, %374, %cst_157 {dimension_numbers = #tpu.dot_dimension_numbers<[1], [0], [0], [1], [0, 0, 1, 1], [], []>} : vector<8x8xf32>, vector<8x16xf32>, vector<8x16xf32> -> vector<8x16xf32>
    %376 = vector.extract_strided_slice %354 {offsets = [0, 16], sizes = [8, 16], strides = [1, 1]} : vector<8x32xf32> to vector<8x16xf32>
    %377 = vector.extract_strided_slice %355 {offsets = [0, 16], sizes = [8, 16], strides = [1, 1]} : vector<8x32xf32> to vector<8x16xf32>
    %cst_158 = arith.constant dense<0.000000e+00> : vector<8x8xf32>
    %378 = tpu.matmul %376, %377, %cst_158 {dimension_numbers = #tpu.dot_dimension_numbers<[1], [1], [0], [0], [0, 0, 1, 0], [], []>} : vector<8x16xf32>, vector<8x16xf32>, vector<8x8xf32> -> vector<8x8xf32>
    %379 = arith.addf %378, %357 : vector<8x8xf32>
    %cst_159 = arith.constant 0.176776692 : f32
    %380 = vector.broadcast %cst_159 : f32 to vector<8x8xf32>
    %381 = arith.mulf %379, %380 : vector<8x8xf32>
    %cst_160 = arith.constant dense<0xFF800000> : vector<8xf32>
    %382 = vector.multi_reduction <maximumf>, %381, %cst_160 [1] : vector<8x8xf32> to vector<8xf32>
    %383 = vector.shape_cast %382 : vector<8xf32> to vector<8x1xf32>
    %384 = vector.broadcast %383 : vector<8x1xf32> to vector<8x8xf32>
    %385 = arith.subf %381, %384 : vector<8x8xf32>
    %386 = math.exp %385 : vector<8x8xf32>
    %cst_161 = arith.constant dense<0.000000e+00> : vector<8xf32>
    %387 = vector.multi_reduction <add>, %386, %cst_161 [1] : vector<8x8xf32> to vector<8xf32>
    %388 = vector.shape_cast %387 : vector<8xf32> to vector<8x1xf32>
    %389 = tpu.reciprocal %388 : vector<8x1xf32> -> vector<8x1xf32>
    %390 = vector.broadcast %389 : vector<8x1xf32> to vector<8x8xf32>
    %391 = arith.mulf %386, %390 : vector<8x8xf32>
    %392 = vector.extract_strided_slice %356 {offsets = [0, 16], sizes = [8, 16], strides = [1, 1]} : vector<8x32xf32> to vector<8x16xf32>
    %cst_162 = arith.constant dense<0.000000e+00> : vector<8x16xf32>
    %393 = tpu.matmul %391, %392, %cst_162 {dimension_numbers = #tpu.dot_dimension_numbers<[1], [0], [0], [1], [0, 0, 1, 1], [], []>} : vector<8x8xf32>, vector<8x16xf32>, vector<8x16xf32> -> vector<8x16xf32>
    %394 = tpu.concatenate %375, %393 in 1 : vector<8x16xf32>, vector<8x16xf32> -> vector<8x32xf32>
    %395 = tpu.concatenate %353, %394 in 0 : vector<8x32xf32>, vector<8x32xf32> -> vector<16x32xf32>
    %cst_163 = arith.constant dense<0.000000e+00> : vector<16x32xf32>
    %396 = tpu.matmul %395, %302, %cst_163 {dimension_numbers = #tpu.dot_dimension_numbers<[1], [0], [0], [1], [0, 0, 1, 1], [], []>} : vector<16x32xf32>, vector<32x32xf32>, vector<16x32xf32> -> vector<16x32xf32>
    %397 = vector.broadcast %304 : vector<1x32xf32> to vector<16x32xf32>
    %398 = arith.addf %396, %397 : vector<16x32xf32>
    %399 = arith.addf %398, %296 : vector<16x32xf32>
    %cst_164 = arith.constant dense<0.000000e+00> : vector<16xf32>
    %400 = vector.multi_reduction <add>, %399, %cst_164 [1] : vector<16x32xf32> to vector<16xf32>
    %401 = vector.shape_cast %400 : vector<16xf32> to vector<16x1xf32>
    %cst_165 = arith.constant 3.200000e+01 : f32
    %402 = vector.broadcast %cst_165 : f32 to vector<16x1xf32>
    %403 = arith.divf %401, %402 : vector<16x1xf32>
    %404 = vector.broadcast %403 : vector<16x1xf32> to vector<16x32xf32>
    %405 = arith.subf %399, %404 : vector<16x32xf32>
    %406 = arith.mulf %405, %405 : vector<16x32xf32>
    %cst_166 = arith.constant dense<0.000000e+00> : vector<16xf32>
    %407 = vector.multi_reduction <add>, %406, %cst_166 [1] : vector<16x32xf32> to vector<16xf32>
    %408 = vector.shape_cast %407 : vector<16xf32> to vector<16x1xf32>
    %cst_167 = arith.constant 3.200000e+01 : f32
    %409 = vector.broadcast %cst_167 : f32 to vector<16x1xf32>
    %410 = arith.divf %408, %409 : vector<16x1xf32>
    %411 = vector.broadcast %403 : vector<16x1xf32> to vector<16x32xf32>
    %412 = arith.subf %399, %411 : vector<16x32xf32>
    %cst_168 = arith.constant 9.99999974E-6 : f32
    %413 = vector.broadcast %cst_168 : f32 to vector<16x1xf32>
    %414 = arith.addf %410, %413 : vector<16x1xf32>
    %415 = math.rsqrt %414 : vector<16x1xf32>
    %416 = vector.broadcast %415 : vector<16x1xf32> to vector<16x32xf32>
    %417 = arith.mulf %412, %416 : vector<16x32xf32>
    %418 = vector.broadcast %306 : vector<1x32xf32> to vector<16x32xf32>
    %419 = arith.mulf %417, %418 : vector<16x32xf32>
    %420 = vector.broadcast %308 : vector<1x32xf32> to vector<16x32xf32>
    %421 = arith.addf %419, %420 : vector<16x32xf32>
    %c1_169 = arith.constant 1 : index
    %c0_170 = arith.constant 0 : index
    %c0_171 = arith.constant 0 : index
    %422 = vector.load %arg10[%c1_169, %c0_170, %c0_171] : memref<2x32x32xf32, #tpu.memory_space<vmem>>, vector<1x32x32xf32>
    %423 = vector.shape_cast %422 : vector<1x32x32xf32> to vector<32x32xf32>
    %c1_172 = arith.constant 1 : index
    %c0_173 = arith.constant 0 : index
    %c0_174 = arith.constant 0 : index
    %424 = vector.load %arg11[%c1_172, %c0_173, %c0_174] : memref<2x32x64xf32, #tpu.memory_space<vmem>>, vector<1x32x64xf32>
    %425 = vector.shape_cast %424 : vector<1x32x64xf32> to vector<32x64xf32>
    %c1_175 = arith.constant 1 : index
    %c0_176 = arith.constant 0 : index
    %c0_177 = arith.constant 0 : index
    %426 = vector.load %arg12[%c1_175, %c0_176, %c0_177] : memref<2x32x32xf32, #tpu.memory_space<vmem>>, vector<1x32x32xf32>
    %427 = vector.shape_cast %426 : vector<1x32x32xf32> to vector<32x32xf32>
    %c1_178 = arith.constant 1 : index
    %c0_179 = arith.constant 0 : index
    %c0_180 = arith.constant 0 : index
    %428 = vector.load %arg13[%c1_178, %c0_179, %c0_180] : memref<2x1x32xf32, #tpu.memory_space<vmem>>, vector<1x1x32xf32>
    %429 = vector.shape_cast %428 : vector<1x1x32xf32> to vector<1x32xf32>
    %c1_181 = arith.constant 1 : index
    %c0_182 = arith.constant 0 : index
    %c0_183 = arith.constant 0 : index
    %430 = vector.load %arg14[%c1_181, %c0_182, %c0_183] : memref<2x1x32xf32, #tpu.memory_space<vmem>>, vector<1x1x32xf32>
    %431 = vector.shape_cast %430 : vector<1x1x32xf32> to vector<1x32xf32>
    %c1_184 = arith.constant 1 : index
    %c0_185 = arith.constant 0 : index
    %c0_186 = arith.constant 0 : index
    %432 = vector.load %arg15[%c1_184, %c0_185, %c0_186] : memref<2x1x32xf32, #tpu.memory_space<vmem>>, vector<1x1x32xf32>
    %433 = vector.shape_cast %432 : vector<1x1x32xf32> to vector<1x32xf32>
    %cst_187 = arith.constant dense<0.000000e+00> : vector<16x32xf32>
    %434 = tpu.matmul %421, %423, %cst_187 {dimension_numbers = #tpu.dot_dimension_numbers<[1], [0], [0], [1], [0, 0, 1, 1], [], []>} : vector<16x32xf32>, vector<32x32xf32>, vector<16x32xf32> -> vector<16x32xf32>
    %cst_188 = arith.constant dense<0.000000e+00> : vector<16x64xf32>
    %435 = tpu.matmul %1, %425, %cst_188 {dimension_numbers = #tpu.dot_dimension_numbers<[1], [0], [0], [1], [0, 0, 1, 1], [], []>} : vector<16x32xf32>, vector<32x64xf32>, vector<16x64xf32> -> vector<16x64xf32>
    %436 = vector.extract_strided_slice %435 {offsets = [0, 0], sizes = [16, 32], strides = [1, 1]} : vector<16x64xf32> to vector<16x32xf32>
    %437 = vector.extract_strided_slice %435 {offsets = [0, 32], sizes = [16, 32], strides = [1, 1]} : vector<16x64xf32> to vector<16x32xf32>
    %438 = vector.extract_strided_slice %434 {offsets = [0, 0], sizes = [8, 32], strides = [1, 1]} : vector<16x32xf32> to vector<8x32xf32>
    %439 = vector.extract_strided_slice %436 {offsets = [0, 0], sizes = [8, 32], strides = [1, 1]} : vector<16x32xf32> to vector<8x32xf32>
    %440 = vector.extract_strided_slice %437 {offsets = [0, 0], sizes = [8, 32], strides = [1, 1]} : vector<16x32xf32> to vector<8x32xf32>
    %441 = vector.extract_strided_slice %3 {offsets = [0, 0], sizes = [8, 8], strides = [1, 1]} : vector<16x8xf32> to vector<8x8xf32>
    %442 = vector.extract_strided_slice %438 {offsets = [0, 0], sizes = [8, 16], strides = [1, 1]} : vector<8x32xf32> to vector<8x16xf32>
    %443 = vector.extract_strided_slice %439 {offsets = [0, 0], sizes = [8, 16], strides = [1, 1]} : vector<8x32xf32> to vector<8x16xf32>
    %cst_189 = arith.constant dense<0.000000e+00> : vector<8x8xf32>
    %444 = tpu.matmul %442, %443, %cst_189 {dimension_numbers = #tpu.dot_dimension_numbers<[1], [1], [0], [0], [0, 0, 1, 0], [], []>} : vector<8x16xf32>, vector<8x16xf32>, vector<8x8xf32> -> vector<8x8xf32>
    %445 = arith.addf %444, %441 : vector<8x8xf32>
    %cst_190 = arith.constant 0.176776692 : f32
    %446 = vector.broadcast %cst_190 : f32 to vector<8x8xf32>
    %447 = arith.mulf %445, %446 : vector<8x8xf32>
    %cst_191 = arith.constant dense<0xFF800000> : vector<8xf32>
    %448 = vector.multi_reduction <maximumf>, %447, %cst_191 [1] : vector<8x8xf32> to vector<8xf32>
    %449 = vector.shape_cast %448 : vector<8xf32> to vector<8x1xf32>
    %450 = vector.broadcast %449 : vector<8x1xf32> to vector<8x8xf32>
    %451 = arith.subf %447, %450 : vector<8x8xf32>
    %452 = math.exp %451 : vector<8x8xf32>
    %cst_192 = arith.constant dense<0.000000e+00> : vector<8xf32>
    %453 = vector.multi_reduction <add>, %452, %cst_192 [1] : vector<8x8xf32> to vector<8xf32>
    %454 = vector.shape_cast %453 : vector<8xf32> to vector<8x1xf32>
    %455 = tpu.reciprocal %454 : vector<8x1xf32> -> vector<8x1xf32>
    %456 = vector.broadcast %455 : vector<8x1xf32> to vector<8x8xf32>
    %457 = arith.mulf %452, %456 : vector<8x8xf32>
    %458 = vector.extract_strided_slice %440 {offsets = [0, 0], sizes = [8, 16], strides = [1, 1]} : vector<8x32xf32> to vector<8x16xf32>
    %cst_193 = arith.constant dense<0.000000e+00> : vector<8x16xf32>
    %459 = tpu.matmul %457, %458, %cst_193 {dimension_numbers = #tpu.dot_dimension_numbers<[1], [0], [0], [1], [0, 0, 1, 1], [], []>} : vector<8x8xf32>, vector<8x16xf32>, vector<8x16xf32> -> vector<8x16xf32>
    %460 = vector.extract_strided_slice %438 {offsets = [0, 16], sizes = [8, 16], strides = [1, 1]} : vector<8x32xf32> to vector<8x16xf32>
    %461 = vector.extract_strided_slice %439 {offsets = [0, 16], sizes = [8, 16], strides = [1, 1]} : vector<8x32xf32> to vector<8x16xf32>
    %cst_194 = arith.constant dense<0.000000e+00> : vector<8x8xf32>
    %462 = tpu.matmul %460, %461, %cst_194 {dimension_numbers = #tpu.dot_dimension_numbers<[1], [1], [0], [0], [0, 0, 1, 0], [], []>} : vector<8x16xf32>, vector<8x16xf32>, vector<8x8xf32> -> vector<8x8xf32>
    %463 = arith.addf %462, %441 : vector<8x8xf32>
    %cst_195 = arith.constant 0.176776692 : f32
    %464 = vector.broadcast %cst_195 : f32 to vector<8x8xf32>
    %465 = arith.mulf %463, %464 : vector<8x8xf32>
    %cst_196 = arith.constant dense<0xFF800000> : vector<8xf32>
    %466 = vector.multi_reduction <maximumf>, %465, %cst_196 [1] : vector<8x8xf32> to vector<8xf32>
    %467 = vector.shape_cast %466 : vector<8xf32> to vector<8x1xf32>
    %468 = vector.broadcast %467 : vector<8x1xf32> to vector<8x8xf32>
    %469 = arith.subf %465, %468 : vector<8x8xf32>
    %470 = math.exp %469 : vector<8x8xf32>
    %cst_197 = arith.constant dense<0.000000e+00> : vector<8xf32>
    %471 = vector.multi_reduction <add>, %470, %cst_197 [1] : vector<8x8xf32> to vector<8xf32>
    %472 = vector.shape_cast %471 : vector<8xf32> to vector<8x1xf32>
    %473 = tpu.reciprocal %472 : vector<8x1xf32> -> vector<8x1xf32>
    %474 = vector.broadcast %473 : vector<8x1xf32> to vector<8x8xf32>
    %475 = arith.mulf %470, %474 : vector<8x8xf32>
    %476 = vector.extract_strided_slice %440 {offsets = [0, 16], sizes = [8, 16], strides = [1, 1]} : vector<8x32xf32> to vector<8x16xf32>
    %cst_198 = arith.constant dense<0.000000e+00> : vector<8x16xf32>
    %477 = tpu.matmul %475, %476, %cst_198 {dimension_numbers = #tpu.dot_dimension_numbers<[1], [0], [0], [1], [0, 0, 1, 1], [], []>} : vector<8x8xf32>, vector<8x16xf32>, vector<8x16xf32> -> vector<8x16xf32>
    %478 = tpu.concatenate %459, %477 in 1 : vector<8x16xf32>, vector<8x16xf32> -> vector<8x32xf32>
    %479 = vector.extract_strided_slice %434 {offsets = [8, 0], sizes = [8, 32], strides = [1, 1]} : vector<16x32xf32> to vector<8x32xf32>
    %480 = vector.extract_strided_slice %436 {offsets = [8, 0], sizes = [8, 32], strides = [1, 1]} : vector<16x32xf32> to vector<8x32xf32>
    %481 = vector.extract_strided_slice %437 {offsets = [8, 0], sizes = [8, 32], strides = [1, 1]} : vector<16x32xf32> to vector<8x32xf32>
    %482 = vector.extract_strided_slice %3 {offsets = [8, 0], sizes = [8, 8], strides = [1, 1]} : vector<16x8xf32> to vector<8x8xf32>
    %483 = vector.extract_strided_slice %479 {offsets = [0, 0], sizes = [8, 16], strides = [1, 1]} : vector<8x32xf32> to vector<8x16xf32>
    %484 = vector.extract_strided_slice %480 {offsets = [0, 0], sizes = [8, 16], strides = [1, 1]} : vector<8x32xf32> to vector<8x16xf32>
    %cst_199 = arith.constant dense<0.000000e+00> : vector<8x8xf32>
    %485 = tpu.matmul %483, %484, %cst_199 {dimension_numbers = #tpu.dot_dimension_numbers<[1], [1], [0], [0], [0, 0, 1, 0], [], []>} : vector<8x16xf32>, vector<8x16xf32>, vector<8x8xf32> -> vector<8x8xf32>
    %486 = arith.addf %485, %482 : vector<8x8xf32>
    %cst_200 = arith.constant 0.176776692 : f32
    %487 = vector.broadcast %cst_200 : f32 to vector<8x8xf32>
    %488 = arith.mulf %486, %487 : vector<8x8xf32>
    %cst_201 = arith.constant dense<0xFF800000> : vector<8xf32>
    %489 = vector.multi_reduction <maximumf>, %488, %cst_201 [1] : vector<8x8xf32> to vector<8xf32>
    %490 = vector.shape_cast %489 : vector<8xf32> to vector<8x1xf32>
    %491 = vector.broadcast %490 : vector<8x1xf32> to vector<8x8xf32>
    %492 = arith.subf %488, %491 : vector<8x8xf32>
    %493 = math.exp %492 : vector<8x8xf32>
    %cst_202 = arith.constant dense<0.000000e+00> : vector<8xf32>
    %494 = vector.multi_reduction <add>, %493, %cst_202 [1] : vector<8x8xf32> to vector<8xf32>
    %495 = vector.shape_cast %494 : vector<8xf32> to vector<8x1xf32>
    %496 = tpu.reciprocal %495 : vector<8x1xf32> -> vector<8x1xf32>
    %497 = vector.broadcast %496 : vector<8x1xf32> to vector<8x8xf32>
    %498 = arith.mulf %493, %497 : vector<8x8xf32>
    %499 = vector.extract_strided_slice %481 {offsets = [0, 0], sizes = [8, 16], strides = [1, 1]} : vector<8x32xf32> to vector<8x16xf32>
    %cst_203 = arith.constant dense<0.000000e+00> : vector<8x16xf32>
    %500 = tpu.matmul %498, %499, %cst_203 {dimension_numbers = #tpu.dot_dimension_numbers<[1], [0], [0], [1], [0, 0, 1, 1], [], []>} : vector<8x8xf32>, vector<8x16xf32>, vector<8x16xf32> -> vector<8x16xf32>
    %501 = vector.extract_strided_slice %479 {offsets = [0, 16], sizes = [8, 16], strides = [1, 1]} : vector<8x32xf32> to vector<8x16xf32>
    %502 = vector.extract_strided_slice %480 {offsets = [0, 16], sizes = [8, 16], strides = [1, 1]} : vector<8x32xf32> to vector<8x16xf32>
    %cst_204 = arith.constant dense<0.000000e+00> : vector<8x8xf32>
    %503 = tpu.matmul %501, %502, %cst_204 {dimension_numbers = #tpu.dot_dimension_numbers<[1], [1], [0], [0], [0, 0, 1, 0], [], []>} : vector<8x16xf32>, vector<8x16xf32>, vector<8x8xf32> -> vector<8x8xf32>
    %504 = arith.addf %503, %482 : vector<8x8xf32>
    %cst_205 = arith.constant 0.176776692 : f32
    %505 = vector.broadcast %cst_205 : f32 to vector<8x8xf32>
    %506 = arith.mulf %504, %505 : vector<8x8xf32>
    %cst_206 = arith.constant dense<0xFF800000> : vector<8xf32>
    %507 = vector.multi_reduction <maximumf>, %506, %cst_206 [1] : vector<8x8xf32> to vector<8xf32>
    %508 = vector.shape_cast %507 : vector<8xf32> to vector<8x1xf32>
    %509 = vector.broadcast %508 : vector<8x1xf32> to vector<8x8xf32>
    %510 = arith.subf %506, %509 : vector<8x8xf32>
    %511 = math.exp %510 : vector<8x8xf32>
    %cst_207 = arith.constant dense<0.000000e+00> : vector<8xf32>
    %512 = vector.multi_reduction <add>, %511, %cst_207 [1] : vector<8x8xf32> to vector<8xf32>
    %513 = vector.shape_cast %512 : vector<8xf32> to vector<8x1xf32>
    %514 = tpu.reciprocal %513 : vector<8x1xf32> -> vector<8x1xf32>
    %515 = vector.broadcast %514 : vector<8x1xf32> to vector<8x8xf32>
    %516 = arith.mulf %511, %515 : vector<8x8xf32>
    %517 = vector.extract_strided_slice %481 {offsets = [0, 16], sizes = [8, 16], strides = [1, 1]} : vector<8x32xf32> to vector<8x16xf32>
    %cst_208 = arith.constant dense<0.000000e+00> : vector<8x16xf32>
    %518 = tpu.matmul %516, %517, %cst_208 {dimension_numbers = #tpu.dot_dimension_numbers<[1], [0], [0], [1], [0, 0, 1, 1], [], []>} : vector<8x8xf32>, vector<8x16xf32>, vector<8x16xf32> -> vector<8x16xf32>
    %519 = tpu.concatenate %500, %518 in 1 : vector<8x16xf32>, vector<8x16xf32> -> vector<8x32xf32>
    %520 = tpu.concatenate %478, %519 in 0 : vector<8x32xf32>, vector<8x32xf32> -> vector<16x32xf32>
    %cst_209 = arith.constant dense<0.000000e+00> : vector<16x32xf32>
    %521 = tpu.matmul %520, %427, %cst_209 {dimension_numbers = #tpu.dot_dimension_numbers<[1], [0], [0], [1], [0, 0, 1, 1], [], []>} : vector<16x32xf32>, vector<32x32xf32>, vector<16x32xf32> -> vector<16x32xf32>
    %522 = vector.broadcast %429 : vector<1x32xf32> to vector<16x32xf32>
    %523 = arith.addf %521, %522 : vector<16x32xf32>
    %524 = arith.addf %523, %421 : vector<16x32xf32>
    %cst_210 = arith.constant dense<0.000000e+00> : vector<16xf32>
    %525 = vector.multi_reduction <add>, %524, %cst_210 [1] : vector<16x32xf32> to vector<16xf32>
    %526 = vector.shape_cast %525 : vector<16xf32> to vector<16x1xf32>
    %cst_211 = arith.constant 3.200000e+01 : f32
    %527 = vector.broadcast %cst_211 : f32 to vector<16x1xf32>
    %528 = arith.divf %526, %527 : vector<16x1xf32>
    %529 = vector.broadcast %528 : vector<16x1xf32> to vector<16x32xf32>
    %530 = arith.subf %524, %529 : vector<16x32xf32>
    %531 = arith.mulf %530, %530 : vector<16x32xf32>
    %cst_212 = arith.constant dense<0.000000e+00> : vector<16xf32>
    %532 = vector.multi_reduction <add>, %531, %cst_212 [1] : vector<16x32xf32> to vector<16xf32>
    %533 = vector.shape_cast %532 : vector<16xf32> to vector<16x1xf32>
    %cst_213 = arith.constant 3.200000e+01 : f32
    %534 = vector.broadcast %cst_213 : f32 to vector<16x1xf32>
    %535 = arith.divf %533, %534 : vector<16x1xf32>
    %536 = vector.broadcast %528 : vector<16x1xf32> to vector<16x32xf32>
    %537 = arith.subf %524, %536 : vector<16x32xf32>
    %cst_214 = arith.constant 9.99999974E-6 : f32
    %538 = vector.broadcast %cst_214 : f32 to vector<16x1xf32>
    %539 = arith.addf %535, %538 : vector<16x1xf32>
    %540 = math.rsqrt %539 : vector<16x1xf32>
    %541 = vector.broadcast %540 : vector<16x1xf32> to vector<16x32xf32>
    %542 = arith.mulf %537, %541 : vector<16x32xf32>
    %543 = vector.broadcast %431 : vector<1x32xf32> to vector<16x32xf32>
    %544 = arith.mulf %542, %543 : vector<16x32xf32>
    %545 = vector.broadcast %433 : vector<1x32xf32> to vector<16x32xf32>
    %546 = arith.addf %544, %545 : vector<16x32xf32>
    %c1_215 = arith.constant 1 : index
    %c0_216 = arith.constant 0 : index
    %c0_217 = arith.constant 0 : index
    %547 = vector.load %arg16[%c1_215, %c0_216, %c0_217] : memref<2x32x64xf32, #tpu.memory_space<vmem>>, vector<1x32x64xf32>
    %548 = vector.shape_cast %547 : vector<1x32x64xf32> to vector<32x64xf32>
    %cst_218 = arith.constant dense<0.000000e+00> : vector<16x64xf32>
    %549 = tpu.matmul %546, %548, %cst_218 {dimension_numbers = #tpu.dot_dimension_numbers<[1], [0], [0], [1], [0, 0, 1, 1], [], []>} : vector<16x32xf32>, vector<32x64xf32>, vector<16x64xf32> -> vector<16x64xf32>
    %c1_219 = arith.constant 1 : index
    %c0_220 = arith.constant 0 : index
    %c0_221 = arith.constant 0 : index
    %550 = vector.load %arg17[%c1_219, %c0_220, %c0_221] : memref<2x1x64xf32, #tpu.memory_space<vmem>>, vector<1x1x64xf32>
    %551 = vector.shape_cast %550 : vector<1x1x64xf32> to vector<1x64xf32>
    %552 = vector.broadcast %551 : vector<1x64xf32> to vector<16x64xf32>
    %553 = arith.addf %549, %552 : vector<16x64xf32>
    %cst_222 = arith.constant 0.000000e+00 : f32
    %554 = vector.broadcast %cst_222 : f32 to vector<16x64xf32>
    %555 = arith.maximumf %553, %554 : vector<16x64xf32>
    %c1_223 = arith.constant 1 : index
    %c0_224 = arith.constant 0 : index
    %c0_225 = arith.constant 0 : index
    %556 = vector.load %arg18[%c1_223, %c0_224, %c0_225] : memref<2x64x32xf32, #tpu.memory_space<vmem>>, vector<1x64x32xf32>
    %557 = vector.shape_cast %556 : vector<1x64x32xf32> to vector<64x32xf32>
    %cst_226 = arith.constant dense<0.000000e+00> : vector<16x32xf32>
    %558 = tpu.matmul %555, %557, %cst_226 {dimension_numbers = #tpu.dot_dimension_numbers<[1], [0], [0], [1], [0, 0, 1, 1], [], []>} : vector<16x64xf32>, vector<64x32xf32>, vector<16x32xf32> -> vector<16x32xf32>
    %c1_227 = arith.constant 1 : index
    %c0_228 = arith.constant 0 : index
    %c0_229 = arith.constant 0 : index
    %559 = vector.load %arg19[%c1_227, %c0_228, %c0_229] : memref<2x1x32xf32, #tpu.memory_space<vmem>>, vector<1x1x32xf32>
    %560 = vector.shape_cast %559 : vector<1x1x32xf32> to vector<1x32xf32>
    %561 = vector.broadcast %560 : vector<1x32xf32> to vector<16x32xf32>
    %562 = arith.addf %558, %561 : vector<16x32xf32>
    %563 = arith.addf %562, %546 : vector<16x32xf32>
    %c1_230 = arith.constant 1 : index
    %c0_231 = arith.constant 0 : index
    %c0_232 = arith.constant 0 : index
    %564 = vector.load %arg20[%c1_230, %c0_231, %c0_232] : memref<2x1x32xf32, #tpu.memory_space<vmem>>, vector<1x1x32xf32>
    %565 = vector.shape_cast %564 : vector<1x1x32xf32> to vector<1x32xf32>
    %c1_233 = arith.constant 1 : index
    %c0_234 = arith.constant 0 : index
    %c0_235 = arith.constant 0 : index
    %566 = vector.load %arg21[%c1_233, %c0_234, %c0_235] : memref<2x1x32xf32, #tpu.memory_space<vmem>>, vector<1x1x32xf32>
    %567 = vector.shape_cast %566 : vector<1x1x32xf32> to vector<1x32xf32>
    %cst_236 = arith.constant dense<0.000000e+00> : vector<16xf32>
    %568 = vector.multi_reduction <add>, %563, %cst_236 [1] : vector<16x32xf32> to vector<16xf32>
    %569 = vector.shape_cast %568 : vector<16xf32> to vector<16x1xf32>
    %cst_237 = arith.constant 3.200000e+01 : f32
    %570 = vector.broadcast %cst_237 : f32 to vector<16x1xf32>
    %571 = arith.divf %569, %570 : vector<16x1xf32>
    %572 = vector.broadcast %571 : vector<16x1xf32> to vector<16x32xf32>
    %573 = arith.subf %563, %572 : vector<16x32xf32>
    %574 = arith.mulf %573, %573 : vector<16x32xf32>
    %cst_238 = arith.constant dense<0.000000e+00> : vector<16xf32>
    %575 = vector.multi_reduction <add>, %574, %cst_238 [1] : vector<16x32xf32> to vector<16xf32>
    %576 = vector.shape_cast %575 : vector<16xf32> to vector<16x1xf32>
    %cst_239 = arith.constant 3.200000e+01 : f32
    %577 = vector.broadcast %cst_239 : f32 to vector<16x1xf32>
    %578 = arith.divf %576, %577 : vector<16x1xf32>
    %579 = vector.broadcast %571 : vector<16x1xf32> to vector<16x32xf32>
    %580 = arith.subf %563, %579 : vector<16x32xf32>
    %cst_240 = arith.constant 9.99999974E-6 : f32
    %581 = vector.broadcast %cst_240 : f32 to vector<16x1xf32>
    %582 = arith.addf %578, %581 : vector<16x1xf32>
    %583 = math.rsqrt %582 : vector<16x1xf32>
    %584 = vector.broadcast %583 : vector<16x1xf32> to vector<16x32xf32>
    %585 = arith.mulf %580, %584 : vector<16x32xf32>
    %586 = vector.broadcast %565 : vector<1x32xf32> to vector<16x32xf32>
    %587 = arith.mulf %585, %586 : vector<16x32xf32>
    %588 = vector.broadcast %567 : vector<1x32xf32> to vector<16x32xf32>
    %589 = arith.addf %587, %588 : vector<16x32xf32>
    %c0_241 = arith.constant 0 : index
    %c0_242 = arith.constant 0 : index
    %590 = vector.load %arg22[%c0_241, %c0_242] : memref<32x128xf32, #tpu.memory_space<vmem>>, vector<32x128xf32>
    %cst_243 = arith.constant dense<0.000000e+00> : vector<16x128xf32>
    %591 = tpu.matmul %589, %590, %cst_243 {dimension_numbers = #tpu.dot_dimension_numbers<[1], [0], [0], [1], [0, 0, 1, 1], [], []>} : vector<16x32xf32>, vector<32x128xf32>, vector<16x128xf32> -> vector<16x128xf32>
    %c0_244 = arith.constant 0 : index
    %c0_245 = arith.constant 0 : index
    %592 = vector.load %arg23[%c0_244, %c0_245] : memref<1x128xf32, #tpu.memory_space<vmem>>, vector<1x128xf32>
    %593 = vector.broadcast %592 : vector<1x128xf32> to vector<16x128xf32>
    %594 = arith.addf %591, %593 : vector<16x128xf32>
    %c0_246 = arith.constant 0 : index
    %c0_247 = arith.constant 0 : index
    %595 = vector.load %arg24[%c0_246, %c0_247] : memref<16x128xf32, #tpu.memory_space<vmem>>, vector<16x128xf32>
    tpu.vector_store %arg24[%c0_246, %c0_247], %594 {strides = array<i32>} : memref<16x128xf32, #tpu.memory_space<vmem>>, vector<16x128xf32>,
    return
  }
}

</mosaic_0001>

<bundles_post_ra>
// kernel: decoder_forward.1
= control target key start
LH: loop header
LB: loop body
LE: loop exit
PB: predicated region body
PF: predicated region fallthrough
CT: control target
= control target key end

     0   :  { %vm100_vm0 = vcmask 261120   ;;  %v5509_v14 = vmov 0.0   ;;  %vm5510_vm1 = vmmov 0   ;;  %vm257_vm2 = vcmask 130048   ;;  %s6384_s26 = smov 96   ;;  %s6382_s28 = smov 80   ;;  %s6346_s5 = inlined_call_operand.vmem [shape: f32[2,32,64], index: 5, kind: input, shape index: {}]   ;;  %s6347_s4 = inlined_call_operand.vmem [shape: f32[2,32,32], index: 4, kind: input, shape index: {}]   ;;  %s6348_s0 = inlined_call_operand.vmem [shape: f32[16,32], index: 0, kind: input, shape index: {}]   ;;  %s6349_s2 = inlined_call_operand.vmem [shape: f32[16,8], index: 2, kind: input, shape index: {}]   ;;  %s6350_s6 = inlined_call_operand.vmem [shape: f32[2,32,32], index: 6, kind: input, shape index: {}]   ;;  %s6351_s7 = inlined_call_operand.vmem [shape: f32[2,1,32], index: 7, kind: input, shape index: {}]   ;;  %s6352_s11 = inlined_call_operand.vmem [shape: f32[2,32,64], index: 11, kind: input, shape index: {}]   ;;  %s6353_s1 = inlined_call_operand.vmem [shape: f32[16,32], index: 1, kind: input, shape index: {}]   ;;  %s6354_s10 = inlined_call_operand.vmem [shape: f32[2,32,32], index: 10, kind: input, shape index: {}]   ;;  %s6355_s8 = inlined_call_operand.vmem [shape: f32[2,1,32], index: 8, kind: input, shape index: {}]   ;;  %s6356_s9 = inlined_call_operand.vmem [shape: f32[2,1,32], index: 9, kind: input, shape index: {}]   ;;  %s6357_s3 = inlined_call_operand.vmem [shape: f32[16,8], index: 3, kind: input, shape index: {}]   ;;  %s6358_s12 = inlined_call_operand.vmem [shape: f32[2,32,32], index: 12, kind: input, shape index: {}]   ;;  %s6359_s13 = inlined_call_operand.vmem [shape: f32[2,1,32], index: 13, kind: input, shape index: {}]   ;;  %s6360_s16 = inlined_call_operand.vmem [shape: f32[2,32,64], index: 16, kind: input, shape index: {}]   ;;  %s6361_s18 = inlined_call_operand.vmem [shape: f32[2,64,32], index: 18, kind: input, shape index: {}]   ;;  %s6362_s14 = inlined_call_operand.vmem [shape: f32[2,1,32], index: 14, kind: input, shape index: {}]   ;;  %s6363_s15 = inlined_call_operand.vmem [shape: f32[2,1,32], index: 15, kind: input, shape index: {}]   ;;  %s6364_s17 = inlined_call_operand.vmem [shape: f32[2,1,64], index: 17, kind: input, shape index: {}]   ;;  %s6365_s19 = inlined_call_operand.vmem [shape: f32[2,1,32], index: 19, kind: input, shape index: {}]   ;;  %s6366_s20 = inlined_call_operand.vmem [shape: f32[2,1,32], index: 20, kind: input, shape index: {}]   ;;  %s6367_s21 = inlined_call_operand.vmem [shape: f32[2,1,32], index: 21, kind: input, shape index: {}]   ;;  %s6368_s22 = inlined_call_operand.vmem [shape: f32[32,128], index: 22, kind: input, shape index: {}]   ;;  %s6369_s23 = inlined_call_operand.vmem [shape: f32[1,128], index: 23, kind: input, shape index: {}]   ;;  %s6370_s24 = inlined_call_operand.vmem [shape: f32[16,128], index: 24, kind: output, shape index: {}]  }
   0x1   :  { %6396 = sst [smem:[#allocation2_spill]] %s6346_s5  ;;  %s6386_s5 = smov 112   ;;  %vm335_vm3 = vcmask 64512   ;;  %vm2148_vm4 = vcmask 523264  }
   0x2   :  { %6397 = sst [smem:[#allocation3_spill]] %s6347_s4  ;;  %s6412_s27 = sld [smem:[#allocation2_spill]] }
   0x3   :  { %6398 = sst [smem:[#allocation4_spill]] %s6348_s0  ;;  %s6413_s29 = sld [smem:[#allocation3_spill]] }
   0x4   :  { %6399 = sst [smem:[#allocation5_spill]] %s6349_s2  ;;  %s6422_s2 = smov 96  }
   0x5   :  { %6400 = sst [smem:[#allocation6_spill]] %s6350_s6  ;;  %s6415_s6 = sld [smem:[#allocation5_spill]] }
   0x6   :  { %6401 = sst [smem:[#allocation7_spill]] %s6351_s7  ;;  %s6423_s25 = smov 80  }
   0x7   :  { %6402 = sst [smem:[#allocation8_spill]] %s6352_s11  ;;  %s6380_s11 = smov 16  }
   0x8   :  { %6403 = sst [smem:[#allocation9_spill]] %s6353_s1  ;;  %v89_v0 = vld [vmem:[%s6412_s27] sm:$0xff]  ;;  %v90_v1 = vld [vmem:[%s6412_s27 + $0x8] sm:$0xff]  ;;  %v91_v5 = vld [vmem:[%s6412_s27 + $0x10] sm:$0xff]  ;;  %s6414_s1 = sld [smem:[#allocation4_spill]] }
   0x9   :  { %6404 = sst [smem:[#allocation10_spill]] %s6354_s10  ;;  %v85_v2 = vld [vmem:[%s6413_s29] sm:$0xff]  ;;  %v5266_v3 = vpack.c.bf16 %v90_v1, %v89_v0  ;;  %v86_v4 = vld [vmem:[%s6413_s29 + $0x8] sm:$0xff]  ;;  %v92_v6 = vld [vmem:[%s6412_s27 + $0x18] sm:$0xff]  ;;  %s6417_s30 = sld [smem:[#allocation7_spill]] }
   0xa   :  { %6405 = sst [smem:[#allocation11_spill]] %s6356_s9  ;;  %v5258_v7 = vpack.c.bf16 %v86_v4, %v85_v2  ;;  %v5270_v8 = vpack.c.bf16 %v92_v6, %v91_v5  ;;  %v87_v9 = vld [vmem:[%s6413_s29 + $0x10] sm:$0xff]  ;;  %v88_v10 = vld [vmem:[%s6413_s29 + $0x18] sm:$0xff]  ;;  %s6418_s4 = sld [smem:[#allocation8_spill]] }
   0xb   :  { %6406 = sst [smem:[#allocation12_spill]] %s6357_s3  ;;  %5267 = vmatprep.subr.bf16.mxu1 %v5266_v3  ;;  %v5262_v12 = vpack.c.bf16 %v88_v10, %v87_v9  ;;  %v81_v23 = vld [vmem:[%s6415_s6] sm:$0xff]  ;;  %v82_v32 = vld [vmem:[%s6415_s6 + $0x8] sm:$0xff]  ;;  %s6424_s10 = smov 16  }
   0xc   :  { %6407 = sst [smem:[#allocation13_spill]] %s6358_s12  ;;  %5269 = vmatpush3.bf16.msra.mxu1 %v5266_v3  ;;  %5259 = vmatprep.subr.bf16.mxu0 %v5258_v7 }
   0xd   :  { %6408 = sst [smem:[#allocation14_spill]] %s6359_s13  ;;  %5261 = vmatpush3.bf16.msra.mxu0 %v5258_v7  ;;  %5271 = vmatprep.subr.bf16.mxu1 %v5270_v8 }
   0xe   :  { %6409 = sst [smem:[#allocation15_spill]] %s6368_s22  ;;  %v5667_v11 = vld [vmem:[%s6414_s1] sm:$0xff]  ;;  %5263 = vmatprep.subr.bf16.mxu0 %v5262_v12  ;;  %v5676_v13 = vld [vmem:[%s6414_s1 + $0x8] sm:$0xff]  ;;  %s6416_s1 = sld [smem:[#allocation6_spill]] }
   0xf   :  { %6410 = sst [smem:[#allocation16_spill]] %s6369_s23  ;;  %4914 = vmatprep.mubr.msk.f32.mxu1 %vm100_vm0, %v5667_v11  ;;  %4903 = vmatprep.mubr.msk.f32.mxu0 %vm100_vm0, %v5667_v11  ;;  %s6425_s22 = sld [smem:[#allocation11_spill]] }
  0x10   :  { %6411 = sst [smem:[#allocation17_spill]] %s6370_s24  ;;  %5273 = vmatpush3.bf16.msra.mxu1 %v5270_v8  ;;  %s6420_s24 = sld [smem:[#allocation10_spill]] }
  0x11   :  { %5265 = vmatpush3.bf16.msra.mxu0 %v5262_v12  ;;  %4917 = vmatprep.subr.mxu1 %v5509_v14 }
  0x12   :  { %4927 = vmatprep.subr.mxu0 %v5509_v14 }
  0x13   :  { %4915 = vmatmul.mubr.msk.f32.vlgmr.msra.gmra.mrb[0].mxu1 %vm100_vm0, %v5676_v13 }
  0x14   :  { %4904 = vmatmul.mubr.msk.f32.vlgmr.msra.gmra.mrb[0].mxu0 %vm100_vm0, %v5676_v13  ;;  %4919 = vmatprep.mubr.msk.f32.mxu1 %vm5510_vm1, %v5509_v14 }
  0x15   :  { %4929 = vmatprep.mubr.msk.f32.mxu0 %vm5510_vm1, %v5509_v14 }
  0xe6   :  { %v5688_v15 = vpop.f32.mrb[0].mxu1 }
  0xe7   :  { %760 = vrot.lane.b32.xlu1 %v5688_v15, %s6386_s5  ;;  %v5692_v16 = vpop.f32.mrb[1].mxu1  ;;  %v4905_v17 = vpop.f32.mrb[0].mxu0 }
  0xe8   :  { %425 = vrot.lane.b32.xlu0 %v5692_v16, %s6386_s5  ;;  %4918 = vmatpush3.xpose.msk.msra.mxu1 %vm257_vm2, %v5692_v16  ;;  %v173_v18 = vpop.f32.mrb[1].mxu0 }
  0xe9   :  { %4922 = vmatprep.subr.mxu1 %v5509_v14 }
  0xeb   :  { %758 = vrot.lane.b32.xlu1 %v4905_v17, %s6386_s5  ;;  %4920 = vmatmul.mubr.msk.f32.vlgmr.msra.gmra.mrb[2].mxu1 %vm257_vm2, %v173_v18 }
  0xec   :  { %423 = vrot.lane.b32.xlu0 %v173_v18, %s6386_s5  ;;  %4924 = vmatprep.mubr.msk.f32.mxu1 %vm5510_vm1, %v5509_v14  ;;  %s6419_s5 = sld [smem:[#allocation9_spill]] }
 0x159   :  { %v761_v21 = vpop.permute.xlu1 %760 }
 0x15a   :  { %v426_v19 = vpop.permute.xlu0 %425 }
 0x15b   :  { %4928 = vmatpush3.xpose.msk.msra.mxu0 %vm257_vm2, %v426_v19 }
 0x15c   :  { %4937 = vmatprep.subr.mxu0 %v5509_v14 }
 0x15d   :  { %v759_v22 = vpop.permute.xlu1 %758 }
 0x15e   :  { %v424_v20 = vpop.permute.xlu0 %423 }
 0x15f   :  { %4930 = vmatmul.mubr.msk.f32.vlgmr.msra.gmra.mrb[2].mxu0 %vm257_vm2, %v424_v20 }
 0x160   :  { %4938 = vmatpush3.xpose.msk.msra.mxu0 %vm257_vm2, %v5688_v15  ;;  %4939 = vmatprep.mubr.msk.f32.mxu0 %vm5510_vm1, %v5509_v14 }
 0x161   :  { %4947 = vmatprep.subr.mxu0 %v5509_v14 }
 0x163   :  { %4940 = vmatmul.mubr.msk.f32.vlgmr.msra.gmra.mrb[4].mxu0 %vm257_vm2, %v4905_v17 }
 0x164   :  { %4948 = vmatpush3.xpose.msk.msra.mxu0 %vm257_vm2, %v761_v21  ;;  %4949 = vmatprep.mubr.msk.f32.mxu0 %vm5510_vm1, %v5509_v14 }
 0x167   :  { %4950 = vmatmul.mubr.msk.f32.vlgmr.msra.gmra.mrb[6].mxu0 %vm257_vm2, %v759_v22  ;;  %v93_v22 = vld [vmem:[%s6416_s1] sm:$0xff] }
 0x1be   :  { %v330_v24 = vpop.f32.mrb[2].mxu1 }
 0x1bf   :  { %v331_v25 = vadd.f32 %v330_v24, %v81_v23  ;;  %v4921_v26 = vpop.f32.mrb[3].mxu1 }
 0x1c0   :  { %v96_v26 = vld [vmem:[%s6416_s1 + $0x18] sm:$0xff] }
 0x1c1   :  { %v334_v27 = vmul.f32 0.17677669, %v331_v25  ;;  %v95_v25 = vld [vmem:[%s6416_s1 + $0x10] sm:$0xff] }
 0x1c3   :  { %v336_v28 = vsel %vm335_vm3, %v334_v27, -inf }
 0x1c4   :  { %337 = vmax.xlane.f32.xlu0 %v336_v28 }
 0x232   :  { %v497_v29 = vpop.f32.mrb[2].mxu0 }
 0x233   :  { %v498_v30 = vadd.f32 %v497_v29, %v81_v23  ;;  %v4931_v31 = vpop.f32.mrb[3].mxu0  ;;  %v94_v23 = vld [vmem:[%s6416_s1 + $0x8] sm:$0xff] }
 0x234   :  { %v5274_v24 = vpack.c.bf16 %v94_v23, %v93_v22 }
 0x235   :  { %v501_v33 = vmul.f32 0.17677669, %v498_v30 }
 0x236   :  { %v666_v34 = vpop.f32.mrb[4].mxu0  ;;  %5275 = vmatprep.subr.bf16.mxu0 %v5274_v24 }
 0x237   :  { %v667_v35 = vadd.f32 %v666_v34, %v82_v32  ;;  %v4941_v36 = vpop.f32.mrb[5].mxu0  ;;  %v502_v37 = vsel %vm335_vm3, %v501_v33, -inf  ;;  %5277 = vmatpush3.bf16.msra.mxu0 %v5274_v24 }
 0x238   :  { %503 = vmax.xlane.f32.xlu1 %v502_v37 }
 0x239   :  { %v670_v38 = vmul.f32 0.17677669, %v667_v35 }
 0x23a   :  { %v832_v39 = vpop.f32.mrb[6].mxu0 }
 0x23b   :  { %v833_v40 = vadd.f32 %v832_v39, %v82_v32  ;;  %v4951_v41 = vpop.f32.mrb[7].mxu0  ;;  %v671_v42 = vsel %vm335_vm3, %v670_v38, -inf }
 0x23c   :  { %672 = vmax.xlane.f32.xlu0 %v671_v42 }
 0x23d   :  { %v836_v43 = vmul.f32 0.17677669, %v833_v40 }
 0x23f   :  { %v837_v44 = vsel %vm335_vm3, %v836_v43, -inf }
 0x240   :  { %838 = vmax.xlane.f32.xlu0 %v837_v44 }
 0x249   :  { %347 = vrot.lane.b32.xlu1 %v5692_v16, %s6384_s26 }
 0x251   :  { %v338_v45 = vpop.xlane.xlu0 %337 }
 0x252   :  { %v339_v46 = vsub.f32 %v334_v27, %v338_v45  ;;  %v5278_v27 = vpack.c.bf16 %v96_v26, %v95_v25 }
 0x254   :  { %v340_v47 = vmul.f32 1.442695, %v339_v46  ;;  %5279 = vmatprep.subr.bf16.mxu0 %v5278_v27 }
 0x255   :  { %5281 = vmatpush3.bf16.msra.mxu0 %v5278_v27 }
 0x256   :  { %5416 = vpow2.f32 %v340_v47 }
 0x260   :  { %v5417_v48 = vpop.eup %5416 }
 0x261   :  { %v342_v49 = vsel %vm335_vm3, %v5417_v48, 0.0 }
 0x26d   :  { %343 = vadd.xlane.f32.xlu1 %v342_v49 }
 0x2c5   :  { %v504_v50 = vpop.xlane.xlu1 %503 }
 0x2c6   :  { %v505_v51 = vsub.f32 %v501_v33, %v504_v50 }
 0x2c8   :  { %v506_v52 = vmul.f32 1.442695, %v505_v51 }
 0x2c9   :  { %v348_v53 = vpop.permute.xlu1 %347  ;;  %v673_v54 = vpop.xlane.xlu0 %672 }
 0x2ca   :  { %5418 = vpow2.f32 %v506_v52  ;;  %v674_v55 = vsub.f32 %v670_v38, %v673_v54  ;;  %4923 = vmatpush3.msra.mxu1 %v348_v53  ;;  %v4588_v38 = vld [vmem:[%s6417_s30] ss:$0 sm:$0xff] }
 0x2cb   :  { %4932 = vmatprep.subr.mxu1 %v5509_v14 }
 0x2cc   :  { %v675_v56 = vmul.f32 1.442695, %v674_v55 }
 0x2cd   :  { %v839_v57 = vpop.xlane.xlu0 %838 }
 0x2ce   :  { %5420 = vpow2.f32 %v675_v56  ;;  %v840_v58 = vsub.f32 %v836_v43, %v839_v57  ;;  %v1066_v56 = vld [vmem:[%s6418_s4 + $0x8] sm:$0xff] }
 0x2d0   :  { %v841_v59 = vmul.f32 1.442695, %v840_v58  ;;  %v1067_v58 = vld [vmem:[%s6418_s4 + $0x10] sm:$0xff] }
 0x2d2   :  { %5422 = vpow2.f32 %v841_v59  ;;  %v1068_v59 = vld [vmem:[%s6418_s4 + $0x18] sm:$0xff] }
 0x2d4   :  { %v5419_v60 = vpop.eup %5418 }
 0x2d5   :  { %v508_v61 = vsel %vm335_vm3, %v5419_v60, 0.0 }
 0x2d6   :  { %509 = vadd.xlane.f32.xlu0 %v508_v61  ;;  %v5794_v61 = vld [vmem:[%s6419_s5] sm:$0xff] }
 0x2d8   :  { %v5421_v62 = vpop.eup %5420 }
 0x2d9   :  { %v677_v63 = vsel %vm335_vm3, %v5421_v62, 0.0 }
 0x2da   :  { %678 = vadd.xlane.f32.xlu1 %v677_v63  ;;  %v1062_v63 = vld [vmem:[%s6420_s24 + $0x8] sm:$0xff] }
 0x2dc   :  { %v5423_v0 = vpop.eup %5422 }
 0x2dd   :  { %v843_v1 = vsel %vm335_vm3, %v5423_v0, 0.0 }
 0x2de   :  { %844 = vadd.xlane.f32.xlu0 %v843_v1 }
 0x2eb   :  { %682 = vrot.lane.b32.xlu1 %v5688_v15, %s6384_s26  ;;  %s6421_s26 = smov 112  }
 0x2ef   :  { %848 = vrot.lane.b32.xlu1 %v5688_v15, %s6382_s28 }
 0x2f4   :  { %513 = vrot.lane.b32.xlu0 %v5692_v16, %s6382_s28  ;;  %s6430_s28 = sld [smem:[#allocation16_spill]] }
 0x2fa   :  { %v344_v2 = vpop.xlane.xlu1 %343 }
 0x2fb   :  { %5424 = vrcp.f32 %v344_v2  ;;  %v1063_v2 = vld [vmem:[%s6420_s24 + $0x10] sm:$0xff] }
 0x305   :  { %v5425_v3 = vpop.eup %5424 }
 0x306   :  { %v346_v4 = vmul.f32 %v5425_v3, %v5417_v48  ;;  %v1064_v3 = vld [vmem:[%s6420_s24 + $0x18] sm:$0xff] }
 0x308   :  { %4925 = vmatmul.mubr.msk.f32.vlgmr.msra.gmra.mrb[4].mxu1 %vm335_vm3, %v346_v4  ;;  %v5286_v4 = vpack.c.bf16 %v1064_v3, %v1063_v2 }
 0x309   :  { %4934 = vmatprep.mubr.msk.f32.mxu1 %vm5510_vm1, %v5509_v14 }
 0x363   :  { %v510_v5 = vpop.xlane.xlu0 %509 }
 0x364   :  { %5426 = vrcp.f32 %v510_v5 }
 0x367   :  { %v679_v6 = vpop.xlane.xlu1 %678 }
 0x368   :  { %5428 = vrcp.f32 %v679_v6 }
 0x36b   :  { %v845_v7 = vpop.xlane.xlu0 %844  ;;  %v683_v10 = vpop.permute.xlu1 %682 }
 0x36c   :  { %5430 = vrcp.f32 %v845_v7 }
 0x36e   :  { %v5427_v8 = vpop.eup %5426 }
 0x36f   :  { %v512_v9 = vmul.f32 %v5427_v8, %v5419_v60  ;;  %v514_v12 = vpop.permute.xlu0 %513  ;;  %v849_v17 = vpop.permute.xlu1 %848  ;;  %v5294_v60 = vpack.c.bf16 %v1068_v59, %v1067_v58 }
 0x370   :  { %4933 = vmatpush3.msra.mxu1 %v514_v12 }
 0x371   :  { %4935 = vmatmul.mubr.msk.f32.vlgmr.msra.gmra.mrb[6].mxu1 %vm335_vm3, %v512_v9  ;;  %4942 = vmatprep.subr.mxu1 %v5509_v14 }
 0x372   :  { %v5429_v15 = vpop.eup %5428  ;;  %4943 = vmatpush3.msra.mxu1 %v683_v10  ;;  %4944 = vmatprep.mubr.msk.f32.mxu1 %vm5510_vm1, %v5509_v14 }
 0x373   :  { %v681_v16 = vmul.f32 %v5429_v15, %v5421_v62  ;;  %4952 = vmatprep.subr.mxu1 %v5509_v14  ;;  %v1061_v62 = vld [vmem:[%s6420_s24] sm:$0xff] }
 0x374   :  { %v5282_v1 = vpack.c.bf16 %v1062_v63, %v1061_v62  ;;  %v4591_v15 = vld [vmem:[%s6355_s8] ss:$0 sm:$0xff] }
 0x375   :  { %4945 = vmatmul.mubr.msk.f32.vlgmr.msra.gmra.mrb[8].mxu1 %vm335_vm3, %v681_v16 }
 0x376   :  { %v5431_v18 = vpop.eup %5430  ;;  %4953 = vmatpush3.msra.mxu1 %v849_v17  ;;  %4954 = vmatprep.mubr.msk.f32.mxu1 %vm5510_vm1, %v5509_v14  ;;  %v4592_v17 = vld [vmem:[%s6356_s9] ss:$0 sm:$0xff] }
 0x377   :  { %v847_v19 = vmul.f32 %v5431_v18, %v5423_v0  ;;  %v80_v0 = vld [vmem:[%s6419_s5 + $0x8] sm:$0xff]  ;;  %5283 = vmatprep.subr.bf16.mxu1 %v5282_v1 }
 0x379   :  { %4955 = vmatmul.mubr.msk.f32.vlgmr.msra.gmra.mrb[10].mxu1 %vm335_vm3, %v847_v19 }
 0x37a   :  { %5285 = vmatpush3.bf16.msra.mxu1 %v5282_v1 }
 0x37b   :  { %5287 = vmatprep.subr.bf16.mxu1 %v5286_v4 }
 0x37e   :  { %5289 = vmatpush3.bf16.msra.mxu1 %v5286_v4 }
 0x37f   :  { %4990 = vmatprep.subr.mxu1 %v5509_v14 }
 0x3db   :  { %v419_v20 = vpop.f32.mrb[4].mxu1 }
 0x3dc   :  { %v4926_v21 = vpop.f32.mrb[5].mxu1 }
 0x444   :  { %v585_v28 = vpop.f32.mrb[6].mxu1 }
 0x445   :  { %590 = vrot.lane.b32.xlu0 %v585_v28, %s6380_s11  ;;  %v4936_v29 = vpop.f32.mrb[7].mxu1 }
 0x448   :  { %v754_v30 = vpop.f32.mrb[8].mxu1 }
 0x449   :  { %v4946_v31 = vpop.f32.mrb[9].mxu1 }
 0x44c   :  { %v920_v32 = vpop.f32.mrb[10].mxu1 }
 0x44d   :  { %925 = vrot.lane.b32.xlu1 %v920_v32, %s6380_s11  ;;  %v4956_v33 = vpop.f32.mrb[11].mxu1  ;;  %v83_v32 = vld [vmem:[%s6357_s3] sm:$0xff] }
 0x4b7   :  { %v591_v34 = vpop.permute.xlu0 %590 }
 0x4b8   :  { %v593_v35 = vsel %vm257_vm2, %v419_v20, %v591_v34 }
 0x4b9   :  { %4965 = vmatprep.mubr.msk.f32.mxu0 %vm100_vm0, %v593_v35 }
 0x4bf   :  { %v926_v36 = vpop.permute.xlu1 %925 }
 0x4c0   :  { %v928_v37 = vsel %vm257_vm2, %v754_v30, %v926_v36 }
 0x4c1   :  { %4966 = vmatmul.mubr.msk.f32.vlgmr.msra.gmra.mrb[8].mxu0 %vm100_vm0, %v928_v37 }
 0x4c2   :  { %4987 = vmatprep.mubr.msk.f32.mxu0 %vm100_vm0, %v5794_v61 }
 0x594   :  { %v4967_v39 = vpop.f32.mrb[8].mxu0 }
 0x595   :  { %v1013_v40 = vadd.f32 %v4967_v39, %v4588_v38  ;;  %v1007_v41 = vpop.f32.mrb[9].mxu0 }
 0x596   :  { %v1008_v42 = vadd.f32 %v4588_v38, %v1007_v41  ;;  %v84_v41 = vld [vmem:[%s6357_s3 + $0x8] sm:$0xff]  ;;  %s6427_s3 = sld [smem:[#allocation13_spill]] }
 0x597   :  { %v1017_v43 = vadd.f32 %v1013_v40, %v5676_v13 }
 0x598   :  { %v1016_v44 = vadd.f32 %v1008_v42, %v5667_v11  ;;  %v1065_v11 = vld [vmem:[%s6418_s4] sm:$0xff] }
 0x599   :  { %v1021_v45 = vsel %vm100_vm0, %v1017_v43, 0.0  ;;  %v5290_v57 = vpack.c.bf16 %v1066_v56, %v1065_v11 }
 0x59a   :  { %1022 = vadd.xlane.f32.xlu1 %v1021_v45  ;;  %v1018_v46 = vsel %vm100_vm0, %v1016_v44, 0.0 }
 0x59b   :  { %1019 = vadd.xlane.f32.xlu0 %v1018_v46  ;;  %5291 = vmatprep.subr.bf16.mxu0 %v5290_v57 }
 0x59c   :  { %5293 = vmatpush3.bf16.msra.mxu0 %v5290_v57 }
 0x59d   :  { %5295 = vmatprep.subr.bf16.mxu0 %v5294_v60 }
 0x5a0   :  { %5297 = vmatpush3.bf16.msra.mxu0 %v5294_v60 }
 0x5a1   :  { %5000 = vmatprep.subr.mxu0 %v5509_v14 }
 0x5a3   :  { %4988 = vmatmul.mubr.msk.f32.vlgmr.msra.gmra.mrb[10].mxu0 %vm100_vm0, %v80_v0 }
 0x5a4   :  { %5002 = vmatprep.mubr.msk.f32.mxu0 %vm5510_vm1, %v5509_v14 }
 0x627   :  { %v1023_v47 = vpop.xlane.xlu1 %1022 }
 0x628   :  { %v1026_v48 = vmul.f32 0.03125, %v1023_v47  ;;  %v1020_v49 = vpop.xlane.xlu0 %1019 }
 0x629   :  { %v1025_v50 = vmul.f32 0.03125, %v1020_v49 }
 0x62a   :  { %v1028_v51 = vsub.f32 %v1017_v43, %v1026_v48 }
 0x62b   :  { %v1027_v52 = vsub.f32 %v1016_v44, %v1025_v50 }
 0x62c   :  { %v1030_v55 = vmul.f32 %v1028_v51, %v1028_v51 }
 0x62d   :  { %v1029_v53 = vmul.f32 %v1027_v52, %v1027_v52 }
 0x62e   :  { %v1034_v13 = vsel %vm100_vm0, %v1030_v55, 0.0 }
 0x62f   :  { %v1031_v54 = vsel %vm100_vm0, %v1029_v53, 0.0 }
 0x630   :  { %1032 = vadd.xlane.f32.xlu0 %v1031_v54 }
 0x634   :  { %1035 = vadd.xlane.f32.xlu0 %v1034_v13 }
 0x676   :  { %v5834_v24 = vpop.f32.mrb[10].mxu0 }
 0x677   :  { %v5836_v25 = vpop.f32.mrb[11].mxu0 }
 0x678   :  { %1404 = vrot.lane.b32.xlu1 %v5836_v25, %s6421_s26 }
 0x67c   :  { %1739 = vrot.lane.b32.xlu1 %v5834_v24, %s6421_s26 }
 0x6bd   :  { %v1033_v5 = vpop.xlane.xlu0 %1032 }
 0x6be   :  { %v1037_v6 = vmul.f32 0.03125, %v1033_v5 }
 0x6c0   :  { %v1039_v7 = vadd.f32 1e-05, %v1037_v6 }
 0x6c1   :  { %v1036_v8 = vpop.xlane.xlu0 %1035 }
 0x6c2   :  { %5432 = vrsqrt.f32 %v1039_v7  ;;  %v1038_v9 = vmul.f32 0.03125, %v1036_v8 }
 0x6c4   :  { %v1040_v10 = vadd.f32 1e-05, %v1038_v9 }
 0x6c6   :  { %5434 = vrsqrt.f32 %v1040_v10 }
 0x6cc   :  { %v5433_v12 = vpop.eup %5432 }
 0x6cd   :  { %v1043_v16 = vmul.f32 %v5433_v12, %v1027_v52 }
 0x6cf   :  { %v1051_v18 = vmul.f32 %v4591_v15, %v1043_v16 }
 0x6d0   :  { %v5435_v19 = vpop.eup %5434 }
 0x6d1   :  { %v1044_v20 = vmul.f32 %v5435_v19, %v1028_v51  ;;  %v5824_v21 = vadd.f32 %v4592_v17, %v1051_v18 }
 0x6d3   :  { %v1052_v22 = vmul.f32 %v4591_v15, %v1044_v20  ;;  %4976 = vmatprep.mubr.msk.f32.mxu1 %vm100_vm0, %v5824_v21 }
 0x6d5   :  { %v5828_v23 = vadd.f32 %v4592_v17, %v1052_v22 }
 0x6d7   :  { %4977 = vmatmul.mubr.msk.f32.vlgmr.msra.gmra.mrb[12].mxu1 %vm100_vm0, %v5828_v23 }
 0x6d8   :  { %4992 = vmatprep.mubr.msk.f32.mxu1 %vm5510_vm1, %v5509_v14  ;;  %4991 = vmatpush3.xpose.msk.msra.mxu1 %vm257_vm2, %v5836_v25 }
 0x6d9   :  { %4995 = vmatprep.subr.mxu1 %v5509_v14 }
 0x6ea   :  { %v1405_v26 = vpop.permute.xlu1 %1404 }
 0x6eb   :  { %5001 = vmatpush3.xpose.msk.msra.mxu0 %vm257_vm2, %v1405_v26 }
 0x6ec   :  { %5010 = vmatprep.subr.mxu0 %v5509_v14 }
 0x6ee   :  { %v1740_v30 = vpop.permute.xlu1 %1739 }
 0x7aa   :  { %v4978_v27 = vpop.f32.mrb[12].mxu1 }
 0x7ab   :  { %1737 = vrot.lane.b32.xlu1 %v4978_v27, %s6421_s26  ;;  %v1148_v28 = vpop.f32.mrb[13].mxu1 }
 0x7ac   :  { %1402 = vrot.lane.b32.xlu0 %v1148_v28, %s6421_s26  ;;  %4993 = vmatmul.mubr.msk.f32.vlgmr.msra.gmra.mrb[14].mxu1 %vm257_vm2, %v1148_v28 }
 0x7ad   :  { %4997 = vmatprep.mubr.msk.f32.mxu1 %vm5510_vm1, %v5509_v14 }
 0x81d   :  { %v1738_v31 = vpop.permute.xlu1 %1737 }
 0x81e   :  { %v1403_v29 = vpop.permute.xlu0 %1402 }
 0x81f   :  { %5003 = vmatmul.mubr.msk.f32.vlgmr.msra.gmra.mrb[12].mxu0 %vm257_vm2, %v1403_v29 }
 0x820   :  { %5011 = vmatpush3.xpose.msk.msra.mxu0 %vm257_vm2, %v5834_v24  ;;  %5012 = vmatprep.mubr.msk.f32.mxu0 %vm5510_vm1, %v5509_v14 }
 0x821   :  { %5020 = vmatprep.subr.mxu0 %v5509_v14 }
 0x823   :  { %5013 = vmatmul.mubr.msk.f32.vlgmr.msra.gmra.mrb[14].mxu0 %vm257_vm2, %v4978_v27 }
 0x824   :  { %5021 = vmatpush3.xpose.msk.msra.mxu0 %vm257_vm2, %v1740_v30  ;;  %5022 = vmatprep.mubr.msk.f32.mxu0 %vm5510_vm1, %v5509_v14 }
 0x827   :  { %5023 = vmatmul.mubr.msk.f32.vlgmr.msra.gmra.mrb[16].mxu0 %vm257_vm2, %v1738_v31 }
 0x87f   :  { %v1310_v33 = vpop.f32.mrb[14].mxu1 }
 0x880   :  { %v1311_v34 = vadd.f32 %v1310_v33, %v83_v32  ;;  %v4994_v35 = vpop.f32.mrb[15].mxu1  ;;  %v1070_v33 = vld [vmem:[%s6358_s12 + $0x8] sm:$0xff] }
 0x881   :  { %v1071_v35 = vld [vmem:[%s6358_s12 + $0x10] sm:$0xff] }
 0x882   :  { %v1314_v36 = vmul.f32 0.17677669, %v1311_v34 }
 0x884   :  { %v1315_v37 = vsel %vm335_vm3, %v1314_v36, -inf }
 0x885   :  { %1316 = vmax.xlane.f32.xlu0 %v1315_v37 }
 0x8f2   :  { %v1476_v38 = vpop.f32.mrb[12].mxu0 }
 0x8f3   :  { %v1477_v39 = vadd.f32 %v1476_v38, %v83_v32  ;;  %v5004_v40 = vpop.f32.mrb[13].mxu0  ;;  %v1069_v32 = vld [vmem:[%s6358_s12] sm:$0xff] }
 0x8f4   :  { %v5298_v34 = vpack.c.bf16 %v1070_v33, %v1069_v32 }
 0x8f5   :  { %v1480_v42 = vmul.f32 0.17677669, %v1477_v39 }
 0x8f6   :  { %v1645_v43 = vpop.f32.mrb[14].mxu0  ;;  %5299 = vmatprep.subr.bf16.mxu0 %v5298_v34 }
 0x8f7   :  { %v1646_v44 = vadd.f32 %v1645_v43, %v84_v41  ;;  %v5014_v45 = vpop.f32.mrb[15].mxu0  ;;  %v1481_v46 = vsel %vm335_vm3, %v1480_v42, -inf  ;;  %5301 = vmatpush3.bf16.msra.mxu0 %v5298_v34 }
 0x8f8   :  { %1482 = vmax.xlane.f32.xlu1 %v1481_v46 }
 0x8f9   :  { %v1649_v47 = vmul.f32 0.17677669, %v1646_v44 }
 0x8fa   :  { %v1811_v48 = vpop.f32.mrb[16].mxu0 }
 0x8fb   :  { %v1812_v49 = vadd.f32 %v1811_v48, %v84_v41  ;;  %v5024_v50 = vpop.f32.mrb[17].mxu0  ;;  %v1650_v51 = vsel %vm335_vm3, %v1649_v47, -inf  ;;  %v4609_v48 = vld [vmem:[%s6359_s13] ss:$0 sm:$0xff] }
 0x8fc   :  { %1651 = vmax.xlane.f32.xlu0 %v1650_v51 }
 0x8fd   :  { %v1815_v52 = vmul.f32 0.17677669, %v1812_v49 }
 0x8ff   :  { %v1816_v53 = vsel %vm335_vm3, %v1815_v52, -inf }
 0x900   :  { %1817 = vmax.xlane.f32.xlu0 %v1816_v53 }
 0x909   :  { %1326 = vrot.lane.b32.xlu1 %v5836_v25, %s6422_s2 }
 0x912   :  { %v1317_v54 = vpop.xlane.xlu0 %1316 }
 0x913   :  { %v1318_v55 = vsub.f32 %v1314_v36, %v1317_v54  ;;  %v1072_v36 = vld [vmem:[%s6358_s12 + $0x18] sm:$0xff] }
 0x914   :  { %v5302_v37 = vpack.c.bf16 %v1072_v36, %v1071_v35  ;;  %v2139_v36 = vld [vmem:[%s6361_s18 + $0x30] sm:$0xff] }
 0x915   :  { %v1319_v13 = vmul.f32 1.442695, %v1318_v55 }
 0x916   :  { %5303 = vmatprep.subr.bf16.mxu0 %v5302_v37 }
 0x917   :  { %5436 = vpow2.f32 %v1319_v13  ;;  %5305 = vmatpush3.bf16.msra.mxu0 %v5302_v37  ;;  %v2140_v37 = vld [vmem:[%s6361_s18 + $0x38] sm:$0xff] }
 0x921   :  { %v5437_v11 = vpop.eup %5436 }
 0x922   :  { %v1321_v56 = vsel %vm335_vm3, %v5437_v11, 0.0 }
 0x92d   :  { %1322 = vadd.xlane.f32.xlu1 %v1321_v56 }
 0x985   :  { %v1483_v57 = vpop.xlane.xlu1 %1482 }
 0x986   :  { %v1484_v58 = vsub.f32 %v1480_v42, %v1483_v57 }
 0x988   :  { %v1485_v59 = vmul.f32 1.442695, %v1484_v58 }
 0x989   :  { %v1327_v60 = vpop.permute.xlu1 %1326  ;;  %v1652_v62 = vpop.xlane.xlu0 %1651 }
 0x98a   :  { %5438 = vpow2.f32 %v1485_v59  ;;  %v1653_v63 = vsub.f32 %v1649_v47, %v1652_v62  ;;  %4996 = vmatpush3.msra.mxu1 %v1327_v60 }
 0x98b   :  { %5005 = vmatprep.subr.mxu1 %v5509_v14 }
 0x98c   :  { %v1654_v0 = vmul.f32 1.442695, %v1653_v63 }
 0x98d   :  { %v1818_v1 = vpop.xlane.xlu0 %1817 }
 0x98e   :  { %5440 = vpow2.f32 %v1654_v0  ;;  %v1819_v2 = vsub.f32 %v1815_v52, %v1818_v1  ;;  %v2040_v1 = vld [vmem:[%s6360_s16 + $0x8] sm:$0xff] }
 0x990   :  { %v1820_v3 = vmul.f32 1.442695, %v1819_v2 }
 0x992   :  { %5442 = vpow2.f32 %v1820_v3  ;;  %v2041_v3 = vld [vmem:[%s6360_s16 + $0x10] sm:$0xff] }
 0x994   :  { %v5439_v4 = vpop.eup %5438 }
 0x995   :  { %v1487_v5 = vsel %vm335_vm3, %v5439_v4, 0.0 }
 0x996   :  { %1488 = vadd.xlane.f32.xlu0 %v1487_v5 }
 0x998   :  { %v5441_v6 = vpop.eup %5440 }
 0x999   :  { %v1656_v7 = vsel %vm335_vm3, %v5441_v6, 0.0 }
 0x99a   :  { %1657 = vadd.xlane.f32.xlu1 %v1656_v7  ;;  %v2134_v7 = vld [vmem:[%s6361_s18 + $0x8] sm:$0xff] }
 0x99c   :  { %v5443_v8 = vpop.eup %5442 }
 0x99d   :  { %v1822_v9 = vsel %vm335_vm3, %v5443_v8, 0.0 }
 0x99e   :  { %1823 = vadd.xlane.f32.xlu0 %v1822_v9 }
 0x9ab   :  { %1661 = vrot.lane.b32.xlu1 %v5834_v24, %s6422_s2 }
 0x9af   :  { %1827 = vrot.lane.b32.xlu1 %v5834_v24, %s6423_s25 }
 0x9b4   :  { %1492 = vrot.lane.b32.xlu0 %v5836_v25, %s6423_s25 }
 0x9ba   :  { %v1323_v10 = vpop.xlane.xlu1 %1322 }
 0x9bb   :  { %5444 = vrcp.f32 %v1323_v10  ;;  %v2136_v10 = vld [vmem:[%s6361_s18 + $0x18] sm:$0xff] }
 0x9c5   :  { %v5445_v12 = vpop.eup %5444 }
 0x9c6   :  { %v1325_v15 = vmul.f32 %v5445_v12, %v5437_v11 }
 0x9c8   :  { %4998 = vmatmul.mubr.msk.f32.vlgmr.msra.gmra.mrb[16].mxu1 %vm335_vm3, %v1325_v15  ;;  %v2137_v15 = vld [vmem:[%s6361_s18 + $0x20] sm:$0xff] }
 0x9c9   :  { %5007 = vmatprep.mubr.msk.f32.mxu1 %vm5510_vm1, %v5509_v14 }
 0xa23   :  { %v1489_v16 = vpop.xlane.xlu0 %1488 }
 0xa24   :  { %5446 = vrcp.f32 %v1489_v16  ;;  %v2138_v16 = vld [vmem:[%s6361_s18 + $0x28] sm:$0xff] }
 0xa27   :  { %v1658_v17 = vpop.xlane.xlu1 %1657 }
 0xa28   :  { %5448 = vrcp.f32 %v1658_v17  ;;  %v5322_v17 = vpack.c.bf16 %v2138_v16, %v2137_v15 }
 0xa2b   :  { %v1824_v18 = vpop.xlane.xlu0 %1823  ;;  %v1662_v22 = vpop.permute.xlu1 %1661 }
 0xa2c   :  { %5450 = vrcp.f32 %v1824_v18 }
 0xa2e   :  { %v5447_v19 = vpop.eup %5446 }
 0xa2f   :  { %v1491_v20 = vmul.f32 %v5447_v19, %v5439_v4  ;;  %v1493_v24 = vpop.permute.xlu0 %1492  ;;  %v1828_v27 = vpop.permute.xlu1 %1827  ;;  %v2042_v4 = vld [vmem:[%s6360_s16 + $0x18] sm:$0xff] }
 0xa30   :  { %5006 = vmatpush3.msra.mxu1 %v1493_v24  ;;  %v5310_v5 = vpack.c.bf16 %v2042_v4, %v2041_v3  ;;  %v4626_v4 = vld [vmem:[%s6412_s27 + $0x20] sm:$0xff] }
 0xa31   :  { %5008 = vmatmul.mubr.msk.f32.vlgmr.msra.gmra.mrb[18].mxu1 %vm335_vm3, %v1491_v20  ;;  %5015 = vmatprep.subr.mxu1 %v5509_v14 }
 0xa32   :  { %v5449_v25 = vpop.eup %5448  ;;  %5016 = vmatpush3.msra.mxu1 %v1662_v22  ;;  %5017 = vmatprep.mubr.msk.f32.mxu1 %vm5510_vm1, %v5509_v14 }
 0xa33   :  { %v1660_v26 = vmul.f32 %v5449_v25, %v5441_v6  ;;  %5025 = vmatprep.subr.mxu1 %v5509_v14  ;;  %v2133_v6 = vld [vmem:[%s6361_s18] sm:$0xff] }
 0xa34   :  { %v5314_v9 = vpack.c.bf16 %v2134_v7, %v2133_v6 }
 0xa35   :  { %5018 = vmatmul.mubr.msk.f32.vlgmr.msra.gmra.mrb[20].mxu1 %vm335_vm3, %v1660_v26 }
 0xa36   :  { %v5451_v28 = vpop.eup %5450  ;;  %5026 = vmatpush3.msra.mxu1 %v1828_v27  ;;  %5027 = vmatprep.mubr.msk.f32.mxu1 %vm5510_vm1, %v5509_v14  ;;  %v4612_v27 = vld [vmem:[%s6362_s14] ss:$0 sm:$0xff] }
 0xa37   :  { %v1826_v29 = vmul.f32 %v5451_v28, %v5443_v8  ;;  %v2135_v8 = vld [vmem:[%s6361_s18 + $0x10] sm:$0xff]  ;;  %5315 = vmatprep.subr.bf16.mxu0 %v5314_v9 }
 0xa38   :  { %v5318_v12 = vpack.c.bf16 %v2136_v10, %v2135_v8 }
 0xa39   :  { %5028 = vmatmul.mubr.msk.f32.vlgmr.msra.gmra.mrb[22].mxu1 %vm335_vm3, %v1826_v29  ;;  %v4613_v29 = vld [vmem:[%s6363_s15] ss:$0 sm:$0xff] }
 0xa9b   :  { %v1398_v30 = vpop.f32.mrb[16].mxu1 }
 0xa9c   :  { %v4999_v31 = vpop.f32.mrb[17].mxu1 }
 0xb04   :  { %v1564_v38 = vpop.f32.mrb[18].mxu1 }
 0xb05   :  { %1569 = vrot.lane.b32.xlu0 %v1564_v38, %s6424_s10  ;;  %v5009_v39 = vpop.f32.mrb[19].mxu1  ;;  %v5326_v38 = vpack.c.bf16 %v2140_v37, %v2139_v36 }
 0xb06   :  { %v4614_v39 = vld [vmem:[%s6364_s17] ss:$0 sm:$0xff] }
 0xb08   :  { %v1733_v40 = vpop.f32.mrb[20].mxu1 }
 0xb09   :  { %v5019_v41 = vpop.f32.mrb[21].mxu1 }
 0xb0c   :  { %v1899_v42 = vpop.f32.mrb[22].mxu1 }
 0xb0d   :  { %1904 = vrot.lane.b32.xlu1 %v1899_v42, %s6424_s10  ;;  %v5029_v43 = vpop.f32.mrb[23].mxu1 }
 0xb77   :  { %v1570_v44 = vpop.permute.xlu0 %1569 }
 0xb78   :  { %v1572_v45 = vsel %vm257_vm2, %v1398_v30, %v1570_v44 }
 0xb79   :  { %5038 = vmatprep.mubr.msk.f32.mxu0 %vm100_vm0, %v1572_v45 }
 0xb7f   :  { %v1905_v46 = vpop.permute.xlu1 %1904 }
 0xb80   :  { %v1907_v47 = vsel %vm257_vm2, %v1733_v40, %v1905_v46  ;;  %v4617_v46 = vld [vmem:[%s6365_s19] ss:$0 sm:$0xff] }
 0xb81   :  { %5039 = vmatmul.mubr.msk.f32.vlgmr.msra.gmra.mrb[18].mxu0 %vm100_vm0, %v1907_v47 }
 0xb82   :  { %5317 = vmatpush3.bf16.msra.mxu0 %v5314_v9 }
 0xb83   :  { %5319 = vmatprep.subr.bf16.mxu0 %v5318_v12 }
 0xb86   :  { %5321 = vmatpush3.bf16.msra.mxu0 %v5318_v12 }
 0xb87   :  { %5323 = vmatprep.subr.bf16.mxu0 %v5322_v17 }
 0xb8a   :  { %5325 = vmatpush3.bf16.msra.mxu0 %v5322_v17  ;;  %v4620_v17 = vld [vmem:[%s6366_s20] ss:$0 sm:$0xff] }
 0xb8b   :  { %5327 = vmatprep.subr.bf16.mxu0 %v5326_v38 }
 0xb8e   :  { %5329 = vmatpush3.bf16.msra.mxu0 %v5326_v38 }
 0xb8f   :  { %5093 = vmatprep.subr.mxu0 %v5509_v14 }
 0xc54   :  { %v5040_v49 = vpop.f32.mrb[18].mxu0 }
 0xc55   :  { %v1992_v50 = vadd.f32 %v5040_v49, %v4609_v48  ;;  %v1986_v51 = vpop.f32.mrb[19].mxu0 }
 0xc56   :  { %v1987_v52 = vadd.f32 %v4609_v48, %v1986_v51 }
 0xc57   :  { %v1996_v53 = vadd.f32 %v1992_v50, %v5828_v23 }
 0xc58   :  { %v1995_v54 = vadd.f32 %v1987_v52, %v5824_v21  ;;  %v2039_v21 = vld [vmem:[%s6360_s16] sm:$0xff] }
 0xc59   :  { %v2000_v55 = vsel %vm100_vm0, %v1996_v53, 0.0  ;;  %v5306_v2 = vpack.c.bf16 %v2040_v1, %v2039_v21  ;;  %v4624_v1 = vld [vmem:[%s6413_s29 + $0x30] sm:$0xff] }
 0xc5a   :  { %2001 = vadd.xlane.f32.xlu1 %v2000_v55  ;;  %v1997_v13 = vsel %vm100_vm0, %v1995_v54, 0.0 }
 0xc5b   :  { %1998 = vadd.xlane.f32.xlu0 %v1997_v13  ;;  %5307 = vmatprep.subr.bf16.mxu1 %v5306_v2 }
 0xc5c   :  { %5309 = vmatpush3.bf16.msra.mxu1 %v5306_v2  ;;  %v4625_v2 = vld [vmem:[%s6413_s29 + $0x38] sm:$0xff] }
 0xc5d   :  { %5311 = vmatprep.subr.bf16.mxu1 %v5310_v5  ;;  %v5334_v3 = vpack.c.bf16 %v4625_v2, %v4624_v1 }
 0xc60   :  { %5313 = vmatpush3.bf16.msra.mxu1 %v5310_v5  ;;  %v4627_v5 = vld [vmem:[%s6412_s27 + $0x28] sm:$0xff] }
 0xc61   :  { %v5338_v6 = vpack.c.bf16 %v4627_v5, %v4626_v4 }
 0xce7   :  { %v2002_v11 = vpop.xlane.xlu1 %2001 }
 0xce8   :  { %v2004_v56 = vmul.f32 0.03125, %v2002_v11  ;;  %v1999_v57 = vpop.xlane.xlu0 %1998 }
 0xce9   :  { %v2003_v58 = vmul.f32 0.03125, %v1999_v57 }
 0xcea   :  { %v2006_v59 = vsub.f32 %v1996_v53, %v2004_v56 }
 0xceb   :  { %v2005_v60 = vsub.f32 %v1995_v54, %v2003_v58 }
 0xcec   :  { %v2008_v0 = vmul.f32 %v2006_v59, %v2006_v59 }
 0xced   :  { %v2007_v62 = vmul.f32 %v2005_v60, %v2005_v60 }
 0xcee   :  { %v2012_v23 = vsel %vm100_vm0, %v2008_v0, 0.0  ;;  %v4622_v0 = vld [vmem:[%s6413_s29 + $0x20] sm:$0xff] }
 0xcef   :  { %v2009_v63 = vsel %vm100_vm0, %v2007_v62, 0.0 }
 0xcf0   :  { %2010 = vadd.xlane.f32.xlu0 %v2009_v63 }
 0xcf4   :  { %2013 = vadd.xlane.f32.xlu0 %v2012_v23  ;;  %v4623_v23 = vld [vmem:[%s6413_s29 + $0x28] sm:$0xff] }
 0xcf5   :  { %v5330_v21 = vpack.c.bf16 %v4623_v23, %v4622_v0 }
 0xcf7   :  { %5331 = vmatprep.subr.bf16.mxu1 %v5330_v21 }
 0xd7d   :  { %v2011_v18 = vpop.xlane.xlu0 %2010 }
 0xd7e   :  { %v2015_v19 = vmul.f32 0.03125, %v2011_v18 }
 0xd80   :  { %v2017_v20 = vadd.f32 1e-05, %v2015_v19 }
 0xd81   :  { %v2014_v22 = vpop.xlane.xlu0 %2013 }
 0xd82   :  { %5452 = vrsqrt.f32 %v2017_v20  ;;  %v2016_v24 = vmul.f32 0.03125, %v2014_v22  ;;  %v4621_v22 = vld [vmem:[%s6367_s21] ss:$0 sm:$0xff] }
 0xd84   :  { %v2018_v25 = vadd.f32 1e-05, %v2016_v24 }
 0xd86   :  { %5454 = vrsqrt.f32 %v2018_v25 }
 0xd8c   :  { %v5453_v26 = vpop.eup %5452 }
 0xd8d   :  { %v2021_v28 = vmul.f32 %v5453_v26, %v2005_v60  ;;  %v4628_v26 = vld [vmem:[%s6412_s27 + $0x30] sm:$0xff] }
 0xd8f   :  { %v2029_v30 = vmul.f32 %v4612_v27, %v2021_v28 }
 0xd90   :  { %v5455_v31 = vpop.eup %5454 }
 0xd91   :  { %v2022_v32 = vmul.f32 %v5455_v31, %v2006_v59  ;;  %v2037_v33 = vadd.f32 %v4613_v29, %v2029_v30 }
 0xd93   :  { %v2030_v34 = vmul.f32 %v4612_v27, %v2022_v32  ;;  %5049 = vmatprep.mubr.msk.f32.mxu1 %vm100_vm0, %v2037_v33  ;;  %v4629_v27 = vld [vmem:[%s6412_s27 + $0x38] sm:$0xff]  ;;  %s6428_s27 = sld [smem:[#allocation14_spill]] }
 0xd94   :  { %v5342_v30 = vpack.c.bf16 %v4629_v27, %v4628_v26 }
 0xd95   :  { %v2038_v35 = vadd.f32 %v4613_v29, %v2030_v34 }
 0xd97   :  { %5050 = vmatmul.mubr.msk.f32.vlgmr.msra.gmra.mrb[24].mxu1 %vm100_vm0, %v2038_v35 }
 0xd98   :  { %5333 = vmatpush3.bf16.msra.mxu1 %v5330_v21 }
 0xd99   :  { %5335 = vmatprep.subr.bf16.mxu1 %v5334_v3 }
 0xd9c   :  { %5337 = vmatpush3.bf16.msra.mxu1 %v5334_v3 }
 0xd9d   :  { %5339 = vmatprep.subr.bf16.mxu1 %v5338_v6 }
 0xe6a   :  { %v5051_v40 = vpop.f32.mrb[24].mxu1 }
 0xe6b   :  { %v2128_v41 = vadd.f32 %v5051_v40, %v4614_v39  ;;  %v2122_v42 = vpop.f32.mrb[25].mxu1  ;;  %v5504_v40 = vld [vmem:[%s6415_s6] sm:$0xff] }
 0xe6c   :  { %v2123_v43 = vadd.f32 %v4614_v39, %v2122_v42 }
 0xe6d   :  { %v2132_v45 = vmax.f32 %v2128_v41, 0.0 }
 0xe6e   :  { %v2131_v44 = vmax.f32 %v2123_v43, 0.0 }
 0xe70   :  { %5068 = vmatprep.mubr.msk.f32.mxu0 %vm2148_vm4, %v2131_v44 }
 0xe71   :  { %5069 = vmatmul.mubr.msk.f32.vlgmr.msra.gmra.mrb[20].mxu0 %vm2148_vm4, %v2132_v45 }
 0xe72   :  { %5095 = vmatprep.mubr.msk.f32.mxu0 %vm5510_vm1, %v5509_v14 }
 0xf44   :  { %v5070_v47 = vpop.f32.mrb[20].mxu0 }
 0xf45   :  { %v2227_v48 = vadd.f32 %v5070_v47, %v4617_v46  ;;  %v2221_v49 = vpop.f32.mrb[21].mxu0 }
 0xf46   :  { %v2222_v50 = vadd.f32 %v4617_v46, %v2221_v49 }
 0xf47   :  { %v2231_v51 = vadd.f32 %v2227_v48, %v2038_v35 }
 0xf48   :  { %v2230_v52 = vadd.f32 %v2222_v50, %v2037_v33  ;;  %v5505_v50 = vld [vmem:[%s6415_s6 + $0x8] sm:$0xff]  ;;  %s6426_s6 = sld [smem:[#allocation12_spill]] }
 0xf49   :  { %v2237_v53 = vsel %vm100_vm0, %v2231_v51, 0.0 }
 0xf4a   :  { %2238 = vadd.xlane.f32.xlu0 %v2237_v53  ;;  %v2234_v54 = vsel %vm100_vm0, %v2230_v52, 0.0 }
 0xf4b   :  { %2235 = vadd.xlane.f32.xlu1 %v2234_v54 }
 0xfd7   :  { %v2239_v55 = vpop.xlane.xlu0 %2238 }
 0xfd8   :  { %v2241_v13 = vmul.f32 0.03125, %v2239_v55  ;;  %v2236_v11 = vpop.xlane.xlu1 %2235 }
 0xfd9   :  { %v2240_v56 = vmul.f32 0.03125, %v2236_v11 }
 0xfda   :  { %v2243_v57 = vsub.f32 %v2231_v51, %v2241_v13 }
 0xfdb   :  { %v2242_v58 = vsub.f32 %v2230_v52, %v2240_v56 }
 0xfdc   :  { %v2245_v59 = vmul.f32 %v2243_v57, %v2243_v57 }
 0xfdd   :  { %v2244_v60 = vmul.f32 %v2242_v58, %v2242_v58 }
 0xfde   :  { %v2249_v62 = vsel %vm100_vm0, %v2245_v59, 0.0 }
 0xfdf   :  { %2250 = vadd.xlane.f32.xlu0 %v2249_v62  ;;  %v2246_v63 = vsel %vm100_vm0, %v2244_v60, 0.0 }
 0xfe0   :  { %2247 = vadd.xlane.f32.xlu1 %v2246_v63 }
0x106c   :  { %v2251_v7 = vpop.xlane.xlu0 %2250 }
0x106d   :  { %v2253_v8 = vmul.f32 0.03125, %v2251_v7  ;;  %v2248_v9 = vpop.xlane.xlu1 %2247 }
0x106e   :  { %v2252_v10 = vmul.f32 0.03125, %v2248_v9 }
0x106f   :  { %v2255_v12 = vadd.f32 1e-05, %v2253_v8 }
0x1070   :  { %v2254_v15 = vadd.f32 1e-05, %v2252_v10 }
0x1071   :  { %5456 = vrsqrt.f32 %v2255_v12 }
0x1072   :  { %5458 = vrsqrt.f32 %v2254_v15 }
0x107b   :  { %v5457_v16 = vpop.eup %5456 }
0x107c   :  { %v5459_v18 = vpop.eup %5458  ;;  %v2259_v19 = vmul.f32 %v5457_v16, %v2243_v57 }
0x107d   :  { %v2258_v20 = vmul.f32 %v5459_v18, %v2242_v58 }
0x107e   :  { %v2267_v24 = vmul.f32 %v4620_v17, %v2259_v19 }
0x107f   :  { %v2266_v25 = vmul.f32 %v4620_v17, %v2258_v20 }
0x1080   :  { %v6016_v29 = vadd.f32 %v4621_v22, %v2267_v24 }
0x1081   :  { %v6014_v28 = vadd.f32 %v4621_v22, %v2266_v25 }
0x1083   :  { %5079 = vmatprep.mubr.msk.f32.mxu1 %vm100_vm0, %v6014_v28 }
0x1084   :  { %5080 = vmatmul.mubr.msk.f32.vlgmr.msra.gmra.mrb[26].mxu1 %vm100_vm0, %v6016_v29 }
0x1085   :  { %5341 = vmatpush3.bf16.msra.mxu1 %v5338_v6  ;;  %5090 = vmatprep.mubr.msk.f32.mxu1 %vm100_vm0, %v6014_v28 }
0x1086   :  { %5343 = vmatprep.subr.bf16.mxu1 %v5342_v30 }
0x1089   :  { %5345 = vmatpush3.bf16.msra.mxu1 %v5342_v30 }
0x108a   :  { %5098 = vmatprep.subr.mxu1 %v5509_v14 }
0x108c   :  { %5091 = vmatmul.mubr.msk.f32.vlgmr.msra.gmra.mrb[28].mxu1 %vm100_vm0, %v6016_v29 }
0x108d   :  { %5100 = vmatprep.mubr.msk.f32.mxu1 %vm5510_vm1, %v5509_v14 }
0x1157   :  { %v5081_v31 = vpop.f32.mrb[26].mxu1 }
0x1158   :  { %v2369_v32 = vpop.f32.mrb[27].mxu1 }
0x1159   :  { %2617 = vrot.lane.b32.xlu0 %v2369_v32, %s6421_s26 }
0x115f   :  { %v6030_v33 = vpop.f32.mrb[28].mxu1 }
0x1160   :  { %v6032_v34 = vpop.f32.mrb[29].mxu1 }
0x1161   :  { %2619 = vrot.lane.b32.xlu1 %v6032_v34, %s6421_s26  ;;  %5094 = vmatpush3.xpose.msk.msra.mxu0 %vm257_vm2, %v6032_v34 }
0x1162   :  { %5103 = vmatprep.subr.mxu0 %v5509_v14 }
0x1164   :  { %5096 = vmatmul.mubr.msk.f32.vlgmr.msra.gmra.mrb[22].mxu0 %vm257_vm2, %v2369_v32 }
0x1165   :  { %2954 = vrot.lane.b32.xlu1 %v6030_v33, %s6421_s26  ;;  %5105 = vmatprep.mubr.msk.f32.mxu0 %vm5510_vm1, %v5509_v14 }
0x1169   :  { %2952 = vrot.lane.b32.xlu1 %v5081_v31, %s6421_s26 }
0x11cb   :  { %v2618_v36 = vpop.permute.xlu0 %2617 }
0x11d3   :  { %v2620_v35 = vpop.permute.xlu1 %2619 }
0x11d4   :  { %5104 = vmatpush3.xpose.msk.msra.mxu0 %vm257_vm2, %v2620_v35 }
0x11d5   :  { %5113 = vmatprep.subr.mxu0 %v5509_v14 }
0x11d7   :  { %5106 = vmatmul.mubr.msk.f32.vlgmr.msra.gmra.mrb[24].mxu0 %vm257_vm2, %v2618_v36  ;;  %v2955_v37 = vpop.permute.xlu1 %2954 }
0x11d8   :  { %5114 = vmatpush3.xpose.msk.msra.mxu0 %vm257_vm2, %v6030_v33  ;;  %5115 = vmatprep.mubr.msk.f32.mxu0 %vm5510_vm1, %v5509_v14 }
0x11d9   :  { %5123 = vmatprep.subr.mxu0 %v5509_v14 }
0x11db   :  { %5116 = vmatmul.mubr.msk.f32.vlgmr.msra.gmra.mrb[26].mxu0 %vm257_vm2, %v5081_v31  ;;  %v2953_v38 = vpop.permute.xlu1 %2952 }
0x11dc   :  { %5124 = vmatpush3.xpose.msk.msra.mxu0 %vm257_vm2, %v2955_v37  ;;  %5125 = vmatprep.mubr.msk.f32.mxu0 %vm5510_vm1, %v5509_v14 }
0x11df   :  { %5126 = vmatmul.mubr.msk.f32.vlgmr.msra.gmra.mrb[28].mxu0 %vm257_vm2, %v2953_v38 }
0x1237   :  { %v2525_v39 = vpop.f32.mrb[22].mxu0 }
0x1238   :  { %v2526_v41 = vadd.f32 %v5504_v40, %v2525_v39  ;;  %v5097_v42 = vpop.f32.mrb[23].mxu0  ;;  %v4630_v39 = vld [vmem:[%s6416_s1 + $0x20] sm:$0xff] }
0x1239   :  { %v4632_v42 = vld [vmem:[%s6416_s1 + $0x30] sm:$0xff] }
0x123a   :  { %v2529_v43 = vmul.f32 0.17677669, %v2526_v41 }
0x123c   :  { %v2530_v44 = vsel %vm335_vm3, %v2529_v43, -inf }
0x123d   :  { %2531 = vmax.xlane.f32.xlu0 %v2530_v44 }
0x12aa   :  { %v2691_v45 = vpop.f32.mrb[24].mxu0 }
0x12ab   :  { %v2692_v46 = vadd.f32 %v5504_v40, %v2691_v45  ;;  %v5107_v47 = vpop.f32.mrb[25].mxu0  ;;  %v4631_v40 = vld [vmem:[%s6416_s1 + $0x28] sm:$0xff] }
0x12ac   :  { %v5346_v41 = vpack.c.bf16 %v4631_v40, %v4630_v39 }
0x12ad   :  { %v2695_v48 = vmul.f32 0.17677669, %v2692_v46 }
0x12ae   :  { %v2860_v49 = vpop.f32.mrb[26].mxu0  ;;  %5347 = vmatprep.subr.bf16.mxu0 %v5346_v41 }
0x12af   :  { %v2861_v51 = vadd.f32 %v5505_v50, %v2860_v49  ;;  %v5117_v52 = vpop.f32.mrb[27].mxu0  ;;  %v2696_v53 = vsel %vm335_vm3, %v2695_v48, -inf  ;;  %5349 = vmatpush3.bf16.msra.mxu0 %v5346_v41 }
0x12b0   :  { %2697 = vmax.xlane.f32.xlu1 %v2696_v53 }
0x12b1   :  { %v2864_v54 = vmul.f32 0.17677669, %v2861_v51 }
0x12b2   :  { %v3026_v55 = vpop.f32.mrb[28].mxu0 }
0x12b3   :  { %v3027_v13 = vadd.f32 %v5505_v50, %v3026_v55  ;;  %v5127_v11 = vpop.f32.mrb[29].mxu0  ;;  %v2865_v56 = vsel %vm335_vm3, %v2864_v54, -inf  ;;  %v4653_v55 = vld [vmem:[%s6417_s30 + $0x1] ss:$0 sm:$0xff] }
0x12b4   :  { %2866 = vmax.xlane.f32.xlu0 %v2865_v56 }
0x12b5   :  { %v3030_v57 = vmul.f32 0.17677669, %v3027_v13 }
0x12b7   :  { %v3031_v58 = vsel %vm335_vm3, %v3030_v57, -inf }
0x12b8   :  { %3032 = vmax.xlane.f32.xlu0 %v3031_v58 }
0x12c1   :  { %2541 = vrot.lane.b32.xlu1 %v6032_v34, %s6422_s2 }
0x12ca   :  { %v2532_v59 = vpop.xlane.xlu0 %2531 }
0x12cb   :  { %v2533_v60 = vsub.f32 %v2529_v43, %v2532_v59  ;;  %v4633_v43 = vld [vmem:[%s6416_s1 + $0x38] sm:$0xff] }
0x12cc   :  { %v5350_v44 = vpack.c.bf16 %v4633_v43, %v4632_v42 }
0x12cd   :  { %v2534_v62 = vmul.f32 1.442695, %v2533_v60 }
0x12ce   :  { %5351 = vmatprep.subr.bf16.mxu0 %v5350_v44 }
0x12cf   :  { %5460 = vpow2.f32 %v2534_v62  ;;  %5353 = vmatpush3.bf16.msra.mxu0 %v5350_v44 }
0x12d9   :  { %v5461_v63 = vpop.eup %5460 }
0x12da   :  { %v2536_v0 = vsel %vm335_vm3, %v5461_v63, 0.0 }
0x12e5   :  { %2537 = vadd.xlane.f32.xlu1 %v2536_v0 }
0x133d   :  { %v2698_v23 = vpop.xlane.xlu1 %2697 }
0x133e   :  { %v2699_v21 = vsub.f32 %v2695_v48, %v2698_v23 }
0x1340   :  { %v2700_v1 = vmul.f32 1.442695, %v2699_v21 }
0x1341   :  { %v2542_v2 = vpop.permute.xlu1 %2541  ;;  %v2867_v3 = vpop.xlane.xlu0 %2866 }
0x1342   :  { %5462 = vpow2.f32 %v2700_v1  ;;  %v2868_v4 = vsub.f32 %v2864_v54, %v2867_v3  ;;  %5099 = vmatpush3.msra.mxu1 %v2542_v2 }
0x1343   :  { %5108 = vmatprep.subr.mxu1 %v5509_v14 }
0x1344   :  { %v2869_v5 = vmul.f32 1.442695, %v2868_v4 }
0x1345   :  { %v3033_v6 = vpop.xlane.xlu0 %3032 }
0x1346   :  { %5464 = vpow2.f32 %v2869_v5  ;;  %v3034_v7 = vsub.f32 %v3030_v57, %v3033_v6  ;;  %v4663_v5 = vld [vmem:[%s6418_s4 + $0x28] sm:$0xff] }
0x1348   :  { %v3035_v8 = vmul.f32 1.442695, %v3034_v7  ;;  %v4664_v7 = vld [vmem:[%s6418_s4 + $0x30] sm:$0xff] }
0x134a   :  { %5466 = vpow2.f32 %v3035_v8  ;;  %v4665_v8 = vld [vmem:[%s6418_s4 + $0x38] sm:$0xff] }
0x134c   :  { %v5463_v9 = vpop.eup %5462 }
0x134d   :  { %v2702_v10 = vsel %vm335_vm3, %v5463_v9, 0.0 }
0x134e   :  { %2703 = vadd.xlane.f32.xlu0 %v2702_v10  ;;  %v4658_v10 = vld [vmem:[%s6420_s24 + $0x20] sm:$0xff] }
0x1350   :  { %v5465_v12 = vpop.eup %5464 }
0x1351   :  { %v2871_v15 = vsel %vm335_vm3, %v5465_v12, 0.0 }
0x1352   :  { %2872 = vadd.xlane.f32.xlu1 %v2871_v15 }
0x1354   :  { %v5467_v16 = vpop.eup %5466 }
0x1355   :  { %v3037_v17 = vsel %vm335_vm3, %v5467_v16, 0.0 }
0x1356   :  { %3038 = vadd.xlane.f32.xlu0 %v3037_v17  ;;  %v4660_v17 = vld [vmem:[%s6420_s24 + $0x30] sm:$0xff] }
0x1363   :  { %2876 = vrot.lane.b32.xlu1 %v6030_v33, %s6422_s2 }
0x1367   :  { %3042 = vrot.lane.b32.xlu1 %v6030_v33, %s6423_s25 }
0x136c   :  { %2707 = vrot.lane.b32.xlu0 %v6032_v34, %s6423_s25 }
0x1372   :  { %v2538_v18 = vpop.xlane.xlu1 %2537 }
0x1373   :  { %5468 = vrcp.f32 %v2538_v18  ;;  %v4661_v18 = vld [vmem:[%s6420_s24 + $0x38] sm:$0xff] }
0x137d   :  { %v5469_v19 = vpop.eup %5468 }
0x137e   :  { %v2540_v20 = vmul.f32 %v5469_v19, %v5461_v63  ;;  %v5358_v19 = vpack.c.bf16 %v4661_v18, %v4660_v17 }
0x1380   :  { %5101 = vmatmul.mubr.msk.f32.vlgmr.msra.gmra.mrb[30].mxu1 %vm335_vm3, %v2540_v20 }
0x1381   :  { %5110 = vmatprep.mubr.msk.f32.mxu1 %vm5510_vm1, %v5509_v14 }
0x13db   :  { %v2704_v22 = vpop.xlane.xlu0 %2703 }
0x13dc   :  { %5470 = vrcp.f32 %v2704_v22 }
0x13df   :  { %v2873_v24 = vpop.xlane.xlu1 %2872 }
0x13e0   :  { %5472 = vrcp.f32 %v2873_v24 }
0x13e3   :  { %v3039_v25 = vpop.xlane.xlu0 %3038  ;;  %v2877_v30 = vpop.permute.xlu1 %2876 }
0x13e4   :  { %5474 = vrcp.f32 %v3039_v25 }
0x13e6   :  { %v5471_v26 = vpop.eup %5470 }
0x13e7   :  { %v2706_v27 = vmul.f32 %v5471_v26, %v5463_v9  ;;  %v2708_v31 = vpop.permute.xlu0 %2707  ;;  %v3043_v34 = vpop.permute.xlu1 %3042  ;;  %v5366_v9 = vpack.c.bf16 %v4665_v8, %v4664_v7 }
0x13e8   :  { %5109 = vmatpush3.msra.mxu1 %v2708_v31  ;;  %v4656_v31 = vld [vmem:[%s6355_s8 + $0x1] ss:$0 sm:$0xff] }
0x13e9   :  { %5111 = vmatmul.mubr.msk.f32.vlgmr.msra.gmra.mrb[32].mxu1 %vm335_vm3, %v2706_v27  ;;  %5118 = vmatprep.subr.mxu1 %v5509_v14 }
0x13ea   :  { %v5473_v32 = vpop.eup %5472  ;;  %5119 = vmatpush3.msra.mxu1 %v2877_v30  ;;  %5120 = vmatprep.mubr.msk.f32.mxu1 %vm5510_vm1, %v5509_v14 }
0x13eb   :  { %v2875_v33 = vmul.f32 %v5473_v32, %v5465_v12  ;;  %5128 = vmatprep.subr.mxu1 %v5509_v14  ;;  %v4659_v12 = vld [vmem:[%s6420_s24 + $0x28] sm:$0xff] }
0x13ec   :  { %v5354_v15 = vpack.c.bf16 %v4659_v12, %v4658_v10 }
0x13ed   :  { %5121 = vmatmul.mubr.msk.f32.vlgmr.msra.gmra.mrb[34].mxu1 %vm335_vm3, %v2875_v33  ;;  %v4657_v33 = vld [vmem:[%s6425_s22 + $0x1] ss:$0 sm:$0xff] }
0x13ee   :  { %v5475_v35 = vpop.eup %5474  ;;  %5129 = vmatpush3.msra.mxu1 %v3043_v34  ;;  %5130 = vmatprep.mubr.msk.f32.mxu1 %vm5510_vm1, %v5509_v14 }
0x13ef   :  { %v3041_v36 = vmul.f32 %v5475_v35, %v5467_v16  ;;  %v5506_v16 = vld [vmem:[%s6419_s5 + $0x8] sm:$0xff]  ;;  %5355 = vmatprep.subr.bf16.mxu1 %v5354_v15 }
0x13f1   :  { %5131 = vmatmul.mubr.msk.f32.vlgmr.msra.gmra.mrb[36].mxu1 %vm335_vm3, %v3041_v36 }
0x13f2   :  { %5357 = vmatpush3.bf16.msra.mxu1 %v5354_v15 }
0x13f3   :  { %5359 = vmatprep.subr.bf16.mxu1 %v5358_v19 }
0x13f6   :  { %5361 = vmatpush3.bf16.msra.mxu1 %v5358_v19 }
0x13f7   :  { %5166 = vmatprep.subr.mxu1 %v5509_v14 }
0x1453   :  { %v2613_v37 = vpop.f32.mrb[30].mxu1 }
0x1454   :  { %v5102_v38 = vpop.f32.mrb[31].mxu1 }
0x14bc   :  { %v2779_v45 = vpop.f32.mrb[32].mxu1 }
0x14bd   :  { %2784 = vrot.lane.b32.xlu0 %v2779_v45, %s6424_s10  ;;  %v5112_v46 = vpop.f32.mrb[33].mxu1 }
0x14c0   :  { %v2948_v47 = vpop.f32.mrb[34].mxu1 }
0x14c1   :  { %v5122_v48 = vpop.f32.mrb[35].mxu1 }
0x14c4   :  { %v3114_v49 = vpop.f32.mrb[36].mxu1 }
0x14c5   :  { %3119 = vrot.lane.b32.xlu1 %v3114_v49, %s6424_s10  ;;  %v5132_v50 = vpop.f32.mrb[37].mxu1  ;;  %v5507_v49 = vld [vmem:[%s6426_s6] sm:$0xff] }
0x152f   :  { %v2785_v51 = vpop.permute.xlu0 %2784 }
0x1530   :  { %v2787_v52 = vsel %vm257_vm2, %v2613_v37, %v2785_v51 }
0x1531   :  { %5141 = vmatprep.mubr.msk.f32.mxu0 %vm100_vm0, %v2787_v52 }
0x1537   :  { %v3120_v53 = vpop.permute.xlu1 %3119 }
0x1538   :  { %v3122_v54 = vsel %vm257_vm2, %v2948_v47, %v3120_v53 }
0x1539   :  { %5142 = vmatmul.mubr.msk.f32.vlgmr.msra.gmra.mrb[30].mxu0 %vm100_vm0, %v3122_v54 }
0x153a   :  { %5163 = vmatprep.mubr.msk.f32.mxu0 %vm100_vm0, %v5794_v61 }
0x160c   :  { %v5143_v13 = vpop.f32.mrb[30].mxu0 }
0x160d   :  { %v3207_v11 = vadd.f32 %v5143_v13, %v4653_v55  ;;  %v3201_v56 = vpop.f32.mrb[31].mxu0 }
0x160e   :  { %v3202_v57 = vadd.f32 %v4653_v55, %v3201_v56 }
0x160f   :  { %v3211_v58 = vadd.f32 %v3207_v11, %v6016_v29 }
0x1610   :  { %v3210_v59 = vadd.f32 %v3202_v57, %v6014_v28  ;;  %v4662_v28 = vld [vmem:[%s6418_s4 + $0x20] sm:$0xff]  ;;  %v5508_v57 = vld [vmem:[%s6426_s6 + $0x8] sm:$0xff]  ;;  %s6431_s4 = sld [smem:[#allocation17_spill]] }
0x1611   :  { %v3215_v60 = vsel %vm100_vm0, %v3211_v58, 0.0  ;;  %v5362_v6 = vpack.c.bf16 %v4663_v5, %v4662_v28 }
0x1612   :  { %3216 = vadd.xlane.f32.xlu1 %v3215_v60  ;;  %v3212_v62 = vsel %vm100_vm0, %v3210_v59, 0.0 }
0x1613   :  { %3213 = vadd.xlane.f32.xlu0 %v3212_v62  ;;  %5363 = vmatprep.subr.bf16.mxu0 %v5362_v6 }
0x1614   :  { %5365 = vmatpush3.bf16.msra.mxu0 %v5362_v6 }
0x1615   :  { %5367 = vmatprep.subr.bf16.mxu0 %v5366_v9 }
0x1618   :  { %5369 = vmatpush3.bf16.msra.mxu0 %v5366_v9 }
0x1619   :  { %5176 = vmatprep.subr.mxu0 %v5509_v14 }
0x161b   :  { %5164 = vmatmul.mubr.msk.f32.vlgmr.msra.gmra.mrb[32].mxu0 %vm100_vm0, %v5506_v16 }
0x161c   :  { %5178 = vmatprep.mubr.msk.f32.mxu0 %vm5510_vm1, %v5509_v14 }
0x169f   :  { %v3217_v63 = vpop.xlane.xlu1 %3216 }
0x16a0   :  { %v3219_v61 = vmul.f32 0.03125, %v3217_v63  ;;  %v3214_v0 = vpop.xlane.xlu0 %3213 }
0x16a1   :  { %v3218_v23 = vmul.f32 0.03125, %v3214_v0 }
0x16a2   :  { %v3221_v21 = vsub.f32 %v3211_v58, %v3219_v61 }
0x16a3   :  { %v3220_v1 = vsub.f32 %v3210_v59, %v3218_v23 }
0x16a4   :  { %v3223_v4 = vmul.f32 %v3221_v21, %v3221_v21 }
0x16a5   :  { %v3222_v2 = vmul.f32 %v3220_v1, %v3220_v1 }
0x16a6   :  { %v3227_v29 = vsel %vm100_vm0, %v3223_v4, 0.0 }
0x16a7   :  { %v3224_v3 = vsel %vm100_vm0, %v3222_v2, 0.0 }
0x16a8   :  { %3225 = vadd.xlane.f32.xlu0 %v3224_v3 }
0x16ac   :  { %3228 = vadd.xlane.f32.xlu0 %v3227_v29 }
0x16ee   :  { %v6170_v40 = vpop.f32.mrb[32].mxu0 }
0x16ef   :  { %v6172_v41 = vpop.f32.mrb[33].mxu0 }
0x16f0   :  { %3597 = vrot.lane.b32.xlu1 %v6172_v41, %s6421_s26 }
0x16f4   :  { %3932 = vrot.lane.b32.xlu1 %v6170_v40, %s6421_s26 }
0x1735   :  { %v3226_v20 = vpop.xlane.xlu0 %3225 }
0x1736   :  { %v3230_v22 = vmul.f32 0.03125, %v3226_v20 }
0x1738   :  { %v3232_v24 = vadd.f32 1e-05, %v3230_v22 }
0x1739   :  { %v3229_v25 = vpop.xlane.xlu0 %3228 }
0x173a   :  { %5476 = vrsqrt.f32 %v3232_v24  ;;  %v3231_v26 = vmul.f32 0.03125, %v3229_v25 }
0x173c   :  { %v3233_v27 = vadd.f32 1e-05, %v3231_v26 }
0x173e   :  { %5478 = vrsqrt.f32 %v3233_v27 }
0x1744   :  { %v5477_v30 = vpop.eup %5476 }
0x1745   :  { %v3236_v32 = vmul.f32 %v5477_v30, %v3220_v1 }
0x1747   :  { %v3244_v34 = vmul.f32 %v4656_v31, %v3236_v32 }
0x1748   :  { %v5479_v35 = vpop.eup %5478 }
0x1749   :  { %v3237_v36 = vmul.f32 %v5479_v35, %v3221_v21  ;;  %v6160_v37 = vadd.f32 %v4657_v33, %v3244_v34 }
0x174b   :  { %v3245_v38 = vmul.f32 %v4656_v31, %v3237_v36  ;;  %5152 = vmatprep.mubr.msk.f32.mxu1 %vm100_vm0, %v6160_v37 }
0x174d   :  { %v6164_v39 = vadd.f32 %v4657_v33, %v3245_v38 }
0x174f   :  { %5153 = vmatmul.mubr.msk.f32.vlgmr.msra.gmra.mrb[38].mxu1 %vm100_vm0, %v6164_v39 }
0x1750   :  { %5168 = vmatprep.mubr.msk.f32.mxu1 %vm5510_vm1, %v5509_v14  ;;  %5167 = vmatpush3.xpose.msk.msra.mxu1 %vm257_vm2, %v6172_v41 }
0x1751   :  { %5171 = vmatprep.subr.mxu1 %v5509_v14 }
0x1762   :  { %v3598_v42 = vpop.permute.xlu1 %3597 }
0x1763   :  { %5177 = vmatpush3.xpose.msk.msra.mxu0 %vm257_vm2, %v3598_v42 }
0x1764   :  { %5186 = vmatprep.subr.mxu0 %v5509_v14 }
0x1766   :  { %v3933_v46 = vpop.permute.xlu1 %3932 }
0x1822   :  { %v5154_v43 = vpop.f32.mrb[38].mxu1 }
0x1823   :  { %3930 = vrot.lane.b32.xlu1 %v5154_v43, %s6421_s26  ;;  %v3347_v44 = vpop.f32.mrb[39].mxu1 }
0x1824   :  { %3595 = vrot.lane.b32.xlu0 %v3347_v44, %s6421_s26  ;;  %5169 = vmatmul.mubr.msk.f32.vlgmr.msra.gmra.mrb[40].mxu1 %vm257_vm2, %v3347_v44 }
0x1825   :  { %5173 = vmatprep.mubr.msk.f32.mxu1 %vm5510_vm1, %v5509_v14 }
0x1895   :  { %v3931_v47 = vpop.permute.xlu1 %3930 }
0x1896   :  { %v3596_v45 = vpop.permute.xlu0 %3595 }
0x1897   :  { %5179 = vmatmul.mubr.msk.f32.vlgmr.msra.gmra.mrb[34].mxu0 %vm257_vm2, %v3596_v45 }
0x1898   :  { %5187 = vmatpush3.xpose.msk.msra.mxu0 %vm257_vm2, %v6170_v40  ;;  %5188 = vmatprep.mubr.msk.f32.mxu0 %vm5510_vm1, %v5509_v14 }
0x1899   :  { %5196 = vmatprep.subr.mxu0 %v5509_v14 }
0x189b   :  { %5189 = vmatmul.mubr.msk.f32.vlgmr.msra.gmra.mrb[36].mxu0 %vm257_vm2, %v5154_v43 }
0x189c   :  { %5197 = vmatpush3.xpose.msk.msra.mxu0 %vm257_vm2, %v3933_v46  ;;  %5198 = vmatprep.mubr.msk.f32.mxu0 %vm5510_vm1, %v5509_v14 }
0x189f   :  { %5199 = vmatmul.mubr.msk.f32.vlgmr.msra.gmra.mrb[38].mxu0 %vm257_vm2, %v3931_v47  ;;  %v4666_v47 = vld [vmem:[%s6427_s3 + $0x20] sm:$0xff] }
0x18f7   :  { %v3503_v48 = vpop.f32.mrb[40].mxu1 }
0x18f8   :  { %v3504_v50 = vadd.f32 %v5507_v49, %v3503_v48  ;;  %v5170_v51 = vpop.f32.mrb[41].mxu1  ;;  %v4667_v48 = vld [vmem:[%s6427_s3 + $0x28] sm:$0xff] }
0x18fa   :  { %v3507_v52 = vmul.f32 0.17677669, %v3504_v50  ;;  %v4668_v50 = vld [vmem:[%s6427_s3 + $0x30] sm:$0xff] }
0x18fc   :  { %v3508_v53 = vsel %vm335_vm3, %v3507_v52, -inf }
0x18fd   :  { %3509 = vmax.xlane.f32.xlu0 %v3508_v53 }
0x196a   :  { %v3669_v54 = vpop.f32.mrb[34].mxu0 }
0x196b   :  { %v3670_v55 = vadd.f32 %v5507_v49, %v3669_v54  ;;  %v5180_v13 = vpop.f32.mrb[35].mxu0  ;;  %v5370_v49 = vpack.c.bf16 %v4667_v48, %v4666_v47 }
0x196d   :  { %v3673_v11 = vmul.f32 0.17677669, %v3670_v55  ;;  %5371 = vmatprep.subr.bf16.mxu0 %v5370_v49 }
0x196e   :  { %v3838_v56 = vpop.f32.mrb[36].mxu0  ;;  %5373 = vmatpush3.bf16.msra.mxu0 %v5370_v49  ;;  %v4708_v49 = vld [vmem:[%s6361_s18 + $0x70] sm:$0xff] }
0x196f   :  { %v3839_v58 = vadd.f32 %v5508_v57, %v3838_v56  ;;  %v5190_v59 = vpop.f32.mrb[37].mxu0  ;;  %v3674_v60 = vsel %vm335_vm3, %v3673_v11, -inf }
0x1970   :  { %3675 = vmax.xlane.f32.xlu1 %v3674_v60  ;;  %v4689_v60 = vld [vmem:[%s6428_s27 + $0x1] ss:$0 sm:$0xff] }
0x1971   :  { %v3842_v62 = vmul.f32 0.17677669, %v3839_v58 }
0x1972   :  { %v4004_v63 = vpop.f32.mrb[38].mxu0 }
0x1973   :  { %v4005_v61 = vadd.f32 %v5508_v57, %v4004_v63  ;;  %v5200_v0 = vpop.f32.mrb[39].mxu0  ;;  %v3843_v23 = vsel %vm335_vm3, %v3842_v62, -inf }
0x1974   :  { %3844 = vmax.xlane.f32.xlu0 %v3843_v23 }
0x1975   :  { %v4008_v21 = vmul.f32 0.17677669, %v4005_v61 }
0x1977   :  { %v4009_v1 = vsel %vm335_vm3, %v4008_v21, -inf }
0x1978   :  { %4010 = vmax.xlane.f32.xlu0 %v4009_v1 }
0x1981   :  { %3519 = vrot.lane.b32.xlu1 %v6172_v41, %s6422_s2 }
0x198a   :  { %v3510_v2 = vpop.xlane.xlu0 %3509 }
0x198b   :  { %v3511_v3 = vsub.f32 %v3507_v52, %v3510_v2 }
0x198d   :  { %v3512_v4 = vmul.f32 1.442695, %v3511_v3 }
0x198f   :  { %5480 = vpow2.f32 %v3512_v4 }
0x1999   :  { %v5481_v29 = vpop.eup %5480 }
0x199a   :  { %v3514_v28 = vsel %vm335_vm3, %v5481_v29, 0.0 }
0x19a5   :  { %3515 = vadd.xlane.f32.xlu1 %v3514_v28 }
0x19fd   :  { %v3676_v5 = vpop.xlane.xlu1 %3675 }
0x19fe   :  { %v3677_v6 = vsub.f32 %v3673_v11, %v3676_v5 }
0x1a00   :  { %v3678_v7 = vmul.f32 1.442695, %v3677_v6 }
0x1a01   :  { %v3520_v8 = vpop.permute.xlu1 %3519  ;;  %v3845_v9 = vpop.xlane.xlu0 %3844 }
0x1a02   :  { %5482 = vpow2.f32 %v3678_v7  ;;  %v3846_v10 = vsub.f32 %v3842_v62, %v3845_v9  ;;  %5172 = vmatpush3.msra.mxu1 %v3520_v8 }
0x1a03   :  { %5181 = vmatprep.subr.mxu1 %v5509_v14 }
0x1a04   :  { %v3847_v12 = vmul.f32 1.442695, %v3846_v10  ;;  %v4695_v10 = vld [vmem:[%s6360_s16 + $0x28] sm:$0xff] }
0x1a05   :  { %v4011_v15 = vpop.xlane.xlu0 %4010 }
0x1a06   :  { %5484 = vpow2.f32 %v3847_v12  ;;  %v4012_v16 = vsub.f32 %v4008_v21, %v4011_v15  ;;  %v4696_v15 = vld [vmem:[%s6360_s16 + $0x30] sm:$0xff] }
0x1a08   :  { %v4013_v17 = vmul.f32 1.442695, %v4012_v16  ;;  %v4697_v16 = vld [vmem:[%s6360_s16 + $0x38] sm:$0xff] }
0x1a0a   :  { %5486 = vpow2.f32 %v4013_v17  ;;  %v5382_v17 = vpack.c.bf16 %v4697_v16, %v4696_v15 }
0x1a0c   :  { %v5483_v18 = vpop.eup %5482 }
0x1a0d   :  { %v3680_v19 = vsel %vm335_vm3, %v5483_v18, 0.0 }
0x1a0e   :  { %3681 = vadd.xlane.f32.xlu0 %v3680_v19  ;;  %v4703_v19 = vld [vmem:[%s6361_s18 + $0x48] sm:$0xff] }
0x1a10   :  { %v5485_v20 = vpop.eup %5484 }
0x1a11   :  { %v3849_v22 = vsel %vm335_vm3, %v5485_v20, 0.0 }
0x1a12   :  { %3850 = vadd.xlane.f32.xlu1 %v3849_v22 }
0x1a14   :  { %v5487_v24 = vpop.eup %5486 }
0x1a15   :  { %v4015_v25 = vsel %vm335_vm3, %v5487_v24, 0.0 }
0x1a16   :  { %4016 = vadd.xlane.f32.xlu0 %v4015_v25 }
0x1a23   :  { %3854 = vrot.lane.b32.xlu1 %v6170_v40, %s6422_s2 }
0x1a27   :  { %4020 = vrot.lane.b32.xlu1 %v6170_v40, %s6423_s25 }
0x1a2c   :  { %3685 = vrot.lane.b32.xlu0 %v6172_v41, %s6423_s25 }
0x1a32   :  { %v3516_v26 = vpop.xlane.xlu1 %3515 }
0x1a33   :  { %5488 = vrcp.f32 %v3516_v26  ;;  %v4706_v26 = vld [vmem:[%s6361_s18 + $0x60] sm:$0xff] }
0x1a3d   :  { %v5489_v27 = vpop.eup %5488 }
0x1a3e   :  { %v3518_v30 = vmul.f32 %v5489_v27, %v5481_v29  ;;  %v4707_v27 = vld [vmem:[%s6361_s18 + $0x68] sm:$0xff] }
0x1a40   :  { %5174 = vmatmul.mubr.msk.f32.vlgmr.msra.gmra.mrb[42].mxu1 %vm335_vm3, %v3518_v30  ;;  %v5394_v30 = vpack.c.bf16 %v4707_v27, %v4706_v26  ;;  %v4717_v27 = vld [vmem:[%s6367_s21 + $0x1] ss:$0 sm:$0xff] }
0x1a41   :  { %5183 = vmatprep.mubr.msk.f32.mxu1 %vm5510_vm1, %v5509_v14 }
0x1a9b   :  { %v3682_v31 = vpop.xlane.xlu0 %3681 }
0x1a9c   :  { %5490 = vrcp.f32 %v3682_v31 }
0x1a9f   :  { %v3851_v32 = vpop.xlane.xlu1 %3850 }
0x1aa0   :  { %5492 = vrcp.f32 %v3851_v32 }
0x1aa3   :  { %v4017_v33 = vpop.xlane.xlu0 %4016  ;;  %v3855_v36 = vpop.permute.xlu1 %3854 }
0x1aa4   :  { %5494 = vrcp.f32 %v4017_v33 }
0x1aa6   :  { %v5491_v34 = vpop.eup %5490 }
0x1aa7   :  { %v3684_v35 = vmul.f32 %v5491_v34, %v5483_v18  ;;  %v3686_v38 = vpop.permute.xlu0 %3685  ;;  %v4021_v42 = vpop.permute.xlu1 %4020  ;;  %v4702_v18 = vld [vmem:[%s6361_s18 + $0x40] sm:$0xff] }
0x1aa8   :  { %5182 = vmatpush3.msra.mxu1 %v3686_v38  ;;  %v5386_v22 = vpack.c.bf16 %v4703_v19, %v4702_v18 }
0x1aa9   :  { %5184 = vmatmul.mubr.msk.f32.vlgmr.msra.gmra.mrb[44].mxu1 %vm335_vm3, %v3684_v35  ;;  %5191 = vmatprep.subr.mxu1 %v5509_v14 }
0x1aaa   :  { %v5493_v40 = vpop.eup %5492  ;;  %5192 = vmatpush3.msra.mxu1 %v3855_v36  ;;  %5193 = vmatprep.mubr.msk.f32.mxu1 %vm5510_vm1, %v5509_v14 }
0x1aab   :  { %v3853_v41 = vmul.f32 %v5493_v40, %v5485_v20  ;;  %5201 = vmatprep.subr.mxu1 %v5509_v14  ;;  %v4704_v20 = vld [vmem:[%s6361_s18 + $0x50] sm:$0xff]  ;;  %v4692_v40 = vld [vmem:[%s6362_s14 + $0x1] ss:$0 sm:$0xff] }
0x1aad   :  { %5194 = vmatmul.mubr.msk.f32.vlgmr.msra.gmra.mrb[46].mxu1 %vm335_vm3, %v3853_v41 }
0x1aae   :  { %v5495_v43 = vpop.eup %5494  ;;  %5202 = vmatpush3.msra.mxu1 %v4021_v42  ;;  %5203 = vmatprep.mubr.msk.f32.mxu1 %vm5510_vm1, %v5509_v14  ;;  %v4669_v14 = vld [vmem:[%s6427_s3 + $0x38] sm:$0xff]  ;;  %v4693_v42 = vld [vmem:[%s6363_s15 + $0x1] ss:$0 sm:$0xff] }
0x1aaf   :  { %v4019_v44 = vmul.f32 %v5495_v43, %v5487_v24  ;;  %v5374_v51 = vpack.c.bf16 %v4669_v14, %v4668_v50  ;;  %v4705_v24 = vld [vmem:[%s6361_s18 + $0x58] sm:$0xff] }
0x1ab0   :  { %v5390_v25 = vpack.c.bf16 %v4705_v24, %v4704_v20  ;;  %v4709_v50 = vld [vmem:[%s6361_s18 + $0x78] sm:$0xff] }
0x1ab1   :  { %5204 = vmatmul.mubr.msk.f32.vlgmr.msra.gmra.mrb[48].mxu1 %vm335_vm3, %v4019_v44  ;;  %5375 = vmatprep.subr.bf16.mxu0 %v5374_v51  ;;  %v5398_v14 = vpack.c.bf16 %v4709_v50, %v4708_v49 }
0x1ab2   :  { %5377 = vmatpush3.bf16.msra.mxu0 %v5374_v51  ;;  %v4699_v51 = vld [vmem:[%s6364_s17 + $0x1] ss:$0 sm:$0xff] }
0x1ab3   :  { %5387 = vmatprep.subr.bf16.mxu0 %v5386_v22 }
0x1b13   :  { %v3591_v45 = vpop.f32.mrb[42].mxu1 }
0x1b14   :  { %v5175_v46 = vpop.f32.mrb[43].mxu1 }
0x1b7c   :  { %v3757_v52 = vpop.f32.mrb[44].mxu1 }
0x1b7d   :  { %3762 = vrot.lane.b32.xlu0 %v3757_v52, %s6424_s10  ;;  %v5185_v53 = vpop.f32.mrb[45].mxu1 }
0x1b80   :  { %v3926_v54 = vpop.f32.mrb[46].mxu1 }
0x1b81   :  { %v5195_v55 = vpop.f32.mrb[47].mxu1 }
0x1b84   :  { %v4092_v13 = vpop.f32.mrb[48].mxu1 }
0x1b85   :  { %4097 = vrot.lane.b32.xlu1 %v4092_v13, %s6424_s10  ;;  %v5205_v11 = vpop.f32.mrb[49].mxu1 }
0x1bef   :  { %v3763_v56 = vpop.permute.xlu0 %3762 }
0x1bf0   :  { %v3765_v57 = vsel %vm257_vm2, %v3591_v45, %v3763_v56  ;;  %v4711_v56 = vld [vmem:[%s6365_s19 + $0x1] ss:$0 sm:$0xff]  ;;  %s6429_s19 = sld [smem:[#allocation15_spill]] }
0x1bf1   :  { %5214 = vmatprep.mubr.msk.f32.mxu0 %vm100_vm0, %v3765_v57 }
0x1bf7   :  { %v4098_v58 = vpop.permute.xlu1 %4097 }
0x1bf8   :  { %v4100_v59 = vsel %vm257_vm2, %v3926_v54, %v4098_v58 }
0x1bf9   :  { %5215 = vmatmul.mubr.msk.f32.vlgmr.msra.gmra.mrb[40].mxu0 %vm100_vm0, %v4100_v59 }
0x1bfa   :  { %5389 = vmatpush3.bf16.msra.mxu0 %v5386_v22  ;;  %v4716_v22 = vld [vmem:[%s6366_s20 + $0x1] ss:$0 sm:$0xff] }
0x1bfb   :  { %5391 = vmatprep.subr.bf16.mxu0 %v5390_v25 }
0x1bfe   :  { %5393 = vmatpush3.bf16.msra.mxu0 %v5390_v25 }
0x1bff   :  { %5395 = vmatprep.subr.bf16.mxu0 %v5394_v30 }
0x1c02   :  { %5397 = vmatpush3.bf16.msra.mxu0 %v5394_v30 }
0x1c03   :  { %5399 = vmatprep.subr.bf16.mxu0 %v5398_v14 }
0x1c06   :  { %5401 = vmatpush3.bf16.msra.mxu0 %v5398_v14 }
0x1ccc   :  { %v5216_v62 = vpop.f32.mrb[40].mxu0 }
0x1ccd   :  { %v4185_v63 = vadd.f32 %v5216_v62, %v4689_v60  ;;  %v4179_v61 = vpop.f32.mrb[41].mxu0 }
0x1cce   :  { %v4180_v0 = vadd.f32 %v4689_v60, %v4179_v61 }
0x1ccf   :  { %v4189_v23 = vadd.f32 %v4185_v63, %v6164_v39 }
0x1cd0   :  { %v4188_v21 = vadd.f32 %v4180_v0, %v6160_v37  ;;  %v4694_v37 = vld [vmem:[%s6360_s16 + $0x20] sm:$0xff] }
0x1cd1   :  { %v4193_v1 = vsel %vm100_vm0, %v4189_v23, 0.0  ;;  %v5378_v12 = vpack.c.bf16 %v4695_v10, %v4694_v37  ;;  %v4477_v37 = vld [vmem:[%s6429_s19 + $0x18] sm:$0xff] }
0x1cd2   :  { %4194 = vadd.xlane.f32.xlu1 %v4193_v1  ;;  %v4190_v2 = vsel %vm100_vm0, %v4188_v21, 0.0 }
0x1cd3   :  { %4191 = vadd.xlane.f32.xlu0 %v4190_v2  ;;  %5379 = vmatprep.subr.bf16.mxu1 %v5378_v12 }
0x1cd4   :  { %5381 = vmatpush3.bf16.msra.mxu1 %v5378_v12 }
0x1cd5   :  { %5383 = vmatprep.subr.bf16.mxu1 %v5382_v17 }
0x1cd8   :  { %5385 = vmatpush3.bf16.msra.mxu1 %v5382_v17 }
0x1d5f   :  { %v4195_v3 = vpop.xlane.xlu1 %4194 }
0x1d60   :  { %v4197_v4 = vmul.f32 0.03125, %v4195_v3  ;;  %v4192_v29 = vpop.xlane.xlu0 %4191 }
0x1d61   :  { %v4196_v28 = vmul.f32 0.03125, %v4192_v29 }
0x1d62   :  { %v4199_v5 = vsub.f32 %v4189_v23, %v4197_v4 }
0x1d63   :  { %v4198_v6 = vsub.f32 %v4188_v21, %v4196_v28 }
0x1d64   :  { %v4201_v9 = vmul.f32 %v4199_v5, %v4199_v5 }
0x1d65   :  { %v4200_v7 = vmul.f32 %v4198_v6, %v4198_v6 }
0x1d66   :  { %v4205_v39 = vsel %vm100_vm0, %v4201_v9, 0.0 }
0x1d67   :  { %v4202_v8 = vsel %vm100_vm0, %v4200_v7, 0.0  ;;  %v4474_v7 = vld [vmem:[%s6429_s19] sm:$0xff] }
0x1d68   :  { %4203 = vadd.xlane.f32.xlu0 %v4202_v8  ;;  %v4475_v8 = vld [vmem:[%s6429_s19 + $0x8] sm:$0xff] }
0x1d69   :  { %v5402_v9 = vpack.c.bf16 %v4475_v8, %v4474_v7 }
0x1d6b   :  { %5403 = vmatprep.subr.bf16.mxu1 %v5402_v9 }
0x1d6c   :  { %4206 = vadd.xlane.f32.xlu0 %v4205_v39  ;;  %v4476_v39 = vld [vmem:[%s6429_s19 + $0x10] sm:$0xff] }
0x1d6d   :  { %v5406_v10 = vpack.c.bf16 %v4477_v37, %v4476_v39 }
0x1df5   :  { %v4204_v31 = vpop.xlane.xlu0 %4203 }
0x1df6   :  { %v4208_v32 = vmul.f32 0.03125, %v4204_v31 }
0x1df8   :  { %v4210_v33 = vadd.f32 1e-05, %v4208_v32 }
0x1df9   :  { %v4207_v34 = vpop.xlane.xlu0 %4206 }
0x1dfa   :  { %5496 = vrsqrt.f32 %v4210_v33  ;;  %v4209_v35 = vmul.f32 0.03125, %v4207_v34  ;;  %v4718_v34 = vld [vmem:[%s6430_s28] ss:$0 sm:$0xff] }
0x1dfc   :  { %v4211_v36 = vadd.f32 1e-05, %v4209_v35 }
0x1dfe   :  { %5498 = vrsqrt.f32 %v4211_v36 }
0x1e04   :  { %v5497_v38 = vpop.eup %5496 }
0x1e05   :  { %v4214_v41 = vmul.f32 %v5497_v38, %v4198_v6 }
0x1e07   :  { %v4222_v43 = vmul.f32 %v4692_v40, %v4214_v41 }
0x1e08   :  { %v5499_v44 = vpop.eup %5498 }
0x1e09   :  { %v4215_v45 = vmul.f32 %v5499_v44, %v4199_v5  ;;  %v4230_v46 = vadd.f32 %v4693_v42, %v4222_v43 }
0x1e0b   :  { %v4223_v47 = vmul.f32 %v4692_v40, %v4215_v45  ;;  %5225 = vmatprep.mubr.msk.f32.mxu1 %vm100_vm0, %v4230_v46 }
0x1e0d   :  { %v4231_v48 = vadd.f32 %v4693_v42, %v4223_v47 }
0x1e0f   :  { %5226 = vmatmul.mubr.msk.f32.vlgmr.msra.gmra.mrb[50].mxu1 %vm100_vm0, %v4231_v48 }
0x1e10   :  { %5405 = vmatpush3.bf16.msra.mxu1 %v5402_v9 }
0x1e11   :  { %5407 = vmatprep.subr.bf16.mxu1 %v5406_v10 }
0x1e14   :  { %5409 = vmatpush3.bf16.msra.mxu1 %v5406_v10 }
0x1ee2   :  { %v5227_v52 = vpop.f32.mrb[50].mxu1 }
0x1ee3   :  { %v4323_v53 = vadd.f32 %v5227_v52, %v4699_v51  ;;  %v4317_v54 = vpop.f32.mrb[51].mxu1 }
0x1ee4   :  { %v4318_v55 = vadd.f32 %v4699_v51, %v4317_v54 }
0x1ee5   :  { %v4327_v11 = vmax.f32 %v4323_v53, 0.0 }
0x1ee6   :  { %v4326_v13 = vmax.f32 %v4318_v55, 0.0 }
0x1ee8   :  { %5244 = vmatprep.mubr.msk.f32.mxu0 %vm2148_vm4, %v4326_v13 }
0x1ee9   :  { %5245 = vmatmul.mubr.msk.f32.vlgmr.msra.gmra.mrb[42].mxu0 %vm2148_vm4, %v4327_v11 }
0x1fbc   :  { %v5246_v57 = vpop.f32.mrb[42].mxu0 }
0x1fbd   :  { %v4423_v58 = vadd.f32 %v5246_v57, %v4711_v56  ;;  %v4417_v59 = vpop.f32.mrb[43].mxu0 }
0x1fbe   :  { %v4418_v60 = vadd.f32 %v4711_v56, %v4417_v59 }
0x1fbf   :  { %v4427_v62 = vadd.f32 %v4423_v58, %v4231_v48 }
0x1fc0   :  { %v4426_v63 = vadd.f32 %v4418_v60, %v4230_v46 }
0x1fc1   :  { %v4435_v61 = vsel %vm100_vm0, %v4427_v62, 0.0 }
0x1fc2   :  { %4436 = vadd.xlane.f32.xlu0 %v4435_v61  ;;  %v4432_v0 = vsel %vm100_vm0, %v4426_v63, 0.0 }
0x1fc3   :  { %4433 = vadd.xlane.f32.xlu1 %v4432_v0 }
0x204f   :  { %v4437_v23 = vpop.xlane.xlu0 %4436 }
0x2050   :  { %v4439_v21 = vmul.f32 0.03125, %v4437_v23  ;;  %v4434_v1 = vpop.xlane.xlu1 %4433 }
0x2051   :  { %v4438_v2 = vmul.f32 0.03125, %v4434_v1 }
0x2052   :  { %v4441_v3 = vsub.f32 %v4427_v62, %v4439_v21 }
0x2053   :  { %v4440_v4 = vsub.f32 %v4426_v63, %v4438_v2 }
0x2054   :  { %v4443_v29 = vmul.f32 %v4441_v3, %v4441_v3 }
0x2055   :  { %v4442_v28 = vmul.f32 %v4440_v4, %v4440_v4 }
0x2056   :  { %v4447_v5 = vsel %vm100_vm0, %v4443_v29, 0.0 }
0x2057   :  { %4448 = vadd.xlane.f32.xlu0 %v4447_v5  ;;  %v4444_v6 = vsel %vm100_vm0, %v4442_v28, 0.0 }
0x2058   :  { %4445 = vadd.xlane.f32.xlu1 %v4444_v6 }
0x20e4   :  { %v4449_v12 = vpop.xlane.xlu0 %4448 }
0x20e5   :  { %v4451_v15 = vmul.f32 0.03125, %v4449_v12  ;;  %v4446_v16 = vpop.xlane.xlu1 %4445 }
0x20e6   :  { %v4450_v17 = vmul.f32 0.03125, %v4446_v16 }
0x20e7   :  { %v4453_v18 = vadd.f32 1e-05, %v4451_v15 }
0x20e8   :  { %v4452_v19 = vadd.f32 1e-05, %v4450_v17 }
0x20e9   :  { %5500 = vrsqrt.f32 %v4453_v18 }
0x20ea   :  { %5502 = vrsqrt.f32 %v4452_v19 }
0x20f3   :  { %v5501_v20 = vpop.eup %5500 }
0x20f4   :  { %v5503_v24 = vpop.eup %5502  ;;  %v4457_v25 = vmul.f32 %v5501_v20, %v4441_v3 }
0x20f5   :  { %v4456_v26 = vmul.f32 %v5503_v24, %v4440_v4 }
0x20f6   :  { %v4465_v30 = vmul.f32 %v4716_v22, %v4457_v25 }
0x20f7   :  { %v4464_v31 = vmul.f32 %v4716_v22, %v4456_v26 }
0x20f8   :  { %v4473_v33 = vadd.f32 %v4717_v27, %v4465_v30 }
0x20f9   :  { %v4472_v32 = vadd.f32 %v4717_v27, %v4464_v31 }
0x20fb   :  { %5255 = vmatprep.mubr.msk.f32.mxu1 %vm100_vm0, %v4472_v32 }
0x20fc   :  { %5256 = vmatmul.mubr.msk.f32.vlgmr.msra.gmra.mrb[52].mxu1 %vm100_vm0, %v4473_v33 }
0x21cf   :  { %v5257_v35 = vpop.f32.mrb[52].mxu1 }
0x21d0   :  { %v4563_v36 = vadd.f32 %v5257_v35, %v4718_v34  ;;  %v4557_v38 = vpop.f32.mrb[53].mxu1 }
0x21d1   :  { %v4558_v40 = vadd.f32 %v4718_v34, %v4557_v38 }
0x21d2   :  { %4567 = vst [vmem:[%s6431_s4 + $0x8] sm:$0xff] %v4563_v36 }
0x21d3   :  { %4566 = vst [vmem:[%s6431_s4] sm:$0xff] %v4558_v40 }

</bundles_post_ra>
